<compile_context>
chip_gen: v6e
topology: v6e:2x2x1
jax: 0.10.0
libtpu: 0.0.40
codegen_flags: <defaults>
</compile_context>

<pallas_src>
import math
from functools import partial

import jax
import jax.numpy as jnp
from jax.experimental import pallas as pl
from jax.experimental.pallas import tpu as pltpu


# ----------------------------- in-kernel lgamma -----------------------------
_LANCZOS_G = 7.0
_LANCZOS_COEF = (
    0.99999999999980993, 676.5203681218851, -1259.1392167224028,
    771.32342877765313, -176.61502916214059, 12.507343278686905,
    -0.13857109526572012, 9.9843695780195716e-6, 1.5056327351493116e-7,
)
_HALF_LOG_2PI = 0.5 * math.log(2.0 * math.pi)


def _lgamma_pos(z):
    """Lanczos log-gamma for z > 0, written as one rational P/Q (single divide)."""
    zm1 = z - 1.0
    num = jnp.full_like(zm1, _LANCZOS_COEF[0])
    den = jnp.ones_like(zm1)
    for i in range(1, len(_LANCZOS_COEF)):
        t_i = zm1 + float(i)
        num = num * t_i + _LANCZOS_COEF[i] * den   # VALU fma-style accumulation
        den = den * t_i
    s = num / den                                  # one EUP divide (was 8)
    t = zm1 + _LANCZOS_G + 0.5
    return _HALF_LOG_2PI + (zm1 + 0.5) * jnp.log(t) - t + jnp.log(s)


_OUT_W = 128  # lane-dense packed-output width


# --------------------------------- kernel -----------------------------------
def _vae_kernel(
    x_ref, llm_ref, llv_ref, epsz_ref, epsl_ref,
    w1_ref, b1_ref, zwmv_ref, zbmv_ref, lwmv_ref, lbmv_ref,
    dw1_ref, db1_ref, dws_ref, dbs_ref, theta_ref, ctheta_ref,
    out_ref,
):
    H = w1_ref.shape[1] // 2
    L = zwmv_ref.shape[1] // 2

    x = x_ref[...]
    xlog = jnp.log1p(x)                       # log(1 + x)  (log_variational=True)
    xlog_bf = xlog.astype(jnp.bfloat16)

    # ---- fused z/l-encoder first layer: Linear (BN folded) -> ReLU (dropout eval no-op)
    h_all = jnp.dot(xlog_bf, w1_ref[...], preferred_element_type=jnp.float32) + b1_ref[...]
    h_all = jnp.maximum(h_all, 0.0)
    h_z = h_all[:, :H].astype(jnp.bfloat16)
    h_l = h_all[:, H:].astype(jnp.bfloat16)

    # ---- z-encoder mean/var heads (fused into one (H, 2L) matmul)
    zmv = jnp.dot(h_z, zwmv_ref[...], preferred_element_type=jnp.float32) + zbmv_ref[...]
    qz_m = zmv[:, :L]
    qz_v = jnp.exp(zmv[:, L:]) + 1e-4
    z = qz_m + jnp.sqrt(qz_v) * epsz_ref[...]          # reparameterized rsample

    # ---- l-encoder mean/var heads (fused into one (H, 2) matmul)
    lmv = jnp.dot(h_l, lwmv_ref[...], preferred_element_type=jnp.float32) + lbmv_ref[...]
    ql_m = lmv[:, 0:1]
    ql_v = jnp.exp(lmv[:, 1:2]) + 1e-4
    library = ql_m + jnp.sqrt(ql_v) * epsl_ref[...]

    # ---- decoder (DecoderSCVI): Linear(BN folded)->ReLU -> softmax scale head
    hd = jnp.dot(z.astype(jnp.bfloat16), dw1_ref[...],
                 preferred_element_type=jnp.float32) + db1_ref[...]
    hd = jnp.maximum(hd, 0.0)
    logits = jnp.dot(hd.astype(jnp.bfloat16), dws_ref[...],
                     preferred_element_type=jnp.float32) + dbs_ref[...]
    logits = logits - jnp.max(logits, axis=-1, keepdims=True)
    e = jnp.exp(logits)
    px_scale = e * pl.reciprocal(jnp.sum(e, axis=-1, keepdims=True), approx=False)
    px_rate = jnp.exp(library) * px_scale              # (bm, G)
    theta = theta_ref[...]                             # (1, G), precomputed exp(px_r)

    # ---- reconstruction: -log_nb_positive + 0.5 * mse_positive
    # ctheta = theta*log(theta+eps) - lgamma(theta) precomputed outside (param-only).
    eps = 1e-8
    log_t_mu = jnp.log(theta + px_rate + eps)
    log_nb = (ctheta_ref[...]
              - (theta + x) * log_t_mu
              + x * jnp.log(px_rate + eps)
              + _lgamma_pos(x + theta)
              - _lgamma_pos(x + 1.0))
    mse = (xlog - jnp.log1p(px_rate)) ** 2
    reconst = (-jnp.sum(log_nb, axis=-1, keepdims=True)
               + 0.5 * jnp.sum(mse, axis=-1, keepdims=True))

    # ---- KL divergences (torch.distributions Normal || Normal)
    kl_z = 0.5 * (qz_v + qz_m * qz_m - 1.0 - jnp.log(qz_v))
    klz_sum = jnp.sum(kl_z, axis=-1, keepdims=True)
    llm = llm_ref[...]
    inv_llv = 1.0 / llv_ref[...]     # matches torch: no eps; degenerate llv -> inf
    var_ratio = ql_v * inv_llv
    kl_l = 0.5 * (var_ratio + (ql_m - llm) ** 2 * inv_llv - 1.0 - jnp.log(var_ratio))

    # ---- pack outputs lane-dense: col 0 = reconst, col 1 = kl_z, col 2 = kl_l
    bm, w = out_ref.shape
    col = jax.lax.broadcasted_iota(jnp.int32, (bm, w), 1)
    out_ref[...] = (jnp.where(col == 0, reconst, 0.0)
                    + jnp.where(col == 1, klz_sum, 0.0)
                    + jnp.where(col == 2, kl_l, 0.0))


# ------------------------------ param init / prep ----------------------------
def init_raw_params(key, n_input, n_hidden, n_latent):
    """Raw (PyTorch-like) params: Linear weights stored (in,out), BN stats explicit."""
    ks = jax.random.split(key, 8)

    def lin(k, fan_in, fan_out, scale=0.05):
        kw, kb = jax.random.split(k)
        return (jax.random.normal(kw, (fan_in, fan_out), jnp.float32) * scale,
                jax.random.normal(kb, (1, fan_out), jnp.float32) * scale)

    def bn(n):  # fresh BatchNorm1d(eps=1e-3) running stats, eval mode
        return dict(gamma=jnp.ones((n,), jnp.float32), beta=jnp.zeros((n,), jnp.float32),
                    mean=jnp.zeros((n,), jnp.float32), var=jnp.ones((n,), jnp.float32))

    zeW1, zeb1 = lin(ks[0], n_input, n_hidden)
    zeWm, zebm = lin(ks[1], n_hidden, n_latent)
    zeWv, zebv = lin(ks[2], n_hidden, n_latent)
    leW1, leb1 = lin(ks[3], n_input, n_hidden)
    leWm, lebm = lin(ks[4], n_hidden, 1)
    leWv, lebv = lin(ks[5], n_hidden, 1)
    deW1, deb1 = lin(ks[6], n_latent, n_hidden)
    kd1, kd2 = jax.random.split(ks[7])
    deWs, debs = lin(kd1, n_hidden, n_input)
    px_r = jax.random.normal(kd2, (1, n_input), jnp.float32)  # nn.Parameter(randn(n_input))

    return dict(zeW1=zeW1, zeb1=zeb1, ze_bn=bn(n_hidden),
                zeWm=zeWm, zebm=zebm, zeWv=zeWv, zebv=zebv,
                leW1=leW1, leb1=leb1, le_bn=bn(n_hidden),
                leWm=leWm, lebm=lebm, leWv=leWv, lebv=lebv,
                deW1=deW1, deb1=deb1, de_bn=bn(n_hidden),
                deWs=deWs, debs=debs, px_r=px_r)


def prepare_params(raw, bn_eps=1e-3):
    """One-time folding/fusion: BN->Linear fold, shared-LHS head fusion, bf16 weights,
    and precomputation of theta / (theta*log(theta) - lgamma(theta))."""
    def fold(W, b, bnp):
        scale = bnp["gamma"] / jnp.sqrt(bnp["var"] + bn_eps)
        shift = bnp["beta"] - bnp["mean"] * scale
        return W * scale[None, :], b * scale[None, :] + shift[None, :]

    zeW1, zeb1 = fold(raw["zeW1"], raw["zeb1"], raw["ze_bn"])
    leW1, leb1 = fold(raw["leW1"], raw["leb1"], raw["le_bn"])
    deW1, deb1 = fold(raw["deW1"], raw["deb1"], raw["de_bn"])

    W1f = jnp.concatenate([zeW1, leW1], axis=1)       # (G, 2H)
    b1f = jnp.concatenate([zeb1, leb1], axis=1)       # (1, 2H)
    zWmv = jnp.concatenate([raw["zeWm"], raw["zeWv"]], axis=1)   # (H, 2L)
    zbmv = jnp.concatenate([raw["zebm"], raw["zebv"]], axis=1)   # (1, 2L)
    lWmv = jnp.concatenate([raw["leWm"], raw["leWv"]], axis=1)   # (H, 2)
    lbmv = jnp.concatenate([raw["lebm"], raw["lebv"]], axis=1)   # (1, 2)

    theta = jnp.exp(raw["px_r"])                                     # (1, G)
    c_theta = theta * jnp.log(theta + 1e-8) - jax.lax.lgamma(theta)  # param-only NB term

    bf16 = lambda a: a.astype(jnp.bfloat16)
    return dict(W1f=bf16(W1f), b1f=b1f,
                zWmv=bf16(zWmv), zbmv=zbmv,
                lWmv=bf16(lWmv), lbmv=lbmv,
                dW1=bf16(deW1), db1=deb1,
                dWs=bf16(raw["deWs"]), dbs=raw["debs"],
                theta=theta, c_theta=c_theta)


def _round_up(a, m):
    return ((a + m - 1) // m) * m


# -------------------------------- wrapper ------------------------------------
@partial(jax.jit, static_argnames=("batch_tile",))
def vae_attention_forward(x, local_l_mean, local_l_var, prep, noise_key, *, batch_tile=128):
    B, G = x.shape
    H = prep["W1f"].shape[1] // 2
    L = prep["zWmv"].shape[1] // 2

    bm = min(batch_tile, _round_up(B, 8))
    B_pad = _round_up(B, bm)
    n_blocks = B_pad // bm

    kz, kl_ = jax.random.split(noise_key)
    eps_z = jax.random.normal(kz, (B_pad, L), jnp.float32)
    eps_l = jax.random.normal(kl_, (B_pad, 1), jnp.float32)

    def pad_rows(a, fill=0.0):
        a = a.astype(jnp.float32)
        if a.shape[0] == B_pad:
            return a
        pad = jnp.full((B_pad - a.shape[0],) + a.shape[1:], fill, jnp.float32)
        return jnp.concatenate([a, pad], axis=0)

    xp = pad_rows(x)
    llm = pad_rows(local_l_mean)
    llv = pad_rows(local_l_var, fill=1.0)   # keep padded rows finite (sliced off below)

    inputs = (
        xp, llm, llv, eps_z, eps_l,
        prep["W1f"], prep["b1f"], prep["zWmv"], prep["zbmv"],
        prep["lWmv"], prep["lbmv"], prep["dW1"], prep["db1"],
        prep["dWs"], prep["dbs"], prep["theta"], prep["c_theta"],
    )

    def row_spec(width):
        return pl.BlockSpec((bm, width), lambda i: (i, 0))

    def full_spec(arr):
        return pl.BlockSpec(arr.shape, lambda i: (0, 0))

    in_specs = [row_spec(G), row_spec(1), row_spec(1), row_spec(L), row_spec(1)]
    in_specs += [full_spec(inputs[j]) for j in range(5, len(inputs))]
    out_spec = pl.BlockSpec((bm, _OUT_W), lambda i: (i, 0))

    flops = 2 * B_pad * (G * 2 * H + H * 2 * L + 2 * H + L * H + H * G)
    transcendentals = 10 * B_pad * G
    bytes_accessed = sum(int(a.size) * a.dtype.itemsize for a in inputs) + B_pad * _OUT_W * 4
    cost = pl.CostEstimate(flops=int(flops), transcendentals=int(transcendentals),
                           bytes_accessed=int(bytes_accessed))

    out = pl.pallas_call(
        _vae_kernel,
        out_shape=jax.ShapeDtypeStruct((B_pad, _OUT_W), jnp.float32),
        grid_spec=pltpu.PrefetchScalarGridSpec(
            num_scalar_prefetch=0,
            grid=(n_blocks,),
            in_specs=in_specs,
            out_specs=out_spec,
        ),
        compiler_params=pltpu.CompilerParams(
            dimension_semantics=("parallel",),
            vmem_limit_bytes=48 * 1024 * 1024,
        ),
        cost_estimate=cost,
    )(*inputs)

    out = out[:B]
    rec = out[:, 0]
    kl_z = out[:, 1]
    kl_l = out[:, 2]
    # (torch module prints reconst/kl means here; omitted to keep stdout clean)
    return rec + kl_l, kl_z, 0.0


# --------------------------------- main ---------------------------------------
if __name__ == "__main__":
    B, G, H, L = 64, 256, 128, 16  # batch, n_input genes, n_hidden, n_latent
    key = jax.random.PRNGKey(0)
    k_x, k_p, k_noise = jax.random.split(key, 3)

    # count-like nonnegative input, (batch_size, n_input)
    x = jax.random.poisson(k_x, 5.0, (B, G)).astype(jnp.float32)
    local_l_mean = jnp.full((B, 1), math.log(5.0 * G), jnp.float32)
    local_l_var = jnp.full((B, 1), 1.0, jnp.float32)

    raw = init_raw_params(k_p, G, H, L)
    prep = prepare_params(raw)

    loss1, kl_z, zero = vae_attention_forward(x, local_l_mean, local_l_var, prep, k_noise)
    jax.block_until_ready(loss1)
    jax.block_until_ready(kl_z)
    assert loss1.shape == (B,) and kl_z.shape == (B,)
    assert bool(jnp.all(jnp.isfinite(loss1))) and bool(jnp.all(jnp.isfinite(kl_z)))
    print("KERNEL_OK")
</pallas_src>

<mosaic_0001>
module attributes {stable_mosaic.version = 11 : i64} {
  func.func @_vae_kernel(%arg0: i32, %arg1: memref<64x256xf32, #tpu.memory_space<vmem>>, %arg2: memref<64x1xf32, #tpu.memory_space<vmem>>, %arg3: memref<64x1xf32, #tpu.memory_space<vmem>>, %arg4: memref<64x16xf32, #tpu.memory_space<vmem>>, %arg5: memref<64x1xf32, #tpu.memory_space<vmem>>, %arg6: memref<256x256xbf16, #tpu.memory_space<vmem>>, %arg7: memref<1x256xf32, #tpu.memory_space<vmem>>, %arg8: memref<128x32xbf16, #tpu.memory_space<vmem>>, %arg9: memref<1x32xf32, #tpu.memory_space<vmem>>, %arg10: memref<128x2xbf16, #tpu.memory_space<vmem>>, %arg11: memref<1x2xf32, #tpu.memory_space<vmem>>, %arg12: memref<16x128xbf16, #tpu.memory_space<vmem>>, %arg13: memref<1x128xf32, #tpu.memory_space<vmem>>, %arg14: memref<128x256xbf16, #tpu.memory_space<vmem>>, %arg15: memref<1x256xf32, #tpu.memory_space<vmem>>, %arg16: memref<1x256xf32, #tpu.memory_space<vmem>>, %arg17: memref<1x256xf32, #tpu.memory_space<vmem>>, %arg18: memref<64x128xf32, #tpu.memory_space<vmem>>) attributes {dimension_semantics = [#tpu.dimension_semantics<parallel>], iteration_bounds = array<i64: 1>, scalar_prefetch = 0 : i64, scratch_operands = 0 : i64, tpu.core_type = #tpu.core_type<tc>, window_params = [{transform_indices = @transform_0, window_bounds = array<i64: 64, 256>}, {transform_indices = @transform_1, window_bounds = array<i64: 64, 1>}, {transform_indices = @transform_2, window_bounds = array<i64: 64, 1>}, {transform_indices = @transform_3, window_bounds = array<i64: 64, 16>}, {transform_indices = @transform_4, window_bounds = array<i64: 64, 1>}, {pipeline_mode = #tpu.pipeline_mode<synchronous>, transform_indices = @transform_5, window_bounds = array<i64: 256, 256>}, {pipeline_mode = #tpu.pipeline_mode<synchronous>, transform_indices = @transform_6, window_bounds = array<i64: 1, 256>}, {pipeline_mode = #tpu.pipeline_mode<synchronous>, transform_indices = @transform_7, window_bounds = array<i64: 128, 32>}, {pipeline_mode = #tpu.pipeline_mode<synchronous>, transform_indices = @transform_8, window_bounds = array<i64: 1, 32>}, {pipeline_mode = #tpu.pipeline_mode<synchronous>, transform_indices = @transform_9, window_bounds = array<i64: 128, 2>}, {pipeline_mode = #tpu.pipeline_mode<synchronous>, transform_indices = @transform_10, window_bounds = array<i64: 1, 2>}, {pipeline_mode = #tpu.pipeline_mode<synchronous>, transform_indices = @transform_11, window_bounds = array<i64: 16, 128>}, {pipeline_mode = #tpu.pipeline_mode<synchronous>, transform_indices = @transform_12, window_bounds = array<i64: 1, 128>}, {pipeline_mode = #tpu.pipeline_mode<synchronous>, transform_indices = @transform_13, window_bounds = array<i64: 128, 256>}, {pipeline_mode = #tpu.pipeline_mode<synchronous>, transform_indices = @transform_14, window_bounds = array<i64: 1, 256>}, {pipeline_mode = #tpu.pipeline_mode<synchronous>, transform_indices = @transform_15, window_bounds = array<i64: 1, 256>}, {pipeline_mode = #tpu.pipeline_mode<synchronous>, transform_indices = @transform_16, window_bounds = array<i64: 1, 256>}, {transform_indices = @transform_17, window_bounds = array<i64: 64, 128>}]} {
    %c0 = arith.constant 0 : index
    %c0_0 = arith.constant 0 : index
    %0 = vector.load %arg1[%c0, %c0_0] : memref<64x256xf32, #tpu.memory_space<vmem>>, vector<64x256xf32>
    %1 = math.log1p %0 : vector<64x256xf32>
    %2 = arith.truncf %1 : vector<64x256xf32> to vector<64x256xbf16>
    %c0_1 = arith.constant 0 : index
    %c0_2 = arith.constant 0 : index
    %3 = vector.load %arg6[%c0_1, %c0_2] : memref<256x256xbf16, #tpu.memory_space<vmem>>, vector<256x256xbf16>
    %cst = arith.constant dense<0.000000e+00> : vector<64x256xf32>
    %4 = tpu.matmul %2, %3, %cst {dimension_numbers = #tpu.dot_dimension_numbers<[1], [0], [0], [1], [0, 0, 1, 1], [], []>} : vector<64x256xbf16>, vector<256x256xbf16>, vector<64x256xf32> -> vector<64x256xf32>
    %c0_3 = arith.constant 0 : index
    %c0_4 = arith.constant 0 : index
    %5 = vector.load %arg7[%c0_3, %c0_4] : memref<1x256xf32, #tpu.memory_space<vmem>>, vector<1x256xf32>
    %6 = vector.broadcast %5 : vector<1x256xf32> to vector<64x256xf32>
    %7 = arith.addf %4, %6 : vector<64x256xf32>
    %cst_5 = arith.constant 0.000000e+00 : f32
    %8 = vector.broadcast %cst_5 : f32 to vector<64x256xf32>
    %9 = arith.maximumf %7, %8 : vector<64x256xf32>
    %10 = vector.extract_strided_slice %9 {offsets = [0, 0], sizes = [64, 128], strides = [1, 1]} : vector<64x256xf32> to vector<64x128xf32>
    %11 = arith.truncf %10 : vector<64x128xf32> to vector<64x128xbf16>
    %12 = vector.extract_strided_slice %9 {offsets = [0, 128], sizes = [64, 128], strides = [1, 1]} : vector<64x256xf32> to vector<64x128xf32>
    %13 = arith.truncf %12 : vector<64x128xf32> to vector<64x128xbf16>
    %c0_6 = arith.constant 0 : index
    %c0_7 = arith.constant 0 : index
    %14 = vector.load %arg8[%c0_6, %c0_7] : memref<128x32xbf16, #tpu.memory_space<vmem>>, vector<128x32xbf16>
    %cst_8 = arith.constant dense<0.000000e+00> : vector<64x32xf32>
    %15 = tpu.matmul %11, %14, %cst_8 {dimension_numbers = #tpu.dot_dimension_numbers<[1], [0], [0], [1], [0, 0, 1, 1], [], []>} : vector<64x128xbf16>, vector<128x32xbf16>, vector<64x32xf32> -> vector<64x32xf32>
    %c0_9 = arith.constant 0 : index
    %c0_10 = arith.constant 0 : index
    %16 = vector.load %arg9[%c0_9, %c0_10] : memref<1x32xf32, #tpu.memory_space<vmem>>, vector<1x32xf32>
    %17 = vector.broadcast %16 : vector<1x32xf32> to vector<64x32xf32>
    %18 = arith.addf %15, %17 : vector<64x32xf32>
    %19 = vector.extract_strided_slice %18 {offsets = [0, 0], sizes = [64, 16], strides = [1, 1]} : vector<64x32xf32> to vector<64x16xf32>
    %20 = vector.extract_strided_slice %18 {offsets = [0, 16], sizes = [64, 16], strides = [1, 1]} : vector<64x32xf32> to vector<64x16xf32>
    %21 = math.exp %20 : vector<64x16xf32>
    %cst_11 = arith.constant 9.99999974E-5 : f32
    %22 = vector.broadcast %cst_11 : f32 to vector<64x16xf32>
    %23 = arith.addf %21, %22 : vector<64x16xf32>
    %24 = math.sqrt %23 : vector<64x16xf32>
    %c0_12 = arith.constant 0 : index
    %c0_13 = arith.constant 0 : index
    %25 = vector.load %arg4[%c0_12, %c0_13] : memref<64x16xf32, #tpu.memory_space<vmem>>, vector<64x16xf32>
    %26 = arith.mulf %24, %25 : vector<64x16xf32>
    %27 = arith.addf %19, %26 : vector<64x16xf32>
    %c0_14 = arith.constant 0 : index
    %c0_15 = arith.constant 0 : index
    %28 = vector.load %arg10[%c0_14, %c0_15] : memref<128x2xbf16, #tpu.memory_space<vmem>>, vector<128x2xbf16>
    %cst_16 = arith.constant dense<0.000000e+00> : vector<64x2xf32>
    %29 = tpu.matmul %13, %28, %cst_16 {dimension_numbers = #tpu.dot_dimension_numbers<[1], [0], [0], [1], [0, 0, 1, 1], [], []>} : vector<64x128xbf16>, vector<128x2xbf16>, vector<64x2xf32> -> vector<64x2xf32>
    %c0_17 = arith.constant 0 : index
    %c0_18 = arith.constant 0 : index
    %30 = vector.load %arg11[%c0_17, %c0_18] : memref<1x2xf32, #tpu.memory_space<vmem>>, vector<1x2xf32>
    %31 = vector.broadcast %30 : vector<1x2xf32> to vector<64x2xf32>
    %32 = arith.addf %29, %31 : vector<64x2xf32>
    %33 = vector.extract_strided_slice %32 {offsets = [0, 0], sizes = [64, 1], strides = [1, 1]} : vector<64x2xf32> to vector<64x1xf32>
    %34 = vector.extract_strided_slice %32 {offsets = [0, 1], sizes = [64, 1], strides = [1, 1]} : vector<64x2xf32> to vector<64x1xf32>
    %35 = math.exp %34 : vector<64x1xf32>
    %cst_19 = arith.constant 9.99999974E-5 : f32
    %36 = vector.broadcast %cst_19 : f32 to vector<64x1xf32>
    %37 = arith.addf %35, %36 : vector<64x1xf32>
    %38 = math.sqrt %37 : vector<64x1xf32>
    %c0_20 = arith.constant 0 : index
    %c0_21 = arith.constant 0 : index
    %39 = vector.load %arg5[%c0_20, %c0_21] : memref<64x1xf32, #tpu.memory_space<vmem>>, vector<64x1xf32>
    %40 = arith.mulf %38, %39 : vector<64x1xf32>
    %41 = arith.addf %33, %40 : vector<64x1xf32>
    %42 = arith.truncf %27 : vector<64x16xf32> to vector<64x16xbf16>
    %c0_22 = arith.constant 0 : index
    %c0_23 = arith.constant 0 : index
    %43 = vector.load %arg12[%c0_22, %c0_23] : memref<16x128xbf16, #tpu.memory_space<vmem>>, vector<16x128xbf16>
    %cst_24 = arith.constant dense<0.000000e+00> : vector<64x128xf32>
    %44 = tpu.matmul %42, %43, %cst_24 {dimension_numbers = #tpu.dot_dimension_numbers<[1], [0], [0], [1], [0, 0, 1, 1], [], []>} : vector<64x16xbf16>, vector<16x128xbf16>, vector<64x128xf32> -> vector<64x128xf32>
    %c0_25 = arith.constant 0 : index
    %c0_26 = arith.constant 0 : index
    %45 = vector.load %arg13[%c0_25, %c0_26] : memref<1x128xf32, #tpu.memory_space<vmem>>, vector<1x128xf32>
    %46 = vector.broadcast %45 : vector<1x128xf32> to vector<64x128xf32>
    %47 = arith.addf %44, %46 : vector<64x128xf32>
    %cst_27 = arith.constant 0.000000e+00 : f32
    %48 = vector.broadcast %cst_27 : f32 to vector<64x128xf32>
    %49 = arith.maximumf %47, %48 : vector<64x128xf32>
    %50 = arith.truncf %49 : vector<64x128xf32> to vector<64x128xbf16>
    %c0_28 = arith.constant 0 : index
    %c0_29 = arith.constant 0 : index
    %51 = vector.load %arg14[%c0_28, %c0_29] : memref<128x256xbf16, #tpu.memory_space<vmem>>, vector<128x256xbf16>
    %cst_30 = arith.constant dense<0.000000e+00> : vector<64x256xf32>
    %52 = tpu.matmul %50, %51, %cst_30 {dimension_numbers = #tpu.dot_dimension_numbers<[1], [0], [0], [1], [0, 0, 1, 1], [], []>} : vector<64x128xbf16>, vector<128x256xbf16>, vector<64x256xf32> -> vector<64x256xf32>
    %c0_31 = arith.constant 0 : index
    %c0_32 = arith.constant 0 : index
    %53 = vector.load %arg15[%c0_31, %c0_32] : memref<1x256xf32, #tpu.memory_space<vmem>>, vector<1x256xf32>
    %54 = vector.broadcast %53 : vector<1x256xf32> to vector<64x256xf32>
    %55 = arith.addf %52, %54 : vector<64x256xf32>
    %cst_33 = arith.constant dense<0xFF800000> : vector<64xf32>
    %56 = vector.multi_reduction <maximumf>, %55, %cst_33 [1] : vector<64x256xf32> to vector<64xf32>
    %57 = vector.shape_cast %56 : vector<64xf32> to vector<64x1xf32>
    %58 = vector.broadcast %57 : vector<64x1xf32> to vector<64x256xf32>
    %59 = arith.subf %55, %58 : vector<64x256xf32>
    %60 = math.exp %59 : vector<64x256xf32>
    %cst_34 = arith.constant dense<0.000000e+00> : vector<64xf32>
    %61 = vector.multi_reduction <add>, %60, %cst_34 [1] : vector<64x256xf32> to vector<64xf32>
    %62 = vector.shape_cast %61 : vector<64xf32> to vector<64x1xf32>
    %63 = tpu.reciprocal %62 : vector<64x1xf32> -> vector<64x1xf32>
    %64 = vector.broadcast %63 : vector<64x1xf32> to vector<64x256xf32>
    %65 = arith.mulf %60, %64 : vector<64x256xf32>
    %66 = math.exp %41 : vector<64x1xf32>
    %67 = vector.broadcast %66 : vector<64x1xf32> to vector<64x256xf32>
    %68 = arith.mulf %67, %65 : vector<64x256xf32>
    %c0_35 = arith.constant 0 : index
    %c0_36 = arith.constant 0 : index
    %69 = vector.load %arg16[%c0_35, %c0_36] : memref<1x256xf32, #tpu.memory_space<vmem>>, vector<1x256xf32>
    %70 = vector.broadcast %69 : vector<1x256xf32> to vector<64x256xf32>
    %71 = arith.addf %70, %68 : vector<64x256xf32>
    %cst_37 = arith.constant 9.99999993E-9 : f32
    %72 = vector.broadcast %cst_37 : f32 to vector<64x256xf32>
    %73 = arith.addf %71, %72 : vector<64x256xf32>
    %74 = math.log %73 : vector<64x256xf32>
    %c0_38 = arith.constant 0 : index
    %c0_39 = arith.constant 0 : index
    %75 = vector.load %arg17[%c0_38, %c0_39] : memref<1x256xf32, #tpu.memory_space<vmem>>, vector<1x256xf32>
    %76 = vector.broadcast %69 : vector<1x256xf32> to vector<64x256xf32>
    %77 = arith.addf %76, %0 : vector<64x256xf32>
    %78 = arith.mulf %77, %74 : vector<64x256xf32>
    %79 = vector.broadcast %75 : vector<1x256xf32> to vector<64x256xf32>
    %80 = arith.subf %79, %78 : vector<64x256xf32>
    %cst_40 = arith.constant 9.99999993E-9 : f32
    %81 = vector.broadcast %cst_40 : f32 to vector<64x256xf32>
    %82 = arith.addf %68, %81 : vector<64x256xf32>
    %83 = math.log %82 : vector<64x256xf32>
    %84 = arith.mulf %0, %83 : vector<64x256xf32>
    %85 = arith.addf %80, %84 : vector<64x256xf32>
    %86 = vector.broadcast %69 : vector<1x256xf32> to vector<64x256xf32>
    %87 = arith.addf %0, %86 : vector<64x256xf32>
    %cst_41 = arith.constant 1.000000e+00 : f32
    %88 = vector.broadcast %cst_41 : f32 to vector<64x256xf32>
    %89 = arith.subf %87, %88 : vector<64x256xf32>
    %cst_42 = arith.constant 1.000000e+00 : f32
    %90 = vector.broadcast %cst_42 : f32 to vector<64x256xf32>
    %cst_43 = arith.constant 1.000000e+00 : f32
    %91 = vector.broadcast %cst_43 : f32 to vector<64x256xf32>
    %cst_44 = arith.constant 1.000000e+00 : f32
    %92 = vector.broadcast %cst_44 : f32 to vector<64x256xf32>
    %93 = arith.addf %89, %92 : vector<64x256xf32>
    %94 = arith.mulf %90, %93 : vector<64x256xf32>
    %cst_45 = arith.constant 676.520386 : f32
    %95 = vector.broadcast %cst_45 : f32 to vector<64x256xf32>
    %96 = arith.mulf %95, %91 : vector<64x256xf32>
    %97 = arith.addf %94, %96 : vector<64x256xf32>
    %98 = arith.mulf %91, %93 : vector<64x256xf32>
    %cst_46 = arith.constant 2.000000e+00 : f32
    %99 = vector.broadcast %cst_46 : f32 to vector<64x256xf32>
    %100 = arith.addf %89, %99 : vector<64x256xf32>
    %101 = arith.mulf %97, %100 : vector<64x256xf32>
    %cst_47 = arith.constant -1259.13916 : f32
    %102 = vector.broadcast %cst_47 : f32 to vector<64x256xf32>
    %103 = arith.mulf %102, %98 : vector<64x256xf32>
    %104 = arith.addf %101, %103 : vector<64x256xf32>
    %105 = arith.mulf %98, %100 : vector<64x256xf32>
    %cst_48 = arith.constant 3.000000e+00 : f32
    %106 = vector.broadcast %cst_48 : f32 to vector<64x256xf32>
    %107 = arith.addf %89, %106 : vector<64x256xf32>
    %108 = arith.mulf %104, %107 : vector<64x256xf32>
    %cst_49 = arith.constant 771.323425 : f32
    %109 = vector.broadcast %cst_49 : f32 to vector<64x256xf32>
    %110 = arith.mulf %109, %105 : vector<64x256xf32>
    %111 = arith.addf %108, %110 : vector<64x256xf32>
    %112 = arith.mulf %105, %107 : vector<64x256xf32>
    %cst_50 = arith.constant 4.000000e+00 : f32
    %113 = vector.broadcast %cst_50 : f32 to vector<64x256xf32>
    %114 = arith.addf %89, %113 : vector<64x256xf32>
    %115 = arith.mulf %111, %114 : vector<64x256xf32>
    %cst_51 = arith.constant -176.615036 : f32
    %116 = vector.broadcast %cst_51 : f32 to vector<64x256xf32>
    %117 = arith.mulf %116, %112 : vector<64x256xf32>
    %118 = arith.addf %115, %117 : vector<64x256xf32>
    %119 = arith.mulf %112, %114 : vector<64x256xf32>
    %cst_52 = arith.constant 5.000000e+00 : f32
    %120 = vector.broadcast %cst_52 : f32 to vector<64x256xf32>
    %121 = arith.addf %89, %120 : vector<64x256xf32>
    %122 = arith.mulf %118, %121 : vector<64x256xf32>
    %cst_53 = arith.constant 12.5073433 : f32
    %123 = vector.broadcast %cst_53 : f32 to vector<64x256xf32>
    %124 = arith.mulf %123, %119 : vector<64x256xf32>
    %125 = arith.addf %122, %124 : vector<64x256xf32>
    %126 = arith.mulf %119, %121 : vector<64x256xf32>
    %cst_54 = arith.constant 6.000000e+00 : f32
    %127 = vector.broadcast %cst_54 : f32 to vector<64x256xf32>
    %128 = arith.addf %89, %127 : vector<64x256xf32>
    %129 = arith.mulf %125, %128 : vector<64x256xf32>
    %cst_55 = arith.constant -0.138571098 : f32
    %130 = vector.broadcast %cst_55 : f32 to vector<64x256xf32>
    %131 = arith.mulf %130, %126 : vector<64x256xf32>
    %132 = arith.addf %129, %131 : vector<64x256xf32>
    %133 = arith.mulf %126, %128 : vector<64x256xf32>
    %cst_56 = arith.constant 7.000000e+00 : f32
    %134 = vector.broadcast %cst_56 : f32 to vector<64x256xf32>
    %135 = arith.addf %89, %134 : vector<64x256xf32>
    %136 = arith.mulf %132, %135 : vector<64x256xf32>
    %cst_57 = arith.constant 9.98436917E-6 : f32
    %137 = vector.broadcast %cst_57 : f32 to vector<64x256xf32>
    %138 = arith.mulf %137, %133 : vector<64x256xf32>
    %139 = arith.addf %136, %138 : vector<64x256xf32>
    %140 = arith.mulf %133, %135 : vector<64x256xf32>
    %cst_58 = arith.constant 8.000000e+00 : f32
    %141 = vector.broadcast %cst_58 : f32 to vector<64x256xf32>
    %142 = arith.addf %89, %141 : vector<64x256xf32>
    %143 = arith.mulf %139, %142 : vector<64x256xf32>
    %cst_59 = arith.constant 1.50563267E-7 : f32
    %144 = vector.broadcast %cst_59 : f32 to vector<64x256xf32>
    %145 = arith.mulf %144, %140 : vector<64x256xf32>
    %146 = arith.addf %143, %145 : vector<64x256xf32>
    %147 = arith.mulf %140, %142 : vector<64x256xf32>
    %148 = arith.divf %146, %147 : vector<64x256xf32>
    %cst_60 = arith.constant 7.000000e+00 : f32
    %149 = vector.broadcast %cst_60 : f32 to vector<64x256xf32>
    %150 = arith.addf %89, %149 : vector<64x256xf32>
    %cst_61 = arith.constant 5.000000e-01 : f32
    %151 = vector.broadcast %cst_61 : f32 to vector<64x256xf32>
    %152 = arith.addf %150, %151 : vector<64x256xf32>
    %cst_62 = arith.constant 5.000000e-01 : f32
    %153 = vector.broadcast %cst_62 : f32 to vector<64x256xf32>
    %154 = arith.addf %89, %153 : vector<64x256xf32>
    %155 = math.log %152 : vector<64x256xf32>
    %156 = arith.mulf %154, %155 : vector<64x256xf32>
    %cst_63 = arith.constant 0.918938517 : f32
    %157 = vector.broadcast %cst_63 : f32 to vector<64x256xf32>
    %158 = arith.addf %157, %156 : vector<64x256xf32>
    %159 = arith.subf %158, %152 : vector<64x256xf32>
    %160 = math.log %148 : vector<64x256xf32>
    %161 = arith.addf %159, %160 : vector<64x256xf32>
    %162 = arith.addf %85, %161 : vector<64x256xf32>
    %cst_64 = arith.constant 1.000000e+00 : f32
    %163 = vector.broadcast %cst_64 : f32 to vector<64x256xf32>
    %164 = arith.addf %0, %163 : vector<64x256xf32>
    %cst_65 = arith.constant 1.000000e+00 : f32
    %165 = vector.broadcast %cst_65 : f32 to vector<64x256xf32>
    %166 = arith.subf %164, %165 : vector<64x256xf32>
    %cst_66 = arith.constant 1.000000e+00 : f32
    %167 = vector.broadcast %cst_66 : f32 to vector<64x256xf32>
    %cst_67 = arith.constant 1.000000e+00 : f32
    %168 = vector.broadcast %cst_67 : f32 to vector<64x256xf32>
    %cst_68 = arith.constant 1.000000e+00 : f32
    %169 = vector.broadcast %cst_68 : f32 to vector<64x256xf32>
    %170 = arith.addf %166, %169 : vector<64x256xf32>
    %171 = arith.mulf %167, %170 : vector<64x256xf32>
    %cst_69 = arith.constant 676.520386 : f32
    %172 = vector.broadcast %cst_69 : f32 to vector<64x256xf32>
    %173 = arith.mulf %172, %168 : vector<64x256xf32>
    %174 = arith.addf %171, %173 : vector<64x256xf32>
    %175 = arith.mulf %168, %170 : vector<64x256xf32>
    %cst_70 = arith.constant 2.000000e+00 : f32
    %176 = vector.broadcast %cst_70 : f32 to vector<64x256xf32>
    %177 = arith.addf %166, %176 : vector<64x256xf32>
    %178 = arith.mulf %174, %177 : vector<64x256xf32>
    %cst_71 = arith.constant -1259.13916 : f32
    %179 = vector.broadcast %cst_71 : f32 to vector<64x256xf32>
    %180 = arith.mulf %179, %175 : vector<64x256xf32>
    %181 = arith.addf %178, %180 : vector<64x256xf32>
    %182 = arith.mulf %175, %177 : vector<64x256xf32>
    %cst_72 = arith.constant 3.000000e+00 : f32
    %183 = vector.broadcast %cst_72 : f32 to vector<64x256xf32>
    %184 = arith.addf %166, %183 : vector<64x256xf32>
    %185 = arith.mulf %181, %184 : vector<64x256xf32>
    %cst_73 = arith.constant 771.323425 : f32
    %186 = vector.broadcast %cst_73 : f32 to vector<64x256xf32>
    %187 = arith.mulf %186, %182 : vector<64x256xf32>
    %188 = arith.addf %185, %187 : vector<64x256xf32>
    %189 = arith.mulf %182, %184 : vector<64x256xf32>
    %cst_74 = arith.constant 4.000000e+00 : f32
    %190 = vector.broadcast %cst_74 : f32 to vector<64x256xf32>
    %191 = arith.addf %166, %190 : vector<64x256xf32>
    %192 = arith.mulf %188, %191 : vector<64x256xf32>
    %cst_75 = arith.constant -176.615036 : f32
    %193 = vector.broadcast %cst_75 : f32 to vector<64x256xf32>
    %194 = arith.mulf %193, %189 : vector<64x256xf32>
    %195 = arith.addf %192, %194 : vector<64x256xf32>
    %196 = arith.mulf %189, %191 : vector<64x256xf32>
    %cst_76 = arith.constant 5.000000e+00 : f32
    %197 = vector.broadcast %cst_76 : f32 to vector<64x256xf32>
    %198 = arith.addf %166, %197 : vector<64x256xf32>
    %199 = arith.mulf %195, %198 : vector<64x256xf32>
    %cst_77 = arith.constant 12.5073433 : f32
    %200 = vector.broadcast %cst_77 : f32 to vector<64x256xf32>
    %201 = arith.mulf %200, %196 : vector<64x256xf32>
    %202 = arith.addf %199, %201 : vector<64x256xf32>
    %203 = arith.mulf %196, %198 : vector<64x256xf32>
    %cst_78 = arith.constant 6.000000e+00 : f32
    %204 = vector.broadcast %cst_78 : f32 to vector<64x256xf32>
    %205 = arith.addf %166, %204 : vector<64x256xf32>
    %206 = arith.mulf %202, %205 : vector<64x256xf32>
    %cst_79 = arith.constant -0.138571098 : f32
    %207 = vector.broadcast %cst_79 : f32 to vector<64x256xf32>
    %208 = arith.mulf %207, %203 : vector<64x256xf32>
    %209 = arith.addf %206, %208 : vector<64x256xf32>
    %210 = arith.mulf %203, %205 : vector<64x256xf32>
    %cst_80 = arith.constant 7.000000e+00 : f32
    %211 = vector.broadcast %cst_80 : f32 to vector<64x256xf32>
    %212 = arith.addf %166, %211 : vector<64x256xf32>
    %213 = arith.mulf %209, %212 : vector<64x256xf32>
    %cst_81 = arith.constant 9.98436917E-6 : f32
    %214 = vector.broadcast %cst_81 : f32 to vector<64x256xf32>
    %215 = arith.mulf %214, %210 : vector<64x256xf32>
    %216 = arith.addf %213, %215 : vector<64x256xf32>
    %217 = arith.mulf %210, %212 : vector<64x256xf32>
    %cst_82 = arith.constant 8.000000e+00 : f32
    %218 = vector.broadcast %cst_82 : f32 to vector<64x256xf32>
    %219 = arith.addf %166, %218 : vector<64x256xf32>
    %220 = arith.mulf %216, %219 : vector<64x256xf32>
    %cst_83 = arith.constant 1.50563267E-7 : f32
    %221 = vector.broadcast %cst_83 : f32 to vector<64x256xf32>
    %222 = arith.mulf %221, %217 : vector<64x256xf32>
    %223 = arith.addf %220, %222 : vector<64x256xf32>
    %224 = arith.mulf %217, %219 : vector<64x256xf32>
    %225 = arith.divf %223, %224 : vector<64x256xf32>
    %cst_84 = arith.constant 7.000000e+00 : f32
    %226 = vector.broadcast %cst_84 : f32 to vector<64x256xf32>
    %227 = arith.addf %166, %226 : vector<64x256xf32>
    %cst_85 = arith.constant 5.000000e-01 : f32
    %228 = vector.broadcast %cst_85 : f32 to vector<64x256xf32>
    %229 = arith.addf %227, %228 : vector<64x256xf32>
    %cst_86 = arith.constant 5.000000e-01 : f32
    %230 = vector.broadcast %cst_86 : f32 to vector<64x256xf32>
    %231 = arith.addf %166, %230 : vector<64x256xf32>
    %232 = math.log %229 : vector<64x256xf32>
    %233 = arith.mulf %231, %232 : vector<64x256xf32>
    %cst_87 = arith.constant 0.918938517 : f32
    %234 = vector.broadcast %cst_87 : f32 to vector<64x256xf32>
    %235 = arith.addf %234, %233 : vector<64x256xf32>
    %236 = arith.subf %235, %229 : vector<64x256xf32>
    %237 = math.log %225 : vector<64x256xf32>
    %238 = arith.addf %236, %237 : vector<64x256xf32>
    %239 = arith.subf %162, %238 : vector<64x256xf32>
    %240 = math.log1p %68 : vector<64x256xf32>
    %241 = arith.subf %1, %240 : vector<64x256xf32>
    %242 = arith.mulf %241, %241 : vector<64x256xf32>
    %cst_88 = arith.constant dense<0.000000e+00> : vector<64xf32>
    %243 = vector.multi_reduction <add>, %239, %cst_88 [1] : vector<64x256xf32> to vector<64xf32>
    %244 = vector.shape_cast %243 : vector<64xf32> to vector<64x1xf32>
    %cst_89 = arith.constant 0.000000e+00 : f32
    %245 = vector.broadcast %cst_89 : f32 to vector<64x1xf32>
    %246 = arith.subf %245, %244 : vector<64x1xf32>
    %cst_90 = arith.constant dense<0.000000e+00> : vector<64xf32>
    %247 = vector.multi_reduction <add>, %242, %cst_90 [1] : vector<64x256xf32> to vector<64xf32>
    %248 = vector.shape_cast %247 : vector<64xf32> to vector<64x1xf32>
    %cst_91 = arith.constant 5.000000e-01 : f32
    %249 = vector.broadcast %cst_91 : f32 to vector<64x1xf32>
    %250 = arith.mulf %249, %248 : vector<64x1xf32>
    %251 = arith.addf %246, %250 : vector<64x1xf32>
    %252 = arith.mulf %19, %19 : vector<64x16xf32>
    %253 = arith.addf %23, %252 : vector<64x16xf32>
    %cst_92 = arith.constant 1.000000e+00 : f32
    %254 = vector.broadcast %cst_92 : f32 to vector<64x16xf32>
    %255 = arith.subf %253, %254 : vector<64x16xf32>
    %256 = math.log %23 : vector<64x16xf32>
    %257 = arith.subf %255, %256 : vector<64x16xf32>
    %cst_93 = arith.constant 5.000000e-01 : f32
    %258 = vector.broadcast %cst_93 : f32 to vector<64x16xf32>
    %259 = arith.mulf %258, %257 : vector<64x16xf32>
    %cst_94 = arith.constant dense<0.000000e+00> : vector<64xf32>
    %260 = vector.multi_reduction <add>, %259, %cst_94 [1] : vector<64x16xf32> to vector<64xf32>
    %261 = vector.shape_cast %260 : vector<64xf32> to vector<64x1xf32>
    %c0_95 = arith.constant 0 : index
    %c0_96 = arith.constant 0 : index
    %262 = vector.load %arg2[%c0_95, %c0_96] : memref<64x1xf32, #tpu.memory_space<vmem>>, vector<64x1xf32>
    %c0_97 = arith.constant 0 : index
    %c0_98 = arith.constant 0 : index
    %263 = vector.load %arg3[%c0_97, %c0_98] : memref<64x1xf32, #tpu.memory_space<vmem>>, vector<64x1xf32>
    %cst_99 = arith.constant 1.000000e+00 : f32
    %264 = vector.broadcast %cst_99 : f32 to vector<64x1xf32>
    %265 = arith.divf %264, %263 : vector<64x1xf32>
    %266 = arith.mulf %37, %265 : vector<64x1xf32>
    %267 = arith.subf %33, %262 : vector<64x1xf32>
    %268 = arith.mulf %267, %267 : vector<64x1xf32>
    %269 = arith.mulf %268, %265 : vector<64x1xf32>
    %270 = arith.addf %266, %269 : vector<64x1xf32>
    %cst_100 = arith.constant 1.000000e+00 : f32
    %271 = vector.broadcast %cst_100 : f32 to vector<64x1xf32>
    %272 = arith.subf %270, %271 : vector<64x1xf32>
    %273 = math.log %266 : vector<64x1xf32>
    %274 = arith.subf %272, %273 : vector<64x1xf32>
    %cst_101 = arith.constant 5.000000e-01 : f32
    %275 = vector.broadcast %cst_101 : f32 to vector<64x1xf32>
    %276 = arith.mulf %275, %274 : vector<64x1xf32>
    %277 = tpu.iota {dimensions = array<i32: 1>} : vector<64x128xi32>
    %c0_i32 = arith.constant 0 : i32
    %278 = vector.broadcast %c0_i32 : i32 to vector<64x128xi32>
    %279 = arith.cmpi eq, %277, %278 : vector<64x128xi32>
    %cst_102 = arith.constant 0.000000e+00 : f32
    %280 = vector.shape_cast %251 : vector<64x1xf32> to vector<64x1xf32>
    %281 = vector.broadcast %280 : vector<64x1xf32> to vector<64x128xf32>
    %282 = vector.broadcast %cst_102 : f32 to vector<64x128xf32>
    %283 = arith.select %279, %281, %282 : vector<64x128xi1>, vector<64x128xf32>
    %c1_i32 = arith.constant 1 : i32
    %284 = vector.broadcast %c1_i32 : i32 to vector<64x128xi32>
    %285 = arith.cmpi eq, %277, %284 : vector<64x128xi32>
    %cst_103 = arith.constant 0.000000e+00 : f32
    %286 = vector.shape_cast %261 : vector<64x1xf32> to vector<64x1xf32>
    %287 = vector.broadcast %286 : vector<64x1xf32> to vector<64x128xf32>
    %288 = vector.broadcast %cst_103 : f32 to vector<64x128xf32>
    %289 = arith.select %285, %287, %288 : vector<64x128xi1>, vector<64x128xf32>
    %290 = arith.addf %283, %289 : vector<64x128xf32>
    %c2_i32 = arith.constant 2 : i32
    %291 = vector.broadcast %c2_i32 : i32 to vector<64x128xi32>
    %292 = arith.cmpi eq, %277, %291 : vector<64x128xi32>
    %cst_104 = arith.constant 0.000000e+00 : f32
    %293 = vector.shape_cast %276 : vector<64x1xf32> to vector<64x1xf32>
    %294 = vector.broadcast %293 : vector<64x1xf32> to vector<64x128xf32>
    %295 = vector.broadcast %cst_104 : f32 to vector<64x128xf32>
    %296 = arith.select %292, %294, %295 : vector<64x128xi1>, vector<64x128xf32>
    %297 = arith.addf %290, %296 : vector<64x128xf32>
    %c0_105 = arith.constant 0 : index
    %c0_106 = arith.constant 0 : index
    %298 = vector.load %arg18[%c0_105, %c0_106] : memref<64x128xf32, #tpu.memory_space<vmem>>, vector<64x128xf32>
    tpu.vector_store %arg18[%c0_105, %c0_106], %297 {strides = array<i32>} : memref<64x128xf32, #tpu.memory_space<vmem>>, vector<64x128xf32>,
    return
  }
  func.func @transform_0(%arg0: i32) -> (i32, i32) {
    %c0_i32 = arith.constant 0 : i32
    %c0_i32_0 = arith.constant 0 : i32
    return %arg0, %c0_i32 : i32, i32
  }
  func.func @transform_1(%arg0: i32) -> (i32, i32) {
    %c0_i32 = arith.constant 0 : i32
    %c0_i32_0 = arith.constant 0 : i32
    return %arg0, %c0_i32 : i32, i32
  }
  func.func @transform_2(%arg0: i32) -> (i32, i32) {
    %c0_i32 = arith.constant 0 : i32
    %c0_i32_0 = arith.constant 0 : i32
    return %arg0, %c0_i32 : i32, i32
  }
  func.func @transform_3(%arg0: i32) -> (i32, i32) {
    %c0_i32 = arith.constant 0 : i32
    %c0_i32_0 = arith.constant 0 : i32
    return %arg0, %c0_i32 : i32, i32
  }
  func.func @transform_4(%arg0: i32) -> (i32, i32) {
    %c0_i32 = arith.constant 0 : i32
    %c0_i32_0 = arith.constant 0 : i32
    return %arg0, %c0_i32 : i32, i32
  }
  func.func @transform_5(%arg0: i32) -> (i32, i32) {
    %c0_i32 = arith.constant 0 : i32
    %c0_i32_0 = arith.constant 0 : i32
    %c0_i32_1 = arith.constant 0 : i32
    return %c0_i32, %c0_i32_0 : i32, i32
  }
  func.func @transform_6(%arg0: i32) -> (i32, i32) {
    %c0_i32 = arith.constant 0 : i32
    %c0_i32_0 = arith.constant 0 : i32
    %c0_i32_1 = arith.constant 0 : i32
    return %c0_i32, %c0_i32_0 : i32, i32
  }
  func.func @transform_7(%arg0: i32) -> (i32, i32) {
    %c0_i32 = arith.constant 0 : i32
    %c0_i32_0 = arith.constant 0 : i32
    %c0_i32_1 = arith.constant 0 : i32
    return %c0_i32, %c0_i32_0 : i32, i32
  }
  func.func @transform_8(%arg0: i32) -> (i32, i32) {
    %c0_i32 = arith.constant 0 : i32
    %c0_i32_0 = arith.constant 0 : i32
    %c0_i32_1 = arith.constant 0 : i32
    return %c0_i32, %c0_i32_0 : i32, i32
  }
  func.func @transform_9(%arg0: i32) -> (i32, i32) {
    %c0_i32 = arith.constant 0 : i32
    %c0_i32_0 = arith.constant 0 : i32
    %c0_i32_1 = arith.constant 0 : i32
    return %c0_i32, %c0_i32_0 : i32, i32
  }
  func.func @transform_10(%arg0: i32) -> (i32, i32) {
    %c0_i32 = arith.constant 0 : i32
    %c0_i32_0 = arith.constant 0 : i32
    %c0_i32_1 = arith.constant 0 : i32
    return %c0_i32, %c0_i32_0 : i32, i32
  }
  func.func @transform_11(%arg0: i32) -> (i32, i32) {
    %c0_i32 = arith.constant 0 : i32
    %c0_i32_0 = arith.constant 0 : i32
    %c0_i32_1 = arith.constant 0 : i32
    return %c0_i32, %c0_i32_0 : i32, i32
  }
  func.func @transform_12(%arg0: i32) -> (i32, i32) {
    %c0_i32 = arith.constant 0 : i32
    %c0_i32_0 = arith.constant 0 : i32
    %c0_i32_1 = arith.constant 0 : i32
    return %c0_i32, %c0_i32_0 : i32, i32
  }
  func.func @transform_13(%arg0: i32) -> (i32, i32) {
    %c0_i32 = arith.constant 0 : i32
    %c0_i32_0 = arith.constant 0 : i32
    %c0_i32_1 = arith.constant 0 : i32
    return %c0_i32, %c0_i32_0 : i32, i32
  }
  func.func @transform_14(%arg0: i32) -> (i32, i32) {
    %c0_i32 = arith.constant 0 : i32
    %c0_i32_0 = arith.constant 0 : i32
    %c0_i32_1 = arith.constant 0 : i32
    return %c0_i32, %c0_i32_0 : i32, i32
  }
  func.func @transform_15(%arg0: i32) -> (i32, i32) {
    %c0_i32 = arith.constant 0 : i32
    %c0_i32_0 = arith.constant 0 : i32
    %c0_i32_1 = arith.constant 0 : i32
    return %c0_i32, %c0_i32_0 : i32, i32
  }
  func.func @transform_16(%arg0: i32) -> (i32, i32) {
    %c0_i32 = arith.constant 0 : i32
    %c0_i32_0 = arith.constant 0 : i32
    %c0_i32_1 = arith.constant 0 : i32
    return %c0_i32, %c0_i32_0 : i32, i32
  }
  func.func @transform_17(%arg0: i32) -> (i32, i32) {
    %c0_i32 = arith.constant 0 : i32
    %c0_i32_0 = arith.constant 0 : i32
    return %arg0, %c0_i32 : i32, i32
  }
}

</mosaic_0001>

<bundles_post_ra>
// kernel: vae_attention_forward.1
= control target key start
LH: loop header
LB: loop body
LE: loop exit
PB: predicated region body
PF: predicated region fallthrough
CT: control target
= control target key end

     0   :  { %s7946_s0 = inlined_call_operand.vmem [shape: f32[64,256], index: 0, kind: input, shape index: {}]   ;;  %s7947_s1 = inlined_call_operand.vmem [shape: f32[64,1], index: 1, kind: input, shape index: {}]   ;;  %s7948_s2 = inlined_call_operand.vmem [shape: f32[64,1], index: 2, kind: input, shape index: {}]   ;;  %s7949_s3 = inlined_call_operand.vmem [shape: f32[64,16], index: 3, kind: input, shape index: {}]   ;;  %s7950_s4 = inlined_call_operand.vmem [shape: f32[64,1], index: 4, kind: input, shape index: {}]   ;;  %s7951_s5 = inlined_call_operand.vmem [shape: bf16[256,256], index: 5, kind: input, shape index: {}]   ;;  %s7952_s6 = inlined_call_operand.vmem [shape: f32[1,256], index: 6, kind: input, shape index: {}]   ;;  %s7953_s7 = inlined_call_operand.vmem [shape: bf16[128,32], index: 7, kind: input, shape index: {}]   ;;  %s7954_s8 = inlined_call_operand.vmem [shape: f32[1,32], index: 8, kind: input, shape index: {}]   ;;  %s7955_s9 = inlined_call_operand.vmem [shape: bf16[128,2], index: 9, kind: input, shape index: {}]   ;;  %s7956_s10 = inlined_call_operand.vmem [shape: f32[1,2], index: 10, kind: input, shape index: {}]   ;;  %s7957_s11 = inlined_call_operand.vmem [shape: bf16[16,128], index: 11, kind: input, shape index: {}]   ;;  %s7958_s12 = inlined_call_operand.vmem [shape: f32[1,128], index: 12, kind: input, shape index: {}]   ;;  %s7959_s13 = inlined_call_operand.hbm [shape: bf16[128,256], index: 13, kind: input, shape index: {}]   ;;  %s7960_s14 = inlined_call_operand.vmem [shape: f32[1,256], index: 14, kind: input, shape index: {}]   ;;  %s7961_s15 = inlined_call_operand.vmem [shape: f32[1,256], index: 15, kind: input, shape index: {}]   ;;  %s7962_s16 = inlined_call_operand.vmem [shape: f32[1,256], index: 16, kind: input, shape index: {}]   ;;  %s7963_s17 = inlined_call_operand.vmem [shape: f32[64,128], index: 17, kind: output, shape index: {}]  }
   0x1   :  { %8070 = sst [smem:[#allocation81_spill]] %s7946_s0 }
   0x2   :  { %8071 = sst [smem:[#allocation82_spill]] %s7947_s1 }
   0x3   :  { %22 = vsyncpa [#allocation3], 0  ;;  %s5023_s24 = smov [#allocation2]  }
   0x4   :  { %s54_s25 = sshll.u32 %s5023_s24, 4  ;;  %s55_s25 = int_to_ptr.vmem [resolvable:$true] %s54_s25 }
   0x5   :  { %s5009_s26 = scalar_lea.vmem %s55_s25, 2048  ;;  %p5014_p1 = scmp.lt.s32.totalorder %s55_s25, %s55_s25 }
   0x6   :  { %p5010_p0 = scmp.ne.s32.totalorder %s55_s25, %s5009_s26  ;;  %p5015_p2 = scmp.lt.s32.totalorder %s5009_s26, %s5009_s26 }
   0x8   :  { %p5016_p3 = por %p5015_p2, %p5014_p1 }
   0xa   :  { %p5017_p4 = pnand %p5016_p3, %p5010_p0 }
   0xc   :  { %5020 = shalt.err (!%p5017_p4)
}
   0xd   :  { %s5024_s27 = smov 128   ;;  %s5025_s28 = smov 8  }
   0xe   :  { %60 = dma.hbm_to_vmem [thread:$0]  %s7959_s13, 2048, %s55_s25, [#allocation3], %s5024_s27, %s5024_s27, %s5025_s28  }
   0xf   :  { %5021 = dma.done.wait [#allocation3], 2048  }
  0x10   :  { %5022 = vsyncadd [#allocation3], 4294965248  ;;  %v4396_v0 = vld [vmem:[%s7951_s5 + $0x74] ss:$8 sps:$4 sm:$0xff]   ;;  %v4398_v1 = vld [vmem:[%s7951_s5 + $0x70] ss:$8 sps:$4 sm:$0xff]  }
  0x11   :  { %443 = vmatprep.subr.bf16.mxu0 %v4396_v0  ;;  %v4399_v2 = vld [vmem:[%s7951_s5 + $0x64] ss:$8 sps:$4 sm:$0xff]   ;;  %v4401_v3 = vld [vmem:[%s7951_s5 + $0x60] ss:$8 sps:$4 sm:$0xff]   ;;  %v4402_v4 = vld [vmem:[%s7951_s5 + $0x54] ss:$8 sps:$4 sm:$0xff]  }
  0x12   :  { %444 = vmatpush1.bf16.msra.mxu0 %v4398_v1  ;;  %v4404_v5 = vld [vmem:[%s7951_s5 + $0x50] ss:$8 sps:$4 sm:$0xff]   ;;  %v4405_v6 = vld [vmem:[%s7951_s5 + $0x44] ss:$8 sps:$4 sm:$0xff]   ;;  %v4407_v7 = vld [vmem:[%s7951_s5 + $0x40] ss:$8 sps:$4 sm:$0xff]  }
  0x13   :  { %445 = vmatprep.subr.bf16.mxu0 %v4399_v2  ;;  %v4408_v8 = vld [vmem:[%s7951_s5 + $0x34] ss:$8 sps:$4 sm:$0xff]   ;;  %v4410_v9 = vld [vmem:[%s7951_s5 + $0x30] ss:$8 sps:$4 sm:$0xff]   ;;  %v4411_v10 = vld [vmem:[%s7951_s5 + $0x24] ss:$8 sps:$4 sm:$0xff]  }
  0x14   :  { %v4413_v11 = vld [vmem:[%s7951_s5 + $0x20] ss:$8 sps:$4 sm:$0xff]   ;;  %v4414_v12 = vld [vmem:[%s7951_s5 + $0x14] ss:$8 sps:$4 sm:$0xff]   ;;  %s8072_s27 = sld [smem:[#allocation81_spill]]  ;;  %s5026_s26 = smov 16  }
  0x15   :  { %v4416_v17 = vld [vmem:[%s7951_s5 + $0x10] ss:$8 sps:$4 sm:$0xff]   ;;  %v4417_v18 = vld [vmem:[%s7951_s5 + $0x4] ss:$8 sps:$4 sm:$0xff]   ;;  %v4419_v19 = vld [vmem:[%s7951_s5] ss:$8 sps:$4 sm:$0xff]  }
  0x16   :  { %446 = vmatpush1.bf16.msra.mxu0 %v4401_v3  ;;  %v4420_v20 = vld [vmem:[%s7951_s5 + $0xf4] ss:$8 sps:$4 sm:$0xff]   ;;  %v4422_v25 = vld [vmem:[%s7951_s5 + $0xf0] ss:$8 sps:$4 sm:$0xff]   ;;  %v4423_v27 = vld [vmem:[%s7951_s5 + $0xe4] ss:$8 sps:$4 sm:$0xff]  }
  0x17   :  { %447 = vmatprep.subr.bf16.mxu0 %v4402_v4  ;;  %v4444_v23 = vld [vmem:[%s7953_s7 + $0x38] sm:$0xff]   ;;  %v4445_v34 = vld [vmem:[%s7953_s7 + $0x30] sm:$0xff]   ;;  %v4425_v37 = vld [vmem:[%s7951_s5 + $0xe0] ss:$8 sps:$4 sm:$0xff]   ;;  %s5028_s24 = smov 1   ;;  %s8131_s18 = sld [smem:[#allocation82_spill]] }
  0x18   :  { %4309 = vmatprep.subr.bf16.mxu1 %v4444_v23  ;;  %v4446_v39 = vld [vmem:[%s7953_s7 + $0x28] sm:$0xff]   ;;  %v4426_v40 = vld [vmem:[%s7951_s5 + $0xd4] ss:$8 sps:$4 sm:$0xff]   ;;  %v4428_v45 = vld [vmem:[%s7951_s5 + $0xd0] ss:$8 sps:$4 sm:$0xff]  }
  0x19   :  { %4310 = vmatpush3.bf16.msra.mxu1 %v4444_v23  ;;  %v4447_v52 = vld [vmem:[%s7953_s7 + $0x20] sm:$0xff]   ;;  %v4432_v3 = vld [vmem:[%s7951_s5 + $0xb4] ss:$8 sps:$4 sm:$0xff]  }
  0x1a   :  { %448 = vmatpush1.bf16.msra.mxu0 %v4404_v5  ;;  %v72_v13 = vld [vmem:[%s8072_s27 + $0x8] sm:$0xff]  ;;  %v74_v14 = vld [vmem:[%s8072_s27 + $0x18] sm:$0xff]  ;;  %v5194_v24 = vld [vmem:[%s8072_s27] sm:$0xff]  ;;  %4311 = vmatprep.subr.bf16.mxu1 %v4445_v34 }
  0x1b   :  { %449 = vmatprep.subr.bf16.mxu0 %v4405_v6  ;;  %v5170_v15 = vadd.f32 1.0, %v72_v13  ;;  %v5172_v16 = vadd.f32 1.0, %v74_v14  ;;  %v99_v21 = vmul.f32 -0.5, %v72_v13  ;;  %v117_v22 = vmul.f32 -0.5, %v74_v14  ;;  %v5202_v26 = vld [vmem:[%s8072_s27 + $0x10] sm:$0xff]  ;;  %v5210_v29 = vld [vmem:[%s8072_s27 + $0x28] sm:$0xff] }
  0x1c   :  { %v102_v30 = vand.u32 2147483647, %v72_v13  ;;  %v5213_v32 = vadd.f32 1.0, %v5194_v24  ;;  %v5218_v33 = vld [vmem:[%s8072_s27 + $0x38] sm:$0xff]  ;;  %v120_v35 = vand.u32 2147483647, %v74_v14 }
  0x1d   :  { %4485 = vlog2.f32 %v5170_v15  ;;  %v100_v28 = vadd.f32 1.0, %v99_v21  ;;  %v118_v31 = vadd.f32 1.0, %v117_v22  ;;  %v5224_v36 = vadd.f32 1.0, %v5202_v26  ;;  %v5244_v43 = vld [vmem:[%s8072_s27 + $0x20] sm:$0xff]  ;;  %4312 = vmatpush3.bf16.msra.mxu1 %v4445_v34  ;;  %v5257_v48 = vld [vmem:[%s8072_s27 + $0x30] sm:$0xff]  ;;  %v5263_v51 = vld [vmem:[%s8072_s27 + $0x48] sm:$0xff] }
  0x1e   :  { %450 = vmatpush1.bf16.msra.mxu0 %v4407_v7  ;;  %4487 = vlog2.f32 %v5172_v16  ;;  %v5230_v38 = vadd.f32 1.0, %v5210_v29  ;;  %v5239_v42 = vadd.f32 1.0, %v5218_v33  ;;  %vm5249_vm0 = vcmp.lt.f32.partialorder %v102_v30, 0.0004427343  ;;  %4313 = vmatprep.subr.bf16.mxu1 %v4446_v39  ;;  %v4429_v55 = vld [vmem:[%s7951_s5 + $0xc4] ss:$8 sps:$4 sm:$0xff]  }
  0x1f   :  { %451 = vmatprep.subr.bf16.mxu0 %v4408_v8  ;;  %v101_v41 = vmul.f32 %v100_v28, %v72_v13  ;;  %v119_v47 = vmul.f32 %v118_v31, %v74_v14  ;;  %4489 = vlog2.f32 %v5213_v32  ;;  %vm121_vm1 = vcmp.lt.f32.partialorder %v120_v35, 0.0004427343  ;;  %v4431_v58 = vld [vmem:[%s7951_s5 + $0xc0] ss:$8 sps:$4 sm:$0xff]   ;;  %v5291_v60 = vld [vmem:[%s8072_s27 + $0x58] sm:$0xff]  ;;  %v5329_v13 = vld [vmem:[%s8072_s27 + $0x50] sm:$0xff] }
  0x20   :  { %4491 = vlog2.f32 %v5224_v36  ;;  %v5270_v54 = vadd.f32 1.0, %v5244_v43  ;;  %v5281_v57 = vadd.f32 1.0, %v5257_v48  ;;  %v5294_v61 = vadd.f32 1.0, %v5263_v51  ;;  %v4434_v7 = vld [vmem:[%s7951_s5 + $0xb0] ss:$8 sps:$4 sm:$0xff]  }
  0x21   :  { %4493 = vlog2.f32 %v5230_v38  ;;  %4314 = vmatpush3.bf16.msra.mxu1 %v4446_v39  ;;  %v90_v63 = vmul.f32 -0.5, %v5194_v24  ;;  %v93_v0 = vand.u32 2147483647, %v5194_v24  ;;  %v108_v1 = vmul.f32 -0.5, %v5202_v26  ;;  %v4437_v22 = vld [vmem:[%s7951_s5 + $0xa0] ss:$8 sps:$4 sm:$0xff]  }
  0x22   :  { %452 = vmatpush1.bf16.msra.mxu0 %v4410_v9  ;;  %4495 = vlog2.f32 %v5239_v42  ;;  %8076 = vst [vmem:[#allocation6_spill] sm:$0xff] %v5281_v57  ;;  %8078 = vst [vmem:[#allocation8_spill] sm:$0xff] %v5294_v61  ;;  %4315 = vmatprep.subr.bf16.mxu1 %v4447_v52  ;;  %v111_v2 = vand.u32 2147483647, %v5202_v26  ;;  %v135_v4 = vmul.f32 -0.5, %v5210_v29  ;;  %v5310_v6 = vadd.f32 1.0, %v5291_v60 }
  0x23   :  { %453 = vmatprep.subr.bf16.mxu0 %v4411_v10  ;;  %4497 = vlog2.f32 %v5270_v54  ;;  %v138_v5 = vand.u32 2147483647, %v5210_v29  ;;  %v153_v8 = vmul.f32 -0.5, %v5218_v33  ;;  %v156_v9 = vand.u32 2147483647, %v5218_v33  ;;  %v5321_v10 = vld [vmem:[%s8072_s27 + $0x40] sm:$0xff] }
  0x24   :  { %4499 = vlog2.f32 %v5281_v57  ;;  %8079 = vst [vmem:[#allocation9_spill] sm:$0xff] %v5310_v6  ;;  %vm5331_vm2 = vcmp.lt.f32.partialorder %v93_v0, 0.0004427343  ;;  %vm5345_vm3 = vcmp.lt.f32.partialorder %v111_v2, 0.0004427343  ;;  %v136_v21 = vadd.f32 1.0, %v135_v4 }
  0x25   :  { %4501 = vlog2.f32 %v5294_v61  ;;  %4316 = vmatpush3.bf16.msra.mxu1 %v4447_v52  ;;  %vm5353_vm4 = vcmp.lt.f32.partialorder %v138_v5, 0.0004427343  ;;  %vm5357_vm5 = vcmp.lt.f32.partialorder %v156_v9, 0.0004427343  ;;  %v5362_v28 = vadd.f32 1.0, %v5321_v10  ;;  %v3887_v57 = vld [vmem:[%s8131_s18 + $0x8] sm:$0xff] }
  0x26   :  { %454 = vmatpush1.bf16.msra.mxu0 %v4413_v11  ;;  %v4435_v11 = vld [vmem:[%s7951_s5 + $0xa4] ss:$8 sps:$4 sm:$0xff]   ;;  %4503 = vlog2.f32 %v5310_v6  ;;  %v4438_v31 = vld [vmem:[%s7951_s5 + $0x94] ss:$8 sps:$4 sm:$0xff]   ;;  %v126_v34 = vmul.f32 -0.5, %v5244_v43  ;;  %v5371_v39 = vadd.f32 1.0, %v5329_v13 }
  0x27   :  { %455 = vmatprep.subr.bf16.mxu0 %v4414_v12  ;;  %v91_v12 = vadd.f32 1.0, %v90_v63  ;;  %8088 = vst [vmem:[#allocation10_spill] sm:$0xff] %v5362_v28  ;;  %v129_v35 = vand.u32 2147483647, %v5244_v43  ;;  %4505 = vlog2.f32 %v5362_v28  ;;  %v4441_v63 = vld [vmem:[%s7951_s5 + $0x84] ss:$8 sps:$4 sm:$0xff]  }
  0x28   :  { %8089 = vst [vmem:[#allocation11_spill] sm:$0xff] %v5371_v39  ;;  %4507 = vlog2.f32 %v5371_v39 }
  0x29   :  { %vm5406_vm6 = vcmp.lt.f32.partialorder %v129_v35, 0.0004427343 }
  0x2a   :  { %456 = vmatpush1.bf16.msra.mxu0 %v4416_v17  ;;  %v4486_v44 = vpop.eup %4485  ;;  %v5338_v17 = vld [vmem:[%s8072_s27 + $0x68] sm:$0xff] }
  0x2b   :  { %457 = vmatprep.subr.bf16.mxu0 %v4417_v18  ;;  %v4488_v49 = vpop.eup %4487  ;;  %v98_v50 = vmul.f32 0.6931472, %v4486_v44  ;;  %v5343_v18 = vld [vmem:[%s8072_s27 + $0x78] sm:$0xff]  ;;  %v171_v44 = vmul.f32 -0.5, %v5263_v51 }
  0x2c   :  { %v116_v53 = vmul.f32 0.6931472, %v4488_v49  ;;  %v4490_v30 = vpop.eup %4489  ;;  %v189_v49 = vmul.f32 -0.5, %v5291_v60 }
  0x2d   :  { %v5277_v56 = vsel %vm5249_vm0, %v101_v41, %v98_v50  ;;  %v147_v41 = vand.u32 2147483647, %v5257_v48  ;;  %v5381_v50 = vadd.f32 1.0, %v5343_v18  ;;  %v89_v0 = vmul.f32 0.6931472, %v4490_v30 }
  0x2e   :  { %458 = vmatpush1.bf16.msra.mxu0 %v4419_v19  ;;  %8075 = vst [vmem:[#allocation5_spill] sm:$0xff] %v5277_v56  ;;  %v5286_v59 = vsel %vm121_vm1, %v119_v47, %v116_v53  ;;  %v109_v19 = vadd.f32 1.0, %v108_v1  ;;  %v92_v47 = vmul.f32 %v91_v12, %v5194_v24  ;;  %v4440_v53 = vld [vmem:[%s7951_s5 + $0x90] ss:$8 sps:$4 sm:$0xff]   ;;  %v5393_v24 = vld [vmem:[%s8072_s27 + $0x60] sm:$0xff]  ;;  %v127_v1 = vadd.f32 1.0, %v126_v34 }
  0x2f   :  { %459 = vmatprep.subr.bf16.mxu0 %v4420_v20  ;;  %8077 = vst [vmem:[#allocation7_spill] sm:$0xff] %v5286_v59  ;;  %v232_v62 = vpack.c.bf16 %v5286_v59, %v5277_v56  ;;  %8091 = vst [vmem:[#allocation13_spill] sm:$0xff] %v5381_v50  ;;  %v172_v4 = vadd.f32 1.0, %v171_v44  ;;  %vm5410_vm7 = vcmp.lt.f32.partialorder %v147_v41, 0.0004427343  ;;  %v190_v12 = vadd.f32 1.0, %v189_v49 }
  0x30   :  { %v165_v34 = vand.u32 2147483647, %v5321_v10  ;;  %v5430_v35 = vadd.f32 1.0, %v5393_v24  ;;  %v180_v41 = vmul.f32 -0.5, %v5329_v13 }
  0x31   :  { %475 = vmatprep.mubr.bf16.mxu0 %v232_v62  ;;  %v174_v62 = vand.u32 2147483647, %v5263_v51 }
  0x32   :  { %460 = vmatpush2.bf16.msra.mxu0 %v4422_v25  ;;  %v154_v25 = vadd.f32 1.0, %v153_v8  ;;  %8099 = vst [vmem:[#allocation15_spill] sm:$0xff] %v5430_v35  ;;  %vm5469_vm10 = vcmp.lt.f32.partialorder %v165_v34, 0.0004427343 }
  0x33   :  { %461 = vmatprep.subr.bf16.mxu0 %v4423_v27  ;;  %vm5418_vm8 = vcmp.lt.f32.partialorder %v174_v62, 0.0004427343  ;;  %v207_v27 = vmul.f32 -0.5, %v5338_v17 }
  0x36   :  { %462 = vmatpush2.bf16.msra.mxu0 %v4425_v37  ;;  %v144_v37 = vmul.f32 -0.5, %v5257_v48 }
  0x37   :  { %463 = vmatprep.subr.bf16.mxu0 %v4426_v40  ;;  %v4492_v40 = vpop.eup %4491 }
  0x38   :  { %v4494_v46 = vpop.eup %4493  ;;  %v145_v2 = vadd.f32 1.0, %v144_v37 }
  0x39   :  { %v4496_v52 = vpop.eup %4495 }
  0x3a   :  { %464 = vmatpush2.bf16.msra.mxu0 %v4428_v45  ;;  %v5376_v45 = vadd.f32 1.0, %v5338_v17  ;;  %v4498_v5 = vpop.eup %4497  ;;  %v152_v8 = vmul.f32 0.6931472, %v4496_v52 }
  0x3b   :  { %465 = vmatprep.subr.bf16.mxu0 %v4429_v55  ;;  %v110_v55 = vmul.f32 %v109_v19, %v5202_v26  ;;  %v5402_v26 = vld [vmem:[%s8072_s27 + $0x70] sm:$0xff]  ;;  %v4500_v19 = vpop.eup %4499 }
  0x3c   :  { %8090 = vst [vmem:[#allocation12_spill] sm:$0xff] %v5376_v45  ;;  %4509 = vlog2.f32 %v5376_v45  ;;  %v4502_v30 = vpop.eup %4501  ;;  %v5438_v44 = vadd.f32 1.0, %v5402_v26 }
  0x3d   :  { %4511 = vlog2.f32 %v5381_v50  ;;  %v4504_v49 = vpop.eup %4503  ;;  %v170_v20 = vmul.f32 0.6931472, %v4502_v30  ;;  %v198_v30 = vmul.f32 -0.5, %v5393_v24 }
  0x3e   :  { %466 = vmatpush2.bf16.msra.mxu0 %v4431_v58  ;;  %v137_v58 = vmul.f32 %v136_v21, %v5210_v29  ;;  %v107_v29 = vmul.f32 0.6931472, %v4492_v40  ;;  %v125_v40 = vmul.f32 0.6931472, %v4498_v5  ;;  %8101 = vst [vmem:[#allocation17_spill] sm:$0xff] %v5438_v44  ;;  %4513 = vlog2.f32 %v5430_v35 }
  0x3f   :  { %467 = vmatprep.subr.bf16.mxu0 %v4432_v3  ;;  %v155_v3 = vmul.f32 %v154_v25, %v5218_v33  ;;  %v4443_v33 = vld [vmem:[%s7951_s5 + $0x80] ss:$8 sps:$4 sm:$0xff]   ;;  %v162_v25 = vmul.f32 -0.5, %v5321_v10  ;;  %4515 = vlog2.f32 %v5438_v44  ;;  %v188_v62 = vmul.f32 0.6931472, %v4504_v49 }
  0x40   :  { %v5434_v37 = vsel %vm5345_vm3, %v110_v55, %v107_v29  ;;  %v146_v55 = vmul.f32 %v145_v2, %v5257_v48 }
  0x41   :  { %8100 = vst [vmem:[#allocation16_spill] sm:$0xff] %v5434_v37  ;;  %v163_v29 = vadd.f32 1.0, %v162_v25 }
  0x42   :  { %468 = vmatpush2.bf16.msra.mxu0 %v4434_v7  ;;  %v134_v7 = vmul.f32 0.6931472, %v4494_v46  ;;  %v5446_v46 = vsel %vm5357_vm5, %v155_v3, %v152_v8  ;;  %v181_v3 = vadd.f32 1.0, %v180_v41  ;;  %v208_v8 = vadd.f32 1.0, %v207_v27 }
  0x43   :  { %469 = vmatprep.subr.bf16.mxu0 %v4435_v11  ;;  %8103 = vst [vmem:[#allocation19_spill] sm:$0xff] %v5446_v46  ;;  %v210_v11 = vand.u32 2147483647, %v5338_v17  ;;  %v164_v21 = vmul.f32 %v163_v29, %v5321_v10  ;;  %v199_v10 = vadd.f32 1.0, %v198_v30  ;;  %v761_v30 = vld [vmem:[%s7949_s3 + $0x28] sm:$0xff] }
  0x44   :  { %v5442_v14 = vsel %vm5353_vm4, %v137_v58, %v134_v7  ;;  %v173_v58 = vmul.f32 %v172_v4, %v5263_v51  ;;  %v182_v25 = vmul.f32 %v181_v3, %v5329_v13 }
  0x45   :  { %8102 = vst [vmem:[#allocation18_spill] sm:$0xff] %v5442_v14  ;;  %v234_v23 = vpack.c.bf16 %v5446_v46, %v5442_v14  ;;  %vm211_vm12 = vcmp.lt.f32.partialorder %v210_v11, 0.0004427343  ;;  %v758_v11 = vld [vmem:[%s7949_s3 + $0x10] sm:$0xff] }
  0x46   :  { %470 = vmatpush2.bf16.msra.mxu0 %v4437_v22  ;;  %v192_v22 = vand.u32 2147483647, %v5291_v60  ;;  %v5475_v4 = vsel %vm5418_vm8, %v173_v58, %v170_v20  ;;  %v209_v20 = vmul.f32 %v208_v8, %v5338_v17  ;;  %776 = vrot.lane.b32.xlu1 %v758_v11, %s5026_s26 }
  0x47   :  { %471 = vmatprep.subr.bf16.mxu0 %v4438_v31  ;;  %v5426_v31 = vsel %vm5331_vm2, %v92_v47, %v89_v0  ;;  %v143_v47 = vmul.f32 0.6931472, %v4500_v19  ;;  %v225_v0 = vmul.f32 -0.5, %v5343_v18  ;;  %8108 = vst [vmem:[#allocation22_spill] sm:$0xff] %v5475_v4  ;;  %v4452_v19 = vld [vmem:[%s7955_s9 + $0x38] sm:$0xff]  }
  0x48   :  { %8098 = vst [vmem:[#allocation14_spill] sm:$0xff] %v5426_v31  ;;  %v231_v52 = vpack.c.bf16 %v5434_v37, %v5426_v31  ;;  %vm193_vm9 = vcmp.lt.f32.partialorder %v192_v22, 0.0004427343 }
  0x49   :  { %v5467_v51 = vsel %vm5410_vm7, %v146_v55, %v143_v47  ;;  %v216_v47 = vmul.f32 -0.5, %v5402_v26 }
  0x4a   :  { %472 = vmatpush2.bf16.msra.mxu0 %v4440_v53  ;;  %v128_v53 = vmul.f32 %v127_v1, %v5244_v43  ;;  %v183_v43 = vand.u32 2147483647, %v5329_v13  ;;  %v4506_v1 = vpop.eup %4505  ;;  %8105 = vst [vmem:[#allocation21_spill] sm:$0xff] %v5467_v51 }
  0x4b   :  { %473 = vmatprep.subr.bf16.mxu0 %v4441_v63  ;;  %v191_v63 = vmul.f32 %v190_v12, %v5291_v60  ;;  %v4508_v5 = vpop.eup %4507  ;;  %v226_v12 = vadd.f32 1.0, %v225_v0  ;;  %v217_v27 = vadd.f32 1.0, %v216_v47 }
  0x4c   :  { %v5463_v48 = vsel %vm5406_vm6, %v128_v53, %v125_v40  ;;  %v4510_v2 = vpop.eup %4509  ;;  %vm5479_vm11 = vcmp.lt.f32.partialorder %v183_v43, 0.0004427343  ;;  %v161_v40 = vmul.f32 0.6931472, %v4506_v1  ;;  %v179_v41 = vmul.f32 0.6931472, %v4508_v5 }
  0x4d   :  { %8104 = vst [vmem:[#allocation20_spill] sm:$0xff] %v5463_v48  ;;  %v5477_v7 = vsel %vm193_vm9, %v191_v63, %v188_v62  ;;  %v4512_v9 = vpop.eup %4511  ;;  %v233_v22 = vpack.c.bf16 %v5467_v51, %v5463_v48  ;;  %v206_v49 = vmul.f32 0.6931472, %v4510_v2  ;;  %v227_v53 = vmul.f32 %v226_v12, %v5343_v18  ;;  %v4450_v12 = vld [vmem:[%s7953_s7 + $0x8] sm:$0xff]  }
  0x4e   :  { %474 = vmatpush2.bf16.msra.mxu0 %v4443_v33  ;;  %8109 = vst [vmem:[#allocation23_spill] sm:$0xff] %v5477_v7  ;;  %v228_v33 = vand.u32 2147483647, %v5343_v18  ;;  %v236_v34 = vpack.c.bf16 %v5477_v7, %v5475_v4  ;;  %v4514_v13 = vpop.eup %4513  ;;  %v5501_v55 = vsel %vm5479_vm11, %v182_v25, %v179_v41  ;;  %v201_v18 = vand.u32 2147483647, %v5393_v24  ;;  %v760_v25 = vld [vmem:[%s7949_s3 + $0x20] sm:$0xff] }
  0x4f   :  { %8113 = vst [vmem:[#allocation25_spill] sm:$0xff] %v5501_v55  ;;  %v4516_v58 = vpop.eup %4515  ;;  %v5503_v17 = vsel %vm211_vm12, %v209_v20, %v206_v49  ;;  %v219_v63 = vand.u32 2147483647, %v5402_v26  ;;  %v200_v43 = vmul.f32 %v199_v10, %v5393_v24  ;;  %v197_v29 = vmul.f32 0.6931472, %v4514_v13  ;;  %v4448_v24 = vld [vmem:[%s7953_s7 + $0x18] sm:$0xff]  }
  0x50   :  { %vm229_vm13 = vcmp.lt.f32.partialorder %v228_v33, 0.0004427343  ;;  %8114 = vst [vmem:[#allocation26_spill] sm:$0xff] %v5503_v17  ;;  %v215_v3 = vmul.f32 0.6931472, %v4516_v58  ;;  %v218_v5 = vmul.f32 %v217_v27, %v5402_v26  ;;  %4317 = vmatprep.subr.bf16.mxu1 %v4448_v24  ;;  %v4449_v26 = vld [vmem:[%s7953_s7 + $0x10] sm:$0xff]   ;;  %v7966_v41 = vlaneseq }
  0x51   :  { %476 = vmatmul.mubr.bf16.vlgmr.msra.gmra.mxu0 %v231_v52  ;;  %v224_v52 = vmul.f32 0.6931472, %v4512_v9  ;;  %vm202_vm14 = vcmp.lt.f32.partialorder %v201_v18, 0.0004427343  ;;  %vm220_vm15 = vcmp.lt.f32.partialorder %v219_v63, 0.0004427343  ;;  %4318 = vmatpush3.bf16.msra.mxu1 %v4448_v24 }
  0x52   :  { %485 = vmatprep.mubr.bf16.mxu0 %v234_v23  ;;  %v5497_v23 = vsel %vm5469_vm10, %v164_v21, %v161_v40  ;;  %v5515_v60 = vsel %vm202_vm14, %v200_v43, %v197_v29  ;;  %v5517_v2 = vsel %vm220_vm15, %v218_v5, %v215_v3  ;;  %4319 = vmatprep.subr.bf16.mxu1 %v4449_v26  ;;  %v4451_v9 = vld [vmem:[%s7953_s7] sm:$0xff]   ;;  %v757_v21 = vld [vmem:[%s7949_s3 + $0x8] sm:$0xff]  ;;  %v763_v40 = vld [vmem:[%s7949_s3 + $0x38] sm:$0xff]  ;;  %v274_v47 = vshrl.u32 %v7966_v41, 7 }
  0x53   :  { %8112 = vst [vmem:[#allocation24_spill] sm:$0xff] %v5497_v23  ;;  %v5505_v62 = vsel %vm229_vm13, %v227_v53, %v224_v52  ;;  %v235_v0 = vpack.c.bf16 %v5501_v55, %v5497_v23  ;;  %8116 = vst [vmem:[#allocation28_spill] sm:$0xff] %v5515_v60  ;;  %v237_v8 = vpack.c.bf16 %v5517_v2, %v5515_v60  ;;  %v756_v33 = vld [vmem:[%s7949_s3] sm:$0xff] }
  0x54   :  { %8115 = vst [vmem:[#allocation27_spill] sm:$0xff] %v5505_v62  ;;  %v238_v1 = vpack.c.bf16 %v5505_v62, %v5503_v17  ;;  %8117 = vst [vmem:[#allocation29_spill] sm:$0xff] %v5517_v2  ;;  %772 = vrot.lane.b32.xlu0 %v756_v33, %s5026_s26  ;;  %v5569_v49 = vsub.s32 0, %v274_v47  ;;  %v271_v20 = vld [vmem:[%s7952_s6] sm:$0x3] }
  0x55   :  { %4320 = vmatpush3.bf16.msra.mxu1 %v4449_v26 }
  0x56   :  { %4321 = vmatprep.subr.bf16.mxu1 %v4450_v12  ;;  %v276_v52 = vrot.slane %v271_v20, %v5569_v49 }
  0x58   :  { %774 = vrot.lane.b32.xlu0 %v757_v21, %s5026_s26 }
  0x59   :  { %486 = vmatmul.mubr.bf16.gmra.mxu0 %v233_v22  ;;  %4322 = vmatpush3.bf16.msra.mxu1 %v4450_v12  ;;  %v759_v22 = vld [vmem:[%s7949_s3 + $0x18] sm:$0xff] }
  0x5a   :  { %495 = vmatprep.mubr.bf16.mxu0 %v236_v34  ;;  %4323 = vmatprep.subr.bf16.mxu1 %v4451_v9  ;;  %v762_v34 = vld [vmem:[%s7949_s3 + $0x30] sm:$0xff] }
  0x5b   :  { %778 = vrot.lane.b32.xlu1 %v759_v22, %s5026_s26  ;;  %v4453_v22 = vld [vmem:[%s7955_s9 + $0x30] sm:$0xff]  }
  0x5c   :  { %780 = vrot.lane.b32.xlu0 %v760_v25, %s5026_s26  ;;  %v5578_v25 = vsub.s32 1, %v274_v47 }
  0x5d   :  { %4324 = vmatpush3.bf16.msra.mxu1 %v4451_v9 }
  0x5e   :  { %4333 = vmatprep.subr.bf16.mxu1 %v4452_v19 }
  0x5f   :  { %782 = vrot.lane.b32.xlu1 %v761_v30, %s5026_s26 }
  0x60   :  { %784 = vrot.lane.b32.xlu0 %v762_v34, %s5026_s26 }
  0x61   :  { %496 = vmatmul.mubr.bf16.gmra.mxu0 %v235_v0 }
  0x62   :  { %505 = vmatprep.mubr.bf16.mxu0 %v238_v1 }
  0x63   :  { %786 = vrot.lane.b32.xlu1 %v763_v40, %s5026_s26 }
  0x69   :  { %506 = vmatmul.mubr.bf16.gmra.mxu0 %v237_v8 }
 0x111   :  { %v477_v53 = vpop.f32.mrf.mxu0 }
 0x112   :  { %v478_v13 = vadd.f32 %v477_v53, %v276_v52  ;;  %v4454_v53 = vld [vmem:[%s7955_s9 + $0x28] sm:$0xff]  }
 0x113   :  { %v479_v10 = vpop.f32.mrf.mxu0 }
 0x114   :  { %v516_v63 = vmax.f32 %v478_v13, 0.0 }
 0x115   :  { %v481_v27 = vpop.f32.mrf.mxu0 }
 0x116   :  { %v482_v58 = vadd.f32 %v481_v27, %v276_v52 }
 0x117   :  { %v483_v18 = vpop.f32.mrf.mxu0 }
 0x118   :  { %v518_v0 = vmax.f32 %v482_v58, 0.0  ;;  %v280_v58 = vrot.slane %v271_v20, %v5578_v25  ;;  %v4456_v20 = vld [vmem:[%s7955_s9 + $0x18] sm:$0xff]  }
 0x119   :  { %v487_v43 = vpop.f32.mrf.mxu0 }
 0x11a   :  { %v532_v1 = vpack.c.bf16 %v518_v0, %v516_v63  ;;  %v488_v3 = vadd.f32 %v487_v43, %v276_v52  ;;  %v484_v47 = vadd.f32 %v483_v18, %v280_v58  ;;  %v4457_v18 = vld [vmem:[%s7955_s9 + $0x10] sm:$0xff]  }
 0x11b   :  { %v489_v29 = vpop.f32.mrf.mxu0 }
 0x11c   :  { %4325 = vmatprep.mubr.bf16.mxu1 %v532_v1  ;;  %v520_v26 = vmax.f32 %v488_v3, 0.0  ;;  %v480_v3 = vadd.f32 %v479_v10, %v280_v58 }
 0x11d   :  { %v491_v5 = vpop.f32.mrf.mxu0 }
 0x11e   :  { %v492_v8 = vadd.f32 %v491_v5, %v276_v52 }
 0x11f   :  { %v493_v24 = vpop.f32.mrf.mxu0 }
 0x120   :  { %v522_v12 = vmax.f32 %v492_v8, 0.0 }
 0x121   :  { %v497_v9 = vpop.f32.mrf.mxu0 }
 0x122   :  { %v533_v11 = vpack.c.bf16 %v522_v12, %v520_v26  ;;  %v498_v33 = vadd.f32 %v497_v9, %v276_v52  ;;  %v519_v12 = vmax.f32 %v484_v47, 0.0 }
 0x123   :  { %v499_v21 = vpop.f32.mrf.mxu0 }
 0x124   :  { %4326 = vmatmul.mubr.bf16.vlgmr.msra.gmra.mxu1 %v533_v11  ;;  %v524_v34 = vmax.f32 %v498_v33, 0.0  ;;  %v517_v11 = vmax.f32 %v480_v3, 0.0 }
 0x125   :  { %4334 = vmatpush3.bf16.msra.mxu1 %v4452_v19  ;;  %v501_v30 = vpop.f32.mrf.mxu0  ;;  %v4455_v19 = vld [vmem:[%s7955_s9 + $0x20] sm:$0xff]  }
 0x126   :  { %v502_v40 = vadd.f32 %v501_v30, %v276_v52  ;;  %4335 = vmatprep.subr.bf16.mxu1 %v4453_v22  ;;  %v536_v10 = vpack.c.bf16 %v519_v12, %v517_v11 }
 0x127   :  { %v503_v13 = vpop.f32.mrf.mxu0 }
 0x128   :  { %v526_v27 = vmax.f32 %v502_v40, 0.0  ;;  %v504_v30 = vadd.f32 %v503_v13, %v280_v58  ;;  %v4459_v40 = vld [vmem:[%s7955_s9] sm:$0xff]  }
 0x129   :  { %4336 = vmatpush3.bf16.msra.mxu1 %v4453_v22  ;;  %v507_v63 = vpop.f32.mrf.mxu0  ;;  %v500_v22 = vadd.f32 %v499_v21, %v280_v58 }
 0x12a   :  { %v534_v0 = vpack.c.bf16 %v526_v27, %v524_v34  ;;  %v508_v43 = vadd.f32 %v507_v63, %v276_v52  ;;  %4337 = vmatprep.subr.bf16.mxu1 %v4454_v53  ;;  %v494_v34 = vadd.f32 %v493_v24, %v280_v58  ;;  %v527_v63 = vmax.f32 %v504_v30, 0.0 }
 0x12b   :  { %v509_v1 = vpop.f32.mrf.mxu0  ;;  %v525_v27 = vmax.f32 %v500_v22, 0.0 }
 0x12c   :  { %4329 = vmatprep.mubr.bf16.mxu1 %v534_v0  ;;  %v528_v8 = vmax.f32 %v508_v43, 0.0  ;;  %v523_v43 = vmax.f32 %v494_v34, 0.0  ;;  %v510_v47 = vadd.f32 %v509_v1, %v280_v58  ;;  %v4192_v1 = vld [vmem:[%s7954_s8] ss:$0 sm:$0xff]  ;;  %s5027_s8 = smov 112  }
 0x12d   :  { %4338 = vmatpush3.bf16.msra.mxu1 %v4454_v53  ;;  %v511_v5 = vpop.f32.mrf.mxu0  ;;  %v490_v53 = vadd.f32 %v489_v29, %v280_v58  ;;  %v4460_v29 = vld [vmem:[%s7957_s11] sm:$0xff]  }
 0x12e   :  { %v512_v26 = vadd.f32 %v511_v5, %v276_v52  ;;  %4339 = vmatprep.subr.bf16.mxu1 %v4455_v19  ;;  %v4458_v52 = vld [vmem:[%s7955_s9 + $0x8] sm:$0xff]   ;;  %v538_v5 = vpack.c.bf16 %v527_v63, %v525_v27  ;;  %v529_v13 = vmax.f32 %v510_v47, 0.0 }
 0x12f   :  { %v513_v0 = vpop.f32.mrf.mxu0 }
 0x130   :  { %v530_v9 = vmax.f32 %v512_v26, 0.0  ;;  %v514_v3 = vadd.f32 %v513_v0, %v280_v58 }
 0x131   :  { %4340 = vmatpush3.bf16.msra.mxu1 %v4455_v19  ;;  %v521_v19 = vmax.f32 %v490_v53, 0.0 }
 0x132   :  { %v535_v33 = vpack.c.bf16 %v530_v9, %v528_v8  ;;  %4341 = vmatprep.subr.bf16.mxu1 %v4456_v20  ;;  %v531_v24 = vmax.f32 %v514_v3, 0.0 }
 0x133   :  { %v537_v21 = vpack.c.bf16 %v523_v43, %v521_v19 }
 0x134   :  { %4330 = vmatmul.mubr.bf16.gmra.mxu1 %v535_v33  ;;  %v539_v8 = vpack.c.bf16 %v531_v24, %v529_v13 }
 0x135   :  { %4342 = vmatpush3.bf16.msra.mxu1 %v4456_v20  ;;  %4349 = vmatprep.mubr.bf16.mxu1 %v536_v10 }
 0x136   :  { %4343 = vmatprep.subr.bf16.mxu1 %v4457_v18 }
 0x139   :  { %4344 = vmatpush3.bf16.msra.mxu1 %v4457_v18 }
 0x13a   :  { %4345 = vmatprep.subr.bf16.mxu1 %v4458_v52 }
 0x13d   :  { %4346 = vmatpush3.bf16.msra.mxu1 %v4458_v52 }
 0x13e   :  { %4347 = vmatprep.subr.bf16.mxu1 %v4459_v40 }
 0x141   :  { %4348 = vmatpush3.bf16.msra.mxu1 %v4459_v40 }
 0x142   :  { %4357 = vmatprep.subr.bf16.mxu1 %v4460_v29 }
 0x144   :  { %4350 = vmatmul.mubr.bf16.vlgmr.msra.gmra.mxu1 %v537_v21 }
 0x145   :  { %4353 = vmatprep.mubr.bf16.mxu1 %v538_v5  ;;  %4358 = vmatpush3.bf16.msra.mxu1 %v4460_v29 }
 0x14c   :  { %4354 = vmatmul.mubr.bf16.gmra.mxu1 %v539_v8 }
 0x1e4   :  { %v4327_v58 = vpop.f32.mrf.mxu1 }
 0x1e5   :  { %v5605_v26 = vadd.f32 %v4327_v58, %v4192_v1 }
 0x1e6   :  { %v645_v20 = vpop.f32.mrf.mxu1 }
 0x1e7   :  { %v680_v12 = vmul.f32 1.442695, %v5605_v26  ;;  %v5608_v9 = vadd.f32 %v4192_v1, %v645_v20 }
 0x1e8   :  { %v4328_v11 = vpop.f32.mrf.mxu1 }
 0x1e9   :  { %4517 = vpow2.f32 %v680_v12  ;;  %v676_v33 = vmul.f32 1.442695, %v5608_v9  ;;  %v5611_v18 = vadd.f32 %v4328_v11, %v4192_v1 }
 0x1ea   :  { %v648_v10 = vpop.f32.mrf.mxu1 }
 0x1eb   :  { %4519 = vpow2.f32 %v676_v33  ;;  %v682_v52 = vmul.f32 1.442695, %v5611_v18  ;;  %v5614_v22 = vadd.f32 %v4192_v1, %v648_v10 }
 0x1ed   :  { %4521 = vpow2.f32 %v682_v52  ;;  %v678_v30 = vmul.f32 1.442695, %v5614_v22 }
 0x1ef   :  { %4523 = vpow2.f32 %v678_v30 }
 0x1f4   :  { %v4331_v34 = vpop.f32.mrf.mxu1 }
 0x1f5   :  { %v5632_v29 = vadd.f32 %v4331_v34, %v4192_v1 }
 0x1f6   :  { %v4518_v40 = vpop.eup %4517  ;;  %v661_v53 = vpop.f32.mrf.mxu1 }
 0x1f7   :  { %v5617_v27 = vadd.f32 0.0001, %v4518_v40  ;;  %v5619_v63 = vadd.f32 %v4192_v1, %v661_v53  ;;  %v688_v12 = vmul.f32 1.442695, %v5632_v29  ;;  %v773_v40 = vpop.permute.xlu0 %772 }
 0x1f8   :  { %v4520_v0 = vpop.eup %4519  ;;  %v4332_v43 = vpop.f32.mrf.mxu1 }
 0x1f9   :  { %v5621_v19 = vadd.f32 0.0001, %v4520_v0  ;;  %v684_v47 = vmul.f32 1.442695, %v5619_v63  ;;  %4525 = vrsqrt.f32 %v5617_v27  ;;  %v5634_v58 = vadd.f32 %v4332_v43, %v4192_v1 }
 0x1fa   :  { %v4522_v3 = vpop.eup %4521  ;;  %v664_v5 = vpop.f32.mrf.mxu1  ;;  %vm716_vm0 = vcmp.eq.f32.partialorder %v5617_v27, inf  ;;  %vm718_vm3 = vcmp.eq.f32.partialorder %v5617_v27, 0.0 }
 0x1fb   :  { %v5625_v21 = vadd.f32 0.0001, %v4522_v3  ;;  %v5627_v13 = vadd.f32 %v4192_v1, %v664_v5  ;;  %4527 = vrsqrt.f32 %v5621_v19  ;;  %v690_v11 = vmul.f32 1.442695, %v5634_v58 }
 0x1fc   :  { %v4524_v24 = vpop.eup %4523  ;;  %4529 = vpow2.f32 %v684_v47  ;;  %vm702_vm1 = vcmp.eq.f32.partialorder %v5621_v19, inf  ;;  %v705_v53 = vand.u32 2147483648, %v5621_v19  ;;  %vm704_vm2 = vcmp.eq.f32.partialorder %v5621_v19, 0.0 }
 0x1fd   :  { %v5630_v8 = vadd.f32 0.0001, %v4524_v24  ;;  %v686_v20 = vmul.f32 1.442695, %v5627_v13  ;;  %4531 = vrsqrt.f32 %v5625_v21  ;;  %v719_v5 = vand.u32 2147483648, %v5617_v27 }
 0x1fe   :  { %vm723_vm4 = vcmp.eq.f32.partialorder %v5625_v21, inf  ;;  %vm725_vm7 = vcmp.eq.f32.partialorder %v5625_v21, 0.0 }
 0x1ff   :  { %4533 = vrsqrt.f32 %v5630_v8  ;;  %vm709_vm5 = vcmp.eq.f32.partialorder %v5630_v8, inf  ;;  %vm711_vm6 = vcmp.eq.f32.partialorder %v5630_v8, 0.0 }
 0x200   :  { %4535 = vpow2.f32 %v686_v20 }
 0x201   :  { %4537 = vpow2.f32 %v688_v12 }
 0x202   :  { %4539 = vpow2.f32 %v690_v11 }
 0x206   :  { %v4526_v33 = vpop.eup %4525 }
 0x207   :  { %v715_v52 = vmul.f32 %v4526_v33, %v5617_v27  ;;  %v777_v33 = vpop.permute.xlu1 %776 }
 0x208   :  { %v4528_v10 = vpop.eup %4527 }
 0x209   :  { %v4530_v30 = vpop.eup %4529  ;;  %v701_v1 = vmul.f32 %v4528_v10, %v5621_v19  ;;  %v717_v47 = vsel %vm716_vm0, %v5617_v27, %v715_v52  ;;  %vm1167_vm0 = vcmask 130048  }
 0x20a   :  { %v4532_v34 = vpop.eup %4531  ;;  %v5646_v43 = vadd.f32 0.0001, %v4530_v30  ;;  %v720_v10 = vsel %vm718_vm3, %v719_v5, %v717_v47  ;;  %v726_v5 = vand.u32 2147483648, %v5625_v21 }
 0x20b   :  { %v703_v3 = vsel %vm702_vm1, %v5621_v19, %v701_v1  ;;  %v722_v12 = vmul.f32 %v4532_v34, %v5625_v21  ;;  %v775_v1 = vpop.permute.xlu0 %774  ;;  %v712_v34 = vand.u32 2147483648, %v5630_v8  ;;  %v798_v47 = vmul.f32 %v777_v33, %v720_v10  ;;  %v779_v44 = vpop.permute.xlu1 %778 }
 0x20c   :  { %v4534_v0 = vpop.eup %4533  ;;  %v706_v24 = vsel %vm704_vm2, %v705_v53, %v703_v3  ;;  %4541 = vrsqrt.f32 %v5646_v43  ;;  %vm730_vm8 = vcmp.eq.f32.partialorder %v5646_v43, inf  ;;  %v733_v10 = vand.u32 2147483648, %v5646_v43 }
 0x20d   :  { %v796_v20 = vmul.f32 %v773_v40, %v706_v24  ;;  %v4536_v11 = vpop.eup %4535  ;;  %v708_v30 = vmul.f32 %v4534_v0, %v5630_v8  ;;  %v724_v0 = vsel %vm723_vm4, %v5625_v21, %v722_v12  ;;  %vm732_vm9 = vcmp.eq.f32.partialorder %v5646_v43, 0.0 }
 0x20e   :  { %v4538_v52 = vpop.eup %4537  ;;  %v5661_v53 = vadd.f32 0.0001, %v4536_v11  ;;  %v727_v11 = vsel %vm725_vm7, %v726_v5, %v724_v0 }
 0x20f   :  { %812 = vrot.lane.b32.xlu0 %v796_v20, %s5027_s8  ;;  %v4540_v40 = vpop.eup %4539  ;;  %v710_v3 = vsel %vm709_vm5, %v5630_v8, %v708_v30  ;;  %v5666_v20 = vadd.f32 0.0001, %v4538_v52  ;;  %v799_v12 = vmul.f32 %v779_v44, %v727_v11  ;;  %v781_v52 = vpop.permute.xlu0 %780 }
 0x210   :  { %v713_v24 = vsel %vm711_vm6, %v712_v34, %v710_v3  ;;  %v5670_v39 = vadd.f32 0.0001, %v4540_v40  ;;  %4543 = vrsqrt.f32 %v5661_v53  ;;  %v783_v34 = vpop.permute.xlu1 %782  ;;  %vm737_vm10 = vcmp.eq.f32.partialorder %v5661_v53, inf }
 0x211   :  { %v797_v41 = vmul.f32 %v775_v1, %v713_v24  ;;  %4545 = vrsqrt.f32 %v5666_v20  ;;  %vm739_vm11 = vcmp.eq.f32.partialorder %v5661_v53, 0.0  ;;  %vm744_vm12 = vcmp.eq.f32.partialorder %v5666_v20, inf }
 0x212   :  { %4547 = vrsqrt.f32 %v5670_v39  ;;  %vm746_vm13 = vcmp.eq.f32.partialorder %v5666_v20, 0.0  ;;  %v747_v5 = vand.u32 2147483648, %v5666_v20  ;;  %vm751_vm14 = vcmp.eq.f32.partialorder %v5670_v39, inf }
 0x213   :  { %816 = vrot.lane.b32.xlu0 %v798_v47, %s5027_s8  ;;  %814 = vrot.lane.b32.xlu1 %v797_v41, %s5027_s8  ;;  %v740_v47 = vand.u32 2147483648, %v5661_v53  ;;  %vm753_vm15 = vcmp.eq.f32.partialorder %v5670_v39, 0.0 }
 0x217   :  { %818 = vrot.lane.b32.xlu1 %v799_v12, %s5027_s8 }
 0x219   :  { %v4542_v33 = vpop.eup %4541 }
 0x21a   :  { %v729_v30 = vmul.f32 %v4542_v33, %v5646_v43  ;;  %v754_v33 = vand.u32 2147483648, %v5670_v39 }
 0x21c   :  { %v731_v41 = vsel %vm730_vm8, %v5646_v43, %v729_v30  ;;  %v785_v30 = vpop.permute.xlu0 %784 }
 0x21d   :  { %v734_v1 = vsel %vm732_vm9, %v733_v10, %v731_v41  ;;  %v4544_v40 = vpop.eup %4543 }
 0x21e   :  { %v800_v44 = vmul.f32 %v781_v52, %v734_v1  ;;  %v736_v0 = vmul.f32 %v4544_v40, %v5661_v53  ;;  %v4546_v3 = vpop.eup %4545 }
 0x21f   :  { %v4548_v24 = vpop.eup %4547  ;;  %v743_v12 = vmul.f32 %v4546_v3, %v5666_v20 }
 0x220   :  { %820 = vrot.lane.b32.xlu0 %v800_v44, %s5027_s8  ;;  %v738_v11 = vsel %vm737_vm10, %v5661_v53, %v736_v0  ;;  %v750_v52 = vmul.f32 %v4548_v24, %v5670_v39  ;;  %v787_v44 = vpop.permute.xlu1 %786  ;;  %v1064_v24 = vld [vmem:[%s7950_s4 + $0x20] sm:$0xff] }
 0x221   :  { %v741_v10 = vsel %vm739_vm11, %v740_v47, %v738_v11  ;;  %v745_v1 = vsel %vm744_vm12, %v5666_v20, %v743_v12  ;;  %v1060_v47 = vld [vmem:[%s7950_s4] sm:$0xff]  ;;  %v1065_v11 = vld [vmem:[%s7950_s4 + $0x28] sm:$0xff] }
 0x222   :  { %v801_v41 = vmul.f32 %v783_v34, %v741_v10  ;;  %v748_v40 = vsel %vm746_vm13, %v747_v5, %v745_v1  ;;  %v752_v7 = vsel %vm751_vm14, %v5670_v39, %v750_v52  ;;  %v1061_v34 = vld [vmem:[%s7950_s4 + $0x8] sm:$0xff]  ;;  %v1063_v5 = vld [vmem:[%s7950_s4 + $0x18] sm:$0xff]  ;;  %v3744_v52 = vmul.f32 %v5605_v26, %v5605_v26 }
 0x223   :  { %v802_v0 = vmul.f32 %v785_v30, %v748_v40  ;;  %v755_v3 = vsel %vm753_vm15, %v754_v33, %v752_v7  ;;  %v1062_v7 = vld [vmem:[%s7950_s4 + $0x10] sm:$0xff]  ;;  %v3895_v12 = vld [vmem:[%s7948_s2 + $0x8] sm:$0xff]  ;;  %v1067_v10 = vld [vmem:[%s7950_s4 + $0x38] sm:$0xff]  ;;  %v3742_v1 = vmul.f32 %v5608_v9, %v5608_v9 }
 0x224   :  { %822 = vrot.lane.b32.xlu1 %v801_v41, %s5027_s8  ;;  %v803_v55 = vmul.f32 %v787_v44, %v755_v3  ;;  %v1066_v33 = vld [vmem:[%s7950_s4 + $0x30] sm:$0xff]  ;;  %v3897_v41 = vld [vmem:[%s7948_s2 + $0x18] sm:$0xff]  ;;  %v3898_v40 = vld [vmem:[%s7948_s2 + $0x20] sm:$0xff] }
 0x225   :  { %824 = vrot.lane.b32.xlu0 %v802_v0, %s5027_s8  ;;  %v3896_v30 = vld [vmem:[%s7948_s2 + $0x10] sm:$0xff]  ;;  %v3743_v0 = vmul.f32 %v5614_v22, %v5614_v22 }
 0x228   :  { %826 = vrot.lane.b32.xlu1 %v803_v55, %s5027_s8  ;;  %v3894_v55 = vld [vmem:[%s7948_s2] sm:$0xff] }
 0x229   :  { %1076 = vrot.lane.b32.xlu0 %v1060_v47, %s5028_s24  ;;  %4549 = vrcp.f32 %v3894_v55  ;;  %v3745_v47 = vmul.f32 %v5611_v18, %v5611_v18  ;;  %v3747_v55 = vmul.f32 %v5627_v13, %v5627_v13 }
 0x22a   :  { %4551 = vrcp.f32 %v3895_v12  ;;  %v3749_v12 = vmul.f32 %v5634_v58, %v5634_v58 }
 0x22b   :  { %4553 = vrcp.f32 %v3896_v30 }
 0x22c   :  { %1078 = vrot.lane.b32.xlu1 %v1061_v34, %s5028_s24  ;;  %4555 = vrcp.f32 %v3897_v41 }
 0x22d   :  { %1080 = vrot.lane.b32.xlu0 %v1062_v7, %s5028_s24  ;;  %4557 = vrcp.f32 %v3898_v40  ;;  %v3746_v7 = vmul.f32 %v5619_v63, %v5619_v63 }
 0x230   :  { %1082 = vrot.lane.b32.xlu1 %v1063_v5, %s5028_s24 }
 0x231   :  { %1084 = vrot.lane.b32.xlu0 %v1064_v24, %s5028_s24 }
 0x234   :  { %1086 = vrot.lane.b32.xlu1 %v1065_v11, %s5028_s24  ;;  %v3748_v11 = vmul.f32 %v5632_v29, %v5632_v29 }
 0x235   :  { %1088 = vrot.lane.b32.xlu0 %v1066_v33, %s5028_s24  ;;  %v4351_v33 = vpop.f32.mrf.mxu1 }
 0x236   :  { %v5751_v44 = vpop.eup %4549 }
 0x237   :  { %v5761_v3 = vpop.eup %4551 }
 0x238   :  { %1090 = vrot.lane.b32.xlu1 %v1067_v10, %s5028_s24  ;;  %v5768_v34 = vpop.eup %4553  ;;  %v949_v10 = vpop.f32.mrf.mxu1 }
 0x239   :  { %3762 = vrot.lane.b32.xlu0 %v3744_v52, %s5026_s26  ;;  %8118 = vst [vmem:[#allocation30_spill] sm:$0xff] %v5768_v34  ;;  %v5775_v5 = vpop.eup %4555 }
 0x23a   :  { %v5782_v24 = vpop.eup %4557  ;;  %v4352_v30 = vpop.f32.mrf.mxu1 }
 0x23b   :  { %8119 = vst [vmem:[#allocation31_spill] sm:$0xff] %v5782_v24 }
 0x23c   :  { %3758 = vrot.lane.b32.xlu1 %v3742_v1, %s5026_s26  ;;  %v952_v52 = vpop.f32.mrf.mxu1  ;;  %v4201_v1 = vld [vmem:[%s7956_s10] ss:$0 sm:$0xff]  ;;  %s5029_s10 = smov 127  }
 0x23d   :  { %3926 = vrot.lane.b32.xlu0 %v5751_v44, %s5028_s24  ;;  %v5803_v62 = vadd.f32 %v4201_v1, %v952_v52 }
 0x23e   :  { %v4355_v41 = vpop.f32.mrf.mxu1 }
 0x23f   :  { %v5806_v23 = vadd.f32 %v4355_v41, %v4201_v1 }
 0x240   :  { %3760 = vrot.lane.b32.xlu1 %v3743_v0, %s5026_s26  ;;  %v965_v40 = vpop.f32.mrf.mxu1  ;;  %v5795_v0 = vadd.f32 %v4351_v33, %v4201_v1  ;;  %v982_v33 = vmul.f32 1.442695, %v5803_v62 }
 0x241   :  { %3928 = vrot.lane.b32.xlu0 %v5761_v3, %s5028_s24  ;;  %v992_v17 = vmul.f32 1.442695, %v5806_v23 }
 0x244   :  { %3764 = vrot.lane.b32.xlu1 %v3745_v47, %s5026_s26  ;;  %v5797_v47 = vadd.f32 %v4352_v30, %v4201_v1 }
 0x245   :  { %3930 = vrot.lane.b32.xlu0 %v5768_v34, %s5028_s24 }
 0x248   :  { %3766 = vrot.lane.b32.xlu1 %v3746_v7, %s5026_s26  ;;  %v4356_v7 = vpop.f32.mrf.mxu1 }
 0x249   :  { %3932 = vrot.lane.b32.xlu0 %v5775_v5, %s5028_s24  ;;  %v5816_v60 = vadd.f32 %v4356_v7, %v4201_v1 }
 0x24a   :  { %v968_v2 = vpop.f32.mrf.mxu1 }
 0x24b   :  { %v5809_v30 = vadd.f32 %v4201_v1, %v968_v2 }
 0x24c   :  { %3768 = vrot.lane.b32.xlu1 %v3747_v55, %s5026_s26  ;;  %v984_v55 = vmul.f32 1.442695, %v5795_v0 }
 0x24d   :  { %3934 = vrot.lane.b32.xlu0 %v5782_v24, %s5028_s24  ;;  %v990_v52 = vmul.f32 1.442695, %v5809_v30 }
 0x24e   :  { %4559 = vpow2.f32 %v984_v55 }
 0x250   :  { %3770 = vrot.lane.b32.xlu1 %v3748_v11, %s5026_s26  ;;  %v5800_v11 = vadd.f32 %v4201_v1, %v949_v10  ;;  %v5812_v10 = vadd.f32 %v4201_v1, %v965_v40 }
 0x252   :  { %v980_v4 = vmul.f32 1.442695, %v5800_v11  ;;  %v988_v55 = vmul.f32 1.442695, %v5812_v10 }
 0x254   :  { %3772 = vrot.lane.b32.xlu1 %v3749_v12, %s5026_s26  ;;  %v986_v12 = vmul.f32 1.442695, %v5797_v47 }
 0x256   :  { %4561 = vpow2.f32 %v986_v12  ;;  %v994_v12 = vmul.f32 1.442695, %v5816_v60 }
 0x257   :  { %4563 = vpow2.f32 %v980_v4 }
 0x258   :  { %4565 = vpow2.f32 %v982_v33 }
 0x259   :  { %4567 = vpow2.f32 %v992_v17 }
 0x25a   :  { %4569 = vpow2.f32 %v990_v52 }
 0x25b   :  { %4571 = vpow2.f32 %v988_v55  ;;  %v4560_v2 = vpop.eup %4559 }
 0x25c   :  { %v5821_v51 = vadd.f32 0.0001, %v4560_v2  ;;  %4573 = vpow2.f32 %v994_v12 }
 0x25e   :  { %8120 = vst [vmem:[#allocation32_spill] sm:$0xff] %v5821_v51  ;;  %4575 = vrsqrt.f32 %v5821_v51  ;;  %vm1020_vm1 = vcmp.eq.f32.partialorder %v5821_v51, inf  ;;  %v1023_v56 = vand.u32 2147483648, %v5821_v51  ;;  %vm1022_vm3 = vcmp.eq.f32.partialorder %v5821_v51, 0.0 }
 0x263   :  { %v4562_v46 = vpop.eup %4561 }
 0x264   :  { %v4564_v1 = vpop.eup %4563  ;;  %v5823_v14 = vadd.f32 0.0001, %v4562_v46 }
 0x266   :  { %8121 = vst [vmem:[#allocation33_spill] sm:$0xff] %v5823_v14  ;;  %4577 = vrsqrt.f32 %v5823_v14  ;;  %vm1027_vm2 = vcmp.eq.f32.partialorder %v5823_v14, inf  ;;  %vm1029_vm6 = vcmp.eq.f32.partialorder %v5823_v14, 0.0 }
 0x281   :  { %v813_v41 = vpop.permute.xlu0 %812 }
 0x282   :  { %v836_v4 = vadd.f32 %v813_v41, %v5608_v9  ;;  %v4566_v9 = vpop.eup %4565  ;;  %v5828_v41 = vadd.f32 0.0001, %v4564_v1 }
 0x283   :  { %v5831_v2 = vadd.f32 0.0001, %v4566_v9 }
 0x284   :  { %4579 = vrsqrt.f32 %v5828_v41  ;;  %vm1006_vm4 = vcmp.eq.f32.partialorder %v5828_v41, inf  ;;  %vm1008_vm5 = vcmp.eq.f32.partialorder %v5828_v41, 0.0 }
 0x285   :  { %v815_v35 = vpop.permute.xlu1 %814  ;;  %v817_v33 = vpop.permute.xlu0 %816  ;;  %4581 = vrsqrt.f32 %v5831_v2  ;;  %vm1013_vm7 = vcmp.eq.f32.partialorder %v5831_v2, inf  ;;  %vm1015_vm9 = vcmp.eq.f32.partialorder %v5831_v2, 0.0 }
 0x286   :  { %v837_v40 = vadd.f32 %v815_v35, %v5614_v22  ;;  %v838_v52 = vadd.f32 %v817_v33, %v5605_v26  ;;  %v4568_v22 = vpop.eup %4567 }
 0x287   :  { %v4570_v46 = vpop.eup %4569  ;;  %v5835_v12 = vadd.f32 0.0001, %v4568_v22 }
 0x288   :  { %v1148_v17 = vpack.c.bf16 %v837_v40, %v836_v4  ;;  %v4572_v26 = vpop.eup %4571 }
 0x289   :  { %v819_v7 = vpop.permute.xlu1 %818  ;;  %8122 = vst [vmem:[#allocation34_spill] sm:$0xff] %v5835_v12  ;;  %v5841_v4 = vadd.f32 0.0001, %v4572_v26  ;;  %4583 = vrsqrt.f32 %v5835_v12  ;;  %v4574_v40 = vpop.eup %4573  ;;  %vm1048_vm8 = vcmp.eq.f32.partialorder %v5835_v12, inf  ;;  %vm1050_vm11 = vcmp.eq.f32.partialorder %v5835_v12, 0.0 }
 0x28a   :  { %v839_v55 = vadd.f32 %v819_v7, %v5611_v18  ;;  %4359 = vmatprep.mubr.msk.bf16.mxu1 %vm1167_vm0, %v1148_v17  ;;  %v5838_v18 = vadd.f32 0.0001, %v4570_v46  ;;  %v5845_v17 = vadd.f32 0.0001, %v4574_v40  ;;  %v4576_v1 = vpop.eup %4575 }
 0x28b   :  { %8124 = vst [vmem:[#allocation36_spill] sm:$0xff] %v5841_v4  ;;  %v4578_v9 = vpop.eup %4577  ;;  %v1019_v46 = vmul.f32 %v4576_v1, %v5821_v51  ;;  %vm1034_vm12 = vcmp.eq.f32.partialorder %v5841_v4, inf  ;;  %vm1036_vm14 = vcmp.eq.f32.partialorder %v5841_v4, 0.0 }
 0x28c   :  { %v1149_v35 = vpack.c.bf16 %v839_v55, %v838_v52  ;;  %8123 = vst [vmem:[#allocation35_spill] sm:$0xff] %v5838_v18  ;;  %4585 = vrsqrt.f32 %v5838_v18  ;;  %8125 = vst [vmem:[#allocation37_spill] sm:$0xff] %v5845_v17  ;;  %v1026_v37 = vmul.f32 %v4578_v9, %v5823_v14  ;;  %vm1041_vm10 = vcmp.eq.f32.partialorder %v5838_v18, inf }
 0x28d   :  { %4587 = vrsqrt.f32 %v5841_v4  ;;  %v1021_v1 = vsel %vm1020_vm1, %v5821_v51, %v1019_v46  ;;  %vm1043_vm13 = vcmp.eq.f32.partialorder %v5838_v18, 0.0  ;;  %vm1055_vm15 = vcmp.eq.f32.partialorder %v5845_v17, inf }
 0x28e   :  { %4360 = vmatmul.mubr.msk.bf16.vlgmr.msra.gmra.mxu1 %vm1167_vm0, %v1149_v35  ;;  %4589 = vrsqrt.f32 %v5845_v17  ;;  %vm1057_vm1 = vcmp.eq.f32.partialorder %v5845_v17, 0.0 }
 0x291   :  { %v4580_v26 = vpop.eup %4579 }
 0x292   :  { %v821_v33 = vpop.permute.xlu0 %820 }
 0x293   :  { %v840_v52 = vadd.f32 %v821_v33, %v5619_v63  ;;  %v4582_v63 = vpop.eup %4581 }
 0x296   :  { %v823_v7 = vpop.permute.xlu1 %822 }
 0x297   :  { %v841_v55 = vadd.f32 %v823_v7, %v5627_v13  ;;  %v825_v35 = vpop.permute.xlu0 %824  ;;  %v1005_v7 = vmul.f32 %v4580_v26, %v5828_v41 }
 0x298   :  { %v842_v40 = vadd.f32 %v825_v35, %v5632_v29  ;;  %v1028_v29 = vsel %vm1027_vm2, %v5823_v14, %v1026_v37  ;;  %v1030_v35 = vand.u32 2147483648, %v5823_v14 }
 0x299   :  { %v1150_v22 = vpack.c.bf16 %v841_v55, %v840_v52  ;;  %v4584_v52 = vpop.eup %4583 }
 0x29a   :  { %v827_v48 = vpop.permute.xlu1 %826  ;;  %v1047_v26 = vmul.f32 %v4584_v52, %v5835_v12  ;;  %v1031_v37 = vsel %vm1029_vm6, %v1030_v35, %v1028_v29  ;;  %v1051_v29 = vand.u32 2147483648, %v5835_v12 }
 0x29b   :  { %v843_v59 = vadd.f32 %v827_v48, %v5634_v58  ;;  %4363 = vmatprep.mubr.msk.bf16.mxu1 %vm1167_vm0, %v1150_v22  ;;  %v1077_v33 = vpop.permute.xlu0 %1076  ;;  %v1012_v48 = vmul.f32 %v4582_v63, %v5831_v2  ;;  %v4586_v58 = vpop.eup %4585  ;;  %v1007_v22 = vsel %vm1006_vm4, %v5828_v41, %v1005_v7  ;;  %v1009_v63 = vand.u32 2147483648, %v5828_v41 }
 0x29d   :  { %v1151_v13 = vpack.c.bf16 %v843_v59, %v842_v40  ;;  %v1024_v59 = vsel %vm1022_vm3, %v1023_v56, %v1021_v1  ;;  %v4588_v40 = vpop.eup %4587  ;;  %v1014_v56 = vsel %vm1013_vm7, %v5831_v2, %v1012_v48  ;;  %v1040_v1 = vmul.f32 %v4586_v58, %v5838_v18 }
 0x29e   :  { %v1079_v55 = vpop.permute.xlu1 %1078  ;;  %v1010_v52 = vsel %vm1008_vm5, %v1009_v63, %v1007_v22  ;;  %v1033_v48 = vmul.f32 %v4588_v40, %v5841_v4  ;;  %v4590_v58 = vpop.eup %4589  ;;  %v1044_v63 = vand.u32 2147483648, %v5838_v18  ;;  %v1037_v40 = vand.u32 2147483648, %v5841_v4 }
 0x29f   :  { %4364 = vmatmul.mubr.msk.bf16.gmra.mxu1 %vm1167_vm0, %v1151_v13  ;;  %v1081_v9 = vpop.permute.xlu0 %1080  ;;  %v1100_v35 = vmul.f32 %v1077_v33, %v1010_v52  ;;  %v1042_v33 = vsel %vm1041_vm10, %v5838_v18, %v1040_v1 }
 0x2a0   :  { %v1102_v46 = vmul.f32 %v1081_v9, %v1024_v59  ;;  %v1016_v59 = vand.u32 2147483648, %v5831_v2  ;;  %v1035_v52 = vsel %vm1034_vm12, %v5841_v4, %v1033_v48 }
 0x2a2   :  { %v1083_v13 = vpop.permute.xlu1 %1082  ;;  %1120 = vrot.lane.b32.xlu0 %v1102_v46, %s5029_s10  ;;  %v1049_v46 = vsel %vm1048_vm8, %v5835_v12, %v1047_v26  ;;  %v1017_v22 = vsel %vm1015_vm9, %v1016_v59, %v1014_v56  ;;  %v1045_v59 = vsel %vm1043_vm13, %v1044_v63, %v1042_v33  ;;  %v4461_v33 = vld [vmem:[#allocation2 + $0x70] ss:$8 sps:$4 sm:$0xff]  }
 0x2a3   :  { %v1103_v7 = vmul.f32 %v1083_v13, %v1031_v37  ;;  %v1085_v9 = vpop.permute.xlu0 %1084  ;;  %v1101_v37 = vmul.f32 %v1079_v55, %v1017_v22  ;;  %v1052_v13 = vsel %vm1050_vm11, %v1051_v29, %v1049_v46  ;;  %v1054_v55 = vmul.f32 %v4590_v58, %v5845_v17 }
 0x2a4   :  { %v1038_v29 = vsel %vm1036_vm14, %v1037_v40, %v1035_v52  ;;  %v1058_v46 = vand.u32 2147483648, %v5845_v17  ;;  %v4463_v40 = vld [vmem:[#allocation2 + $0x74] ss:$8 sps:$4 sm:$0xff]   ;;  %v4472_v52 = vld [vmem:[#allocation2 + $0x44] ss:$8 sps:$4 sm:$0xff]  }
 0x2a5   :  { %1122 = vrot.lane.b32.xlu1 %v1103_v7, %s5029_s10  ;;  %v1104_v48 = vmul.f32 %v1085_v9, %v1038_v29  ;;  %v1056_v22 = vsel %vm1055_vm15, %v5845_v17, %v1054_v55  ;;  %1365 = vmatprep.subr.bf16.mxu0 %v4463_v40  ;;  %v4464_v9 = vld [vmem:[#allocation2 + $0x60] ss:$8 sps:$4 sm:$0xff]   ;;  %v4475_v55 = vld [vmem:[#allocation2 + $0x34] ss:$8 sps:$4 sm:$0xff]  }
 0x2a6   :  { %1116 = vrot.lane.b32.xlu0 %v1100_v35, %s5029_s10  ;;  %v1087_v26 = vpop.permute.xlu1 %1086  ;;  %v7985_v35 = vmov 0   ;;  %v1059_v63 = vsel %vm1057_vm1, %v1058_v46, %v1056_v22  ;;  %4367 = vmatprep.subr.bf16.mxu1 %v4463_v40  ;;  %v4476_v29 = vld [vmem:[#allocation2 + $0x20] ss:$8 sps:$4 sm:$0xff]   ;;  %v4479_v46 = vld [vmem:[#allocation2 + $0x10] ss:$8 sps:$4 sm:$0xff]  }
 0x2a7   :  { %v1089_v7 = vpop.permute.xlu0 %1088  ;;  %v1105_v1 = vmul.f32 %v1087_v26, %v1045_v59  ;;  %4393 = vset.pattern.permute.xlu1 %v7985_v35  ;;  %4392 = vset.pattern.permute.xlu0 %v7985_v35  ;;  %v4466_v26 = vld [vmem:[#allocation2 + $0x64] ss:$8 sps:$4 sm:$0xff]   ;;  %v4473_v59 = vld [vmem:[#allocation2 + $0x30] ss:$8 sps:$4 sm:$0xff]  }
 0x2a8   :  { %v1106_v56 = vmul.f32 %v1089_v7, %v1052_v13  ;;  %1397 = vmatprep.mubr.bf16.mxu0 %v7985_v35  ;;  %1427 = vmatprep.mubr.bf16.mxu1 %v7985_v35  ;;  %v4469_v13 = vld [vmem:[#allocation2 + $0x54] ss:$8 sps:$4 sm:$0xff]   ;;  %v4467_v7 = vld [vmem:[#allocation2 + $0x50] ss:$8 sps:$4 sm:$0xff]   ;;  %v4484_v22 = vld [vmem:[#allocation2 + $0x4] ss:$8 sps:$4 sm:$0xff]  }
 0x2a9   :  { %1118 = vrot.lane.b32.xlu1 %v1101_v37, %s5029_s10  ;;  %1366 = vmatpush1.bf16.msra.mxu0 %v4461_v33 }
 0x2aa   :  { %1128 = vrot.lane.b32.xlu0 %v1106_v56, %s5029_s10  ;;  %v1091_v58 = vpop.permute.xlu1 %1090  ;;  %4375 = vmatpush1.bf16.msra.mxu1 %v4461_v33  ;;  %v4470_v56 = vld [vmem:[#allocation2 + $0x40] ss:$8 sps:$4 sm:$0xff]  }
 0x2ab   :  { %v1107_v37 = vmul.f32 %v1091_v58, %v1059_v63  ;;  %1367 = vmatprep.subr.bf16.mxu0 %v4466_v26  ;;  %4368 = vmatprep.subr.bf16.mxu1 %v4466_v26  ;;  %v4482_v58 = vld [vmem:[#allocation2] ss:$8 sps:$4 sm:$0xff]  }
 0x2ad   :  { %1126 = vrot.lane.b32.xlu1 %v1105_v1, %s5029_s10  ;;  %1368 = vmatpush1.bf16.msra.mxu0 %v4464_v9  ;;  %v4478_v1 = vld [vmem:[#allocation2 + $0x24] ss:$8 sps:$4 sm:$0xff]  }
 0x2ae   :  { %1124 = vrot.lane.b32.xlu0 %v1104_v48, %s5029_s10  ;;  %4376 = vmatpush1.bf16.msra.mxu1 %v4464_v9  ;;  %v4481_v48 = vld [vmem:[#allocation2 + $0x14] ss:$8 sps:$4 sm:$0xff]   ;;  %v5911_v63 = vpop.permute.xlu1 %3758 }
 0x2af   :  { %1369 = vmatprep.subr.bf16.mxu0 %v4469_v13  ;;  %4369 = vmatprep.subr.bf16.mxu1 %v4469_v13 }
 0x2b1   :  { %1370 = vmatpush1.bf16.msra.mxu0 %v4467_v7 }
 0x2b2   :  { %1130 = vrot.lane.b32.xlu0 %v1107_v37, %s5029_s10  ;;  %4377 = vmatpush1.bf16.msra.mxu1 %v4467_v7  ;;  %v5913_v37 = vpop.permute.xlu0 %3762  ;;  %v5915_v33 = vpop.permute.xlu1 %3760 }
 0x2b3   :  { %1371 = vmatprep.subr.bf16.mxu0 %v4472_v52  ;;  %4370 = vmatprep.subr.bf16.mxu1 %v4472_v52 }
 0x2b5   :  { %1372 = vmatpush1.bf16.msra.mxu0 %v4470_v56 }
 0x2b6   :  { %4378 = vmatpush1.bf16.msra.mxu1 %v4470_v56  ;;  %1373 = vmatprep.subr.bf16.mxu0 %v4475_v55  ;;  %v5917_v40 = vpop.permute.xlu0 %3926  ;;  %v5919_v26 = vpop.permute.xlu1 %3764 }
 0x2b7   :  { %4371 = vmatprep.subr.bf16.mxu1 %v4475_v55  ;;  %8126 = vst [vmem:[#allocation38_spill] sm:$0xff] %v5917_v40 }
 0x2b9   :  { %1374 = vmatpush1.bf16.msra.mxu0 %v4473_v59 }
 0x2ba   :  { %4379 = vmatpush1.bf16.msra.mxu1 %v4473_v59  ;;  %1375 = vmatprep.subr.bf16.mxu0 %v4478_v1  ;;  %v5921_v9 = vpop.permute.xlu0 %3928  ;;  %v5923_v13 = vpop.permute.xlu1 %3766 }
 0x2bb   :  { %4372 = vmatprep.subr.bf16.mxu1 %v4478_v1 }
 0x2bd   :  { %1376 = vmatpush1.bf16.msra.mxu0 %v4476_v29 }
 0x2be   :  { %4380 = vmatpush1.bf16.msra.mxu1 %v4476_v29  ;;  %1377 = vmatprep.subr.bf16.mxu0 %v4481_v48  ;;  %v5925_v7 = vpop.permute.xlu0 %3930  ;;  %v5927_v52 = vpop.permute.xlu1 %3768 }
 0x2bf   :  { %4373 = vmatprep.subr.bf16.mxu1 %v4481_v48  ;;  %8127 = vst [vmem:[#allocation39_spill] sm:$0xff] %v5925_v7 }
 0x2c1   :  { %1378 = vmatpush1.bf16.msra.mxu0 %v4479_v46 }
 0x2c2   :  { %4381 = vmatpush1.bf16.msra.mxu1 %v4479_v46  ;;  %1379 = vmatprep.subr.bf16.mxu0 %v4484_v22  ;;  %v5929_v56 = vpop.permute.xlu0 %3932  ;;  %v5931_v55 = vpop.permute.xlu1 %3770 }
 0x2c3   :  { %4374 = vmatprep.subr.bf16.mxu1 %v4484_v22  ;;  %8128 = vst [vmem:[#allocation40_spill] sm:$0xff] %v5929_v56 }
 0x2c5   :  { %1380 = vmatpush1.bf16.msra.mxu0 %v4482_v58 }
 0x2c6   :  { %4382 = vmatpush1.bf16.msra.mxu1 %v4482_v58  ;;  %v5933_v59 = vpop.permute.xlu0 %3934  ;;  %v5935_v1 = vpop.permute.xlu1 %3772 }
 0x2c7   :  { %8129 = vst [vmem:[#allocation41_spill] sm:$0xff] %v5933_v59 }
 0x314   :  { %v1121_v29 = vpop.permute.xlu0 %1120 }
 0x315   :  { %v1142_v46 = vadd.f32 %v1121_v29, %v5795_v0 }
 0x317   :  { %v1123_v48 = vpop.permute.xlu1 %1122  ;;  %v1562_v22 = vmul.f32 1.442695, %v1142_v46 }
 0x318   :  { %v1117_v58 = vpop.permute.xlu0 %1116  ;;  %v1143_v35 = vadd.f32 %v1123_v48, %v5797_v47 }
 0x319   :  { %4591 = vpow2.f32 %v1562_v22  ;;  %v1140_v31 = vadd.f32 %v1117_v58, %v5800_v11 }
 0x31a   :  { %v1564_v45 = vmul.f32 1.442695, %v1143_v35 }
 0x31b   :  { %v1119_v17 = vpop.permute.xlu1 %1118  ;;  %v1558_v12 = vmul.f32 1.442695, %v1140_v31 }
 0x31c   :  { %v1129_v50 = vpop.permute.xlu0 %1128  ;;  %v1141_v28 = vadd.f32 %v1119_v17, %v5803_v62 }
 0x31d   :  { %4593 = vpow2.f32 %v1558_v12  ;;  %v1146_v18 = vadd.f32 %v1129_v50, %v5806_v23 }
 0x31e   :  { %4595 = vpow2.f32 %v1564_v45  ;;  %v1560_v29 = vmul.f32 1.442695, %v1141_v28 }
 0x31f   :  { %v1127_v4 = vpop.permute.xlu1 %1126  ;;  %v1570_v46 = vmul.f32 1.442695, %v1146_v18 }
 0x320   :  { %v1125_v59 = vpop.permute.xlu0 %1124  ;;  %v1145_v22 = vadd.f32 %v1127_v4, %v5809_v30  ;;  %4597 = vpow2.f32 %v1560_v29 }
 0x321   :  { %v1144_v48 = vadd.f32 %v1125_v59, %v5812_v10  ;;  %4599 = vpow2.f32 %v1570_v46 }
 0x322   :  { %v1568_v12 = vmul.f32 1.442695, %v1145_v22  ;;  %v4210_v22 = vld [vmem:[%s7958_s12] ss:$0 sm:$0xff] }
 0x323   :  { %v1566_v17 = vmul.f32 1.442695, %v1144_v48 }
 0x324   :  { %v1131_v24 = vpop.permute.xlu0 %1130 }
 0x325   :  { %v1147_v31 = vadd.f32 %v1131_v24, %v5816_v60 }
 0x326   :  { %v4592_v58 = vpop.eup %4591 }
 0x327   :  { %v1572_v35 = vmul.f32 1.442695, %v1147_v31  ;;  %1586 = vperm.xlu0 %4392, %v4592_v58  }
 0x329   :  { %4601 = vpow2.f32 %v1572_v35 }
 0x32a   :  { %v4594_v50 = vpop.eup %4593  ;;  %4603 = vpow2.f32 %v1568_v12 }
 0x32b   :  { %1576 = vperm.xlu1 %4393, %v4594_v50   ;;  %4605 = vpow2.f32 %v1566_v17  ;;  %v4596_v28 = vpop.eup %4595 }
 0x32c   :  { %4607 = vlog2.f32 %v5630_v8 }
 0x32d   :  { %v4598_v45 = vpop.eup %4597  ;;  %4609 = vlog2.f32 %v5670_v39 }
 0x32e   :  { %v4600_v18 = vpop.eup %4599 }
 0x32f   :  { %1591 = vperm.xlu1 %4393, %v4596_v28  }
 0x333   :  { %1581 = vperm.xlu1 %4393, %v4598_v45  }
 0x336   :  { %v4602_v4 = vpop.eup %4601 }
 0x337   :  { %1606 = vperm.xlu1 %4393, %v4600_v18   ;;  %1611 = vperm.xlu0 %4392, %v4602_v4   ;;  %v4604_v24 = vpop.eup %4603  ;;  %v8130_v18 = vmov 0  }
 0x338   :  { %v4606_v59 = vpop.eup %4605 }
 0x33b   :  { %1596 = vperm.xlu1 %4393, %v4606_v59   ;;  %1601 = vperm.xlu0 %4392, %v4604_v24  }
 0x34e   :  { %v4361_v29 = vpop.f32.mrf.mxu1 }
 0x34f   :  { %v1223_v45 = vadd.f32 %v4361_v29, %v4210_v22 }
 0x350   :  { %v1214_v46 = vpop.f32.mrf.mxu1 }
 0x351   :  { %v1215_v31 = vadd.f32 %v4210_v22, %v1214_v46  ;;  %v1247_v24 = vmax.f32 %v1223_v45, 0.0 }
 0x352   :  { %v4362_v48 = vpop.f32.mrf.mxu1 }
 0x353   :  { %v1245_v12 = vmax.f32 %v1215_v31, 0.0  ;;  %v1226_v50 = vadd.f32 %v4362_v48, %v4210_v22 }
 0x354   :  { %v1217_v58 = vpop.f32.mrf.mxu1 }
 0x355   :  { %v1218_v35 = vadd.f32 %v4210_v22, %v1217_v58  ;;  %v1248_v4 = vmax.f32 %v1226_v50, 0.0  ;;  %v1273_v50 = vld [vmem:[%s7960_s14] sm:$0x3] }
 0x356   :  { %v5954_v45 = vrot.slane %v1273_v50, %v5569_v49 }
 0x357   :  { %v1246_v17 = vmax.f32 %v1218_v35, 0.0  ;;  %v1254_v59 = vpack.c.bf16 %v1248_v4, %v1247_v24 }
 0x359   :  { %v1253_v28 = vpack.c.bf16 %v1246_v17, %v1245_v12 }
 0x35b   :  { %1398 = vmatmul.mubr.bf16.vlgmr.msra.gmra.mxu0 %v1253_v28 }
 0x35c   :  { %1407 = vmatprep.mubr.bf16.mxu0 %v8130_v18 }
 0x35f   :  { %v4365_v56 = vpop.f32.mrf.mxu1 }
 0x360   :  { %v1239_v34 = vadd.f32 %v4365_v56, %v4210_v22 }
 0x361   :  { %v1230_v14 = vpop.f32.mrf.mxu1 }
 0x362   :  { %v1231_v7 = vadd.f32 %v4210_v22, %v1230_v14  ;;  %v1251_v35 = vmax.f32 %v1239_v34, 0.0  ;;  %v5957_v14 = vrot.slane %v1273_v50, %v5578_v25 }
 0x363   :  { %1408 = vmatmul.mubr.bf16.gmra.mxu0 %v1254_v59  ;;  %v4366_v46 = vpop.f32.mrf.mxu1 }
 0x364   :  { %1417 = vmatprep.mubr.bf16.mxu0 %v8130_v18  ;;  %v1242_v58 = vadd.f32 %v4366_v46, %v4210_v22  ;;  %v1249_v29 = vmax.f32 %v1231_v7, 0.0 }
 0x365   :  { %v1233_v31 = vpop.f32.mrf.mxu1 }
 0x366   :  { %v1252_v48 = vmax.f32 %v1242_v58, 0.0  ;;  %v1234_v12 = vadd.f32 %v4210_v22, %v1233_v31 }
 0x368   :  { %v1256_v17 = vpack.c.bf16 %v1252_v48, %v1251_v35  ;;  %v1250_v28 = vmax.f32 %v1234_v12, 0.0 }
 0x36a   :  { %v1255_v51 = vpack.c.bf16 %v1250_v28, %v1249_v29  ;;  %1428 = vmatmul.mubr.bf16.vlgmr.msra.gmra.mxu1 %v1256_v17 }
 0x36c   :  { %1418 = vmatmul.mubr.bf16.gmra.mxu0 %v1255_v51 }
 0x41b   :  { %v1399_v56 = vpop.f32.mrf.mxu0 }
 0x41c   :  { %v5960_v22 = vadd.f32 %v1399_v56, %v5954_v45 }
 0x41d   :  { %v1401_v34 = vpop.f32.mrf.mxu0 }
 0x41e   :  { %v5963_v7 = vadd.f32 %v1401_v34, %v5957_v14 }
 0x41f   :  { %v1403_v18 = vpop.f32.mrf.mxu0 }
 0x420   :  { %v1438_v51 = vmax.f32 %v5960_v22, %v5963_v7  ;;  %v5968_v24 = vadd.f32 %v1403_v18, %v5954_v45 }
 0x421   :  { %v1405_v4 = vpop.f32.mrf.mxu0 }
 0x422   :  { %v5971_v59 = vadd.f32 %v1405_v4, %v5957_v14  ;;  %1439 = vmax.xlane.f32.xlu1 %v1438_v51 }
 0x423   :  { %v1409_v46 = vpop.f32.mrf.mxu0 }
 0x424   :  { %v1441_v58 = vmax.f32 %v5968_v24, %v5971_v59  ;;  %v5976_v35 = vadd.f32 %v1409_v46, %v5954_v45 }
 0x425   :  { %v1411_v31 = vpop.f32.mrf.mxu0 }
 0x426   :  { %v5979_v48 = vadd.f32 %v1411_v31, %v5957_v14  ;;  %1442 = vmax.xlane.f32.xlu0 %v1441_v58  ;;  %v3783_v58 = vadd.f32 %v5915_v33, %v5630_v8 }
 0x427   :  { %v1413_v12 = vpop.f32.mrf.mxu0 }
 0x428   :  { %v1444_v29 = vmax.f32 %v5976_v35, %v5979_v48  ;;  %v5985_v28 = vadd.f32 %v1413_v12, %v5954_v45 }
 0x429   :  { %v1415_v17 = vpop.f32.mrf.mxu0 }
 0x42a   :  { %v5988_v50 = vadd.f32 %v1415_v17, %v5957_v14  ;;  %1445 = vmax.xlane.f32.xlu0 %v1444_v29  ;;  %v1429_v34 = vpop.f32.mrf.mxu1  ;;  %v4608_v17 = vpop.eup %4607 }
 0x42b   :  { %v5994_v4 = vadd.f32 %v1429_v34, %v5954_v45  ;;  %v4265_v34 = vadd.f32 -1.0, %v3783_v58  ;;  %v3801_v8 = vmul.f32 0.6931472, %v4608_v17  ;;  %v4610_v33 = vpop.eup %4609  ;;  %v3900_v17 = vld [vmem:[%s7948_s2 + $0x30] sm:$0xff] }
 0x42c   :  { %v1447_v56 = vmax.f32 %v5985_v28, %v5988_v50  ;;  %v1419_v18 = vpop.f32.mrf.mxu0  ;;  %v1431_v51 = vpop.f32.mrf.mxu1  ;;  %v3813_v40 = vmul.f32 0.6931472, %v4610_v33 }
 0x42d   :  { %v5997_v46 = vadd.f32 %v1431_v51, %v5957_v14  ;;  %v3789_v51 = vadd.f32 %v5935_v1, %v5670_v39  ;;  %v3899_v39 = vld [vmem:[%s7948_s2 + $0x28] sm:$0xff] }
 0x42e   :  { %1448 = vmax.xlane.f32.xlu1 %v1447_v56  ;;  %v1421_v31 = vpop.f32.mrf.mxu0  ;;  %v6007_v56 = vadd.f32 %v1419_v18, %v5954_v45  ;;  %v3959_v18 = vsub.f32 %v5803_v62, %v3887_v57  ;;  %4611 = vrcp.f32 %v3899_v39  ;;  %v3782_v62 = vadd.f32 %v5911_v63, %v5621_v19 }
 0x42f   :  { %v6002_v12 = vadd.f32 %v1421_v31, %v5957_v14  ;;  %v1456_v29 = vmax.f32 %v5994_v4, %v5997_v46  ;;  %v3815_v31 = vsub.f32 %v4265_v34, %v3801_v8  ;;  %v4271_v61 = vadd.f32 -1.0, %v3789_v51 }
 0x430   :  { %v3967_v1 = vmul.f32 %v3959_v18, %v3959_v18  ;;  %4613 = vlog2.f32 %v5621_v19  ;;  %v3784_v34 = vadd.f32 %v5913_v37, %v5617_v27  ;;  %v4264_v51 = vadd.f32 -1.0, %v3782_v62 }
 0x431   :  { %1457 = vmax.xlane.f32.xlu0 %v1456_v29  ;;  %v1450_v6 = vmax.f32 %v6007_v56, %v6002_v12  ;;  %v3821_v29 = vsub.f32 %v4271_v61, %v3813_v40  ;;  %v3823_v58 = vmul.f32 0.5, %v3815_v31  ;;  %4615 = vrcp.f32 %v3900_v17  ;;  %v3901_v61 = vld [vmem:[%s7948_s2 + $0x38] sm:$0xff] }
 0x432   :  { %v3975_v57 = vmul.f32 %v5761_v3, %v3967_v1  ;;  %4617 = vlog2.f32 %v5617_v27  ;;  %v4266_v63 = vadd.f32 -1.0, %v3784_v34  ;;  %v3785_v18 = vadd.f32 %v5919_v26, %v5625_v21  ;;  %v1433_v34 = vpop.f32.mrf.mxu1 }
 0x433   :  { %4619 = vrcp.f32 %v3901_v61  ;;  %v3786_v1 = vadd.f32 %v5923_v13, %v5646_v43  ;;  %v3787_v62 = vadd.f32 %v5927_v52, %v5661_v53  ;;  %v3886_v52 = vld [vmem:[%s8131_s18] sm:$0xff] }
 0x434   :  { %4621 = vlog2.f32 %v5625_v21  ;;  %v4267_v39 = vadd.f32 -1.0, %v3785_v18  ;;  %v1435_v18 = vpop.f32.mrf.mxu1 }
 0x435   :  { %1451 = vmax.xlane.f32.xlu0 %v1450_v6  ;;  %v3829_v6 = vmul.f32 0.5, %v3821_v29  ;;  %4623 = vlog2.f32 %v5646_v43  ;;  %v4268_v61 = vadd.f32 -1.0, %v3786_v1  ;;  %v3788_v43 = vadd.f32 %v5931_v55, %v5666_v20 }
 0x436   :  { %4625 = vlog2.f32 %v5661_v53  ;;  %v3958_v55 = vsub.f32 %v5800_v11, %v3886_v52 }
 0x437   :  { %4627 = vlog2.f32 %v5666_v20  ;;  %v4270_v53 = vadd.f32 -1.0, %v3788_v43  ;;  %v6071_v20 = vadd.f32 %v1433_v34, %v5954_v45 }
 0x43b   :  { %v6035_v40 = vpop.eup %4611 }
 0x43d   :  { %v4614_v3 = vpop.eup %4613 }
 0x43e   :  { %v6042_v8 = vpop.eup %4615  ;;  %v3799_v33 = vmul.f32 0.6931472, %v4614_v3 }
 0x43f   :  { %3840 = vrot.lane.b32.xlu1 %v3823_v58, %s5027_s8  ;;  %v4618_v19 = vpop.eup %4617 }
 0x440   :  { %v3814_v31 = vsub.f32 %v4264_v51, %v3799_v33  ;;  %v6049_v29 = vpop.eup %4619  ;;  %v3803_v58 = vmul.f32 0.6931472, %v4618_v19 }
 0x441   :  { %v4622_v27 = vpop.eup %4621 }
 0x442   :  { %v3816_v37 = vsub.f32 %v4266_v63, %v3803_v58  ;;  %v3805_v17 = vmul.f32 0.6931472, %v4622_v27  ;;  %v4269_v63 = vadd.f32 -1.0, %v3787_v62  ;;  %v3966_v62 = vmul.f32 %v3958_v55, %v3958_v55 }
 0x443   :  { %3852 = vrot.lane.b32.xlu1 %v3829_v6, %s5027_s8  ;;  %v3822_v6 = vmul.f32 0.5, %v3814_v31  ;;  %v1423_v31 = vpop.f32.mrf.mxu0 }
 0x444   :  { %v3824_v21 = vmul.f32 0.5, %v3816_v37  ;;  %v3817_v26 = vsub.f32 %v4267_v39, %v3805_v17  ;;  %v6067_v39 = vadd.f32 %v1435_v18, %v5957_v14  ;;  %v3974_v11 = vmul.f32 %v5751_v44, %v3966_v62 }
 0x446   :  { %v3825_v33 = vmul.f32 0.5, %v3817_v26  ;;  %v1459_v26 = vmax.f32 %v6071_v20, %v6067_v39 }
 0x447   :  { %3992 = vrot.lane.b32.xlu1 %v3975_v57, %s5028_s24  ;;  %v4624_v57 = vpop.eup %4623 }
 0x448   :  { %v3807_v3 = vmul.f32 0.6931472, %v4624_v57  ;;  %v4626_v51 = vpop.eup %4625 }
 0x449   :  { %v3809_v13 = vmul.f32 0.6931472, %v4626_v51  ;;  %v4628_v58 = vpop.eup %4627 }
 0x44a   :  { %v3818_v19 = vsub.f32 %v4268_v61, %v3807_v3  ;;  %v3811_v1 = vmul.f32 0.6931472, %v4628_v58  ;;  %v6081_v61 = vadd.f32 %v1423_v31, %v5954_v45  ;;  %v6094_v45 = vpop.permute.xlu0 %1586 }
 0x44b   :  { %3936 = vrot.lane.b32.xlu0 %v6035_v40, %s5028_s24  ;;  %v3819_v37 = vsub.f32 %v4269_v63, %v3809_v13  ;;  %8134 = vst [vmem:[#allocation44_spill] sm:$0xff] %v6094_v45 }
 0x44c   :  { %v3826_v27 = vmul.f32 0.5, %v3818_v19  ;;  %v3820_v57 = vsub.f32 %v4270_v53, %v3811_v1  ;;  %v3951_v1 = vmul.f32 %v5921_v9, %v5831_v2 }
 0x44d   :  { %v3827_v17 = vmul.f32 0.5, %v3819_v37 }
 0x44e   :  { %v3828_v3 = vmul.f32 0.5, %v3820_v57  ;;  %v6098_v63 = vpop.permute.xlu0 %1611 }
 0x44f   :  { %3938 = vrot.lane.b32.xlu0 %v6042_v8, %s5028_s24  ;;  %8136 = vst [vmem:[#allocation46_spill] sm:$0xff] %v6098_v63  ;;  %v8159_v63 = vld [vmem:[#allocation9_spill] sm:$0xff] }
 0x452   :  { %v6102_v13 = vpop.permute.xlu0 %1601 }
 0x453   :  { %3940 = vrot.lane.b32.xlu0 %v6049_v29, %s5028_s24  ;;  %8138 = vst [vmem:[#allocation48_spill] sm:$0xff] %v6102_v13 }
 0x457   :  { %3838 = vrot.lane.b32.xlu0 %v3822_v6, %s5027_s8  ;;  %v1425_v6 = vpop.f32.mrf.mxu0 }
 0x45b   :  { %3842 = vrot.lane.b32.xlu0 %v3824_v21, %s5027_s8  ;;  %v6075_v21 = vadd.f32 %v1425_v6, %v5957_v14  ;;  %v6088_v14 = vpop.permute.xlu1 %1576 }
 0x45d   :  { %v1453_v34 = vmax.f32 %v6081_v61, %v6075_v21 }
 0x45f   :  { %3844 = vrot.lane.b32.xlu0 %v3825_v33, %s5027_s8  ;;  %v6090_v51 = vpop.permute.xlu1 %1591 }
 0x460   :  { %8132 = vst [vmem:[#allocation42_spill] sm:$0xff] %v6090_v51 }
 0x463   :  { %3846 = vrot.lane.b32.xlu0 %v3826_v27, %s5027_s8  ;;  %v6092_v33 = vpop.permute.xlu1 %1581 }
 0x464   :  { %8133 = vst [vmem:[#allocation43_spill] sm:$0xff] %v6092_v33 }
 0x467   :  { %3848 = vrot.lane.b32.xlu0 %v3827_v17, %s5027_s8  ;;  %v6096_v19 = vpop.permute.xlu1 %1606 }
 0x468   :  { %8135 = vst [vmem:[#allocation45_spill] sm:$0xff] %v6096_v19 }
 0x46b   :  { %1460 = vmax.xlane.f32.xlu1 %v1459_v26  ;;  %3850 = vrot.lane.b32.xlu0 %v3828_v3, %s5027_s8  ;;  %v6100_v43 = vpop.permute.xlu1 %1596 }
 0x46c   :  { %8137 = vst [vmem:[#allocation47_spill] sm:$0xff] %v6100_v43  ;;  %v8162_v43 = vld [vmem:[#allocation39_spill] sm:$0xff] }
 0x46f   :  { %1454 = vmax.xlane.f32.xlu1 %v1453_v34  ;;  %3990 = vrot.lane.b32.xlu0 %v3974_v11, %s5028_s24 }
 0x4ab   :  { %v1440_v31 = vpop.xlane.xlu1 %1439 }
 0x4ac   :  { %v1462_v44 = vsub.f32 %v5960_v22, %v1440_v31  ;;  %v1463_v18 = vsub.f32 %v5963_v7, %v1440_v31 }
 0x4ae   :  { %v1478_v58 = vmul.f32 1.442695, %v1462_v44  ;;  %v1480_v27 = vmul.f32 1.442695, %v1463_v18 }
 0x4af   :  { %v1443_v37 = vpop.xlane.xlu0 %1442 }
 0x4b0   :  { %4629 = vpow2.f32 %v1478_v58  ;;  %v1464_v53 = vsub.f32 %v5968_v24, %v1443_v37  ;;  %v1465_v52 = vsub.f32 %v5971_v59, %v1443_v37 }
 0x4b1   :  { %4631 = vpow2.f32 %v1480_v27 }
 0x4b2   :  { %v1482_v6 = vmul.f32 1.442695, %v1464_v53  ;;  %v1484_v55 = vmul.f32 1.442695, %v1465_v52 }
 0x4b3   :  { %v1446_v17 = vpop.xlane.xlu0 %1445 }
 0x4b4   :  { %4633 = vpow2.f32 %v1482_v6  ;;  %v1466_v22 = vsub.f32 %v5976_v35, %v1446_v17  ;;  %v1467_v7 = vsub.f32 %v5979_v48, %v1446_v17 }
 0x4b5   :  { %4635 = vpow2.f32 %v1484_v55 }
 0x4b6   :  { %4637 = vlog2.f32 %v3951_v1  ;;  %v1486_v57 = vmul.f32 1.442695, %v1466_v22  ;;  %v1488_v26 = vmul.f32 1.442695, %v1467_v7 }
 0x4b7   :  { %v1449_v62 = vpop.xlane.xlu1 %1448 }
 0x4b8   :  { %4639 = vpow2.f32 %v1486_v57  ;;  %v1468_v24 = vsub.f32 %v5985_v28, %v1449_v62  ;;  %v1469_v59 = vsub.f32 %v5988_v50, %v1449_v62 }
 0x4b9   :  { %4641 = vpow2.f32 %v1488_v26 }
 0x4ba   :  { %v1490_v2 = vmul.f32 1.442695, %v1468_v24  ;;  %v1492_v9 = vmul.f32 1.442695, %v1469_v59  ;;  %v1458_v35 = vpop.xlane.xlu0 %1457  ;;  %v3889_v59 = vld [vmem:[%s8131_s18 + $0x18] sm:$0xff] }
 0x4bb   :  { %v6114_v3 = vpop.permute.xlu1 %3840  ;;  %v1474_v11 = vsub.f32 %v5994_v4, %v1458_v35  ;;  %v1475_v31 = vsub.f32 %v5997_v46, %v1458_v35  ;;  %v3891_v35 = vld [vmem:[%s8131_s18 + $0x28] sm:$0xff] }
 0x4bc   :  { %4643 = vpow2.f32 %v1490_v2 }
 0x4bd   :  { %v6116_v34 = vpop.eup %4629  ;;  %4645 = vpow2.f32 %v1492_v9  ;;  %v1502_v50 = vmul.f32 1.442695, %v1474_v11  ;;  %v1504_v18 = vmul.f32 1.442695, %v1475_v31  ;;  %v3961_v9 = vsub.f32 %v5797_v47, %v3889_v59  ;;  %v1630_v11 = vld [vmem:[%s7961_s15] sm:$0x3] }
 0x4be   :  { %v6118_v48 = vpop.eup %4631  ;;  %v3888_v31 = vld [vmem:[%s8131_s18 + $0x10] sm:$0xff]  ;;  %v6174_v47 = vrot.slane %v1630_v11, %v5578_v25 }
 0x4bf   :  { %v6122_v44 = vpop.permute.xlu1 %3852  ;;  %v1510_v28 = vadd.f32 %v6118_v48, %v6116_v34  ;;  %4647 = vpow2.f32 %v1502_v50  ;;  %v3963_v50 = vsub.f32 %v5809_v30, %v3891_v35  ;;  %v6186_v30 = vadd.f32 -1.0, %v5170_v15  ;;  %v4981_v15 = vld [vmem:[%s8072_s27] sm:$0xff] }
 0x4c0   :  { %4649 = vpow2.f32 %v1504_v18  ;;  %v6171_v18 = vrot.slane %v1630_v11, %v5569_v49  ;;  %v6195_v35 = vadd.f32 -1.0, %v5172_v16  ;;  %v6198_v11 = vadd.f32 -1.0, %v5213_v32 }
 0x4c1   :  { %v6126_v58 = vpop.eup %4633  ;;  %1511 = vadd.xlane.f32.xlu1 %v1510_v28  ;;  %v3969_v28 = vmul.f32 %v3961_v9, %v3961_v9  ;;  %v6213_v16 = vadd.f32 -1.0, %v5224_v36  ;;  %v6216_v32 = vadd.f32 -1.0, %v5230_v38 }
 0x4c2   :  { %8139 = vst [vmem:[#allocation49_spill] sm:$0xff] %v6126_v58  ;;  %v6128_v27 = vpop.eup %4635 }
 0x4c3   :  { %8140 = vst [vmem:[#allocation50_spill] sm:$0xff] %v6128_v27  ;;  %v4638_v37 = vpop.eup %4637  ;;  %v3993_v53 = vpop.permute.xlu1 %3992  ;;  %v1513_v4 = vadd.f32 %v6128_v27, %v6126_v58  ;;  %v3977_v9 = vmul.f32 %v5775_v5, %v3969_v28  ;;  %v6221_v28 = vadd.f32 -1.0, %v5239_v42  ;;  %v8180_v58 = vld [vmem:[#allocation13_spill] sm:$0xff] }
 0x4c4   :  { %v4015_v46 = vadd.f32 %v3993_v53, %v3951_v1  ;;  %v6136_v55 = vmul.f32 0.6931472, %v4638_v37  ;;  %v3890_v37 = vld [vmem:[%s8131_s18 + $0x20] sm:$0xff]  ;;  %v3893_v53 = vld [vmem:[%s8131_s18 + $0x38] sm:$0xff] }
 0x4c5   :  { %v6132_v52 = vpop.eup %4639  ;;  %1514 = vadd.xlane.f32.xlu1 %v1513_v4  ;;  %v6182_v4 = vpop.xlane.xlu0 %1451  ;;  %v3965_v59 = vsub.f32 %v5816_v60, %v3893_v53  ;;  %v4982_v60 = vld [vmem:[%s8072_s27 + $0x8] sm:$0xff]  ;;  %8151 = vst [vmem:[#allocation61_spill] sm:$0xff] %v6221_v28  ;;  %v6248_v28 = vadd.f32 -1.0, %v8159_v63  ;;  %v8166_v63 = vld [vmem:[#allocation40_spill] sm:$0xff] }
 0x4c6   :  { %8141 = vst [vmem:[#allocation51_spill] sm:$0xff] %v6132_v52  ;;  %v6134_v6 = vpop.eup %4641  ;;  %8143 = vst [vmem:[#allocation53_spill] sm:$0xff] %v6136_v55  ;;  %v6138_v17 = vadd.f32 -1.0, %v4015_v46  ;;  %v3960_v46 = vsub.f32 %v5795_v0, %v3888_v31  ;;  %v6204_v0 = vadd.f32 %v4981_v15, %v6171_v18 }
 0x4c7   :  { %8142 = vst [vmem:[#allocation52_spill] sm:$0xff] %v6134_v6  ;;  %v1516_v22 = vadd.f32 %v6134_v6, %v6132_v52  ;;  %8160 = vst [vmem:[#allocation9_spill] sm:$0xff] %v6248_v28  ;;  %v8178_v6 = vld [vmem:[#allocation12_spill] sm:$0xff] }
 0x4c8   :  { %8144 = vst [vmem:[#allocation54_spill] sm:$0xff] %v6138_v17  ;;  %8149 = vst [vmem:[#allocation59_spill] sm:$0xff] %v6204_v0  ;;  %v3968_v5 = vmul.f32 %v3960_v46, %v3960_v46  ;;  %v6229_v53 = vadd.f32 -1.0, %v6204_v0  ;;  %v3973_v46 = vmul.f32 %v3965_v59, %v3965_v59  ;;  %v8161_v59 = vld [vmem:[#allocation32_spill] sm:$0xff]  ;;  %v6343_v52 = vadd.f32 -1.0, %v8178_v6 }
 0x4c9   :  { %v6144_v57 = vpop.eup %4643  ;;  %1517 = vadd.xlane.f32.xlu1 %v1516_v22  ;;  %v3892_v22 = vld [vmem:[%s8131_s18 + $0x30] sm:$0xff] }
 0x4ca   :  { %8145 = vst [vmem:[#allocation55_spill] sm:$0xff] %v6144_v57  ;;  %v6146_v26 = vpop.eup %4645  ;;  %v3964_v31 = vsub.f32 %v5806_v23, %v3892_v22  ;;  %v8153_v23 = vld [vmem:[#allocation38_spill] sm:$0xff]  ;;  %v1862_v7 = vadd.f32 1.0, %v6229_v53 }
 0x4cb   :  { %8146 = vst [vmem:[#allocation56_spill] sm:$0xff] %v6146_v26  ;;  %v1519_v1 = vadd.f32 %v6146_v26, %v6144_v57  ;;  %v6236_v22 = vmul.f32 %v8153_v23, %v5828_v41  ;;  %v6252_v41 = vmul.f32 %v8162_v43, %v8161_v59  ;;  %v8168_v43 = vld [vmem:[#allocation31_spill] sm:$0xff] }
 0x4cc   :  { %v6150_v62 = vpop.eup %4647  ;;  %v1878_v23 = vadd.f32 676.5204, %v1862_v7 }
 0x4cd   :  { %1520 = vadd.xlane.f32.xlu1 %v1519_v1  ;;  %8147 = vst [vmem:[#allocation57_spill] sm:$0xff] %v6150_v62  ;;  %v6152_v24 = vpop.eup %4649  ;;  %v3962_v1 = vsub.f32 %v5812_v10, %v3890_v37  ;;  %v6210_v10 = vadd.f32 %v4982_v60, %v6174_v47  ;;  %v6226_v37 = vpop.permute.xlu0 %3936  ;;  %8154 = vst [vmem:[#allocation38_spill] sm:$0xff] %v6236_v22  ;;  %4651 = vlog2.f32 %v6236_v22 }
 0x4ce   :  { %8148 = vst [vmem:[#allocation58_spill] sm:$0xff] %v6152_v24  ;;  %v1528_v2 = vadd.f32 %v6152_v24, %v6150_v62  ;;  %8163 = vst [vmem:[#allocation32_spill] sm:$0xff] %v6252_v41  ;;  %4653 = vlog2.f32 %v6252_v41  ;;  %v1974_v24 = vadd.f32 3.0, %v6229_v53  ;;  %v2214_v41 = vadd.f32 6.0, %v6229_v53 }
 0x4cf   :  { %8150 = vst [vmem:[#allocation60_spill] sm:$0xff] %v6210_v10  ;;  %v6232_v36 = vadd.f32 -1.0, %v6210_v10  ;;  %v3970_v38 = vmul.f32 %v3962_v1, %v3962_v1  ;;  %v3972_v1 = vmul.f32 %v3964_v31, %v3964_v31  ;;  %v3981_v31 = vmul.f32 %v6049_v29, %v3973_v46  ;;  %v8169_v10 = vld [vmem:[#allocation36_spill] sm:$0xff] }
 0x4d0   :  { %1529 = vadd.xlane.f32.xlu0 %v1528_v2  ;;  %v3971_v2 = vmul.f32 %v3963_v50, %v3963_v50  ;;  %v6224_v50 = vadd.f32 -1.0, %v5270_v54  ;;  %v8157_v54 = vld [vmem:[#allocation8_spill] sm:$0xff] }
 0x4d1   :  { %v6243_v60 = vadd.f32 -1.0, %v8157_v54  ;;  %v1863_v13 = vadd.f32 1.0, %v6232_v36  ;;  %v1894_v54 = vadd.f32 2.0, %v6229_v53  ;;  %v3978_v59 = vmul.f32 %v8168_v43, %v3970_v38  ;;  %v6265_v55 = vpop.permute.xlu0 %3938 }
 0x4d2   :  { %8152 = vst [vmem:[#allocation62_spill] sm:$0xff] %v6224_v50  ;;  %v3979_v42 = vmul.f32 %v6035_v40, %v3971_v2  ;;  %v8164_v40 = vld [vmem:[#allocation30_spill] sm:$0xff]  ;;  %v1975_v29 = vadd.f32 3.0, %v6232_v36  ;;  %v2054_v38 = vadd.f32 4.0, %v6229_v53  ;;  %v3980_v46 = vmul.f32 %v6042_v8, %v3972_v1 }
 0x4d3   :  { %8158 = vst [vmem:[#allocation8_spill] sm:$0xff] %v6243_v60  ;;  %v3976_v2 = vmul.f32 %v8164_v40, %v3968_v5  ;;  %v1895_v60 = vadd.f32 2.0, %v6232_v36  ;;  %v1926_v40 = vmul.f32 -1259.1392, %v1862_v7  ;;  %v1927_v17 = vmul.f32 -1259.1392, %v1863_v13 }
 0x4d4   :  { %v1958_v19 = vmul.f32 %v1894_v54, %v1862_v7  ;;  %v2135_v1 = vadd.f32 5.0, %v6232_v36 }
 0x4d5   :  { %v1959_v22 = vmul.f32 %v1895_v60, %v1863_v13 }
 0x4de   :  { %3996 = vrot.lane.b32.xlu1 %v3977_v9, %s5028_s24  ;;  %v8155_v9 = vld [vmem:[#allocation6_spill] sm:$0xff] }
 0x4df   :  { %v6240_v15 = vadd.f32 -1.0, %v8155_v9  ;;  %v1879_v9 = vadd.f32 676.5204, %v1863_v13  ;;  %v2006_v13 = vmul.f32 771.3234, %v1958_v19 }
 0x4e1   :  { %8156 = vst [vmem:[#allocation6_spill] sm:$0xff] %v6240_v15  ;;  %v8165_v15 = vld [vmem:[#allocation33_spill] sm:$0xff]  ;;  %v1911_v5 = vmul.f32 %v1895_v60, %v1879_v9  ;;  %v2055_v9 = vadd.f32 4.0, %v6232_v36  ;;  %v2007_v60 = vmul.f32 771.3234, %v1959_v22 }
 0x4e2   :  { %4000 = vrot.lane.b32.xlu1 %v3979_v42, %s5028_s24  ;;  %v6261_v28 = vmul.f32 %v8166_v63, %v8165_v15  ;;  %v1910_v42 = vmul.f32 %v1894_v54, %v1878_v23  ;;  %v2038_v23 = vmul.f32 %v1974_v24, %v1958_v19  ;;  %v2039_v54 = vmul.f32 %v1975_v29, %v1959_v22 }
 0x4e3   :  { %v1943_v63 = vadd.f32 %v1927_v17, %v1911_v5  ;;  %v2134_v17 = vadd.f32 5.0, %v6229_v53  ;;  %v6280_v5 = vpop.permute.xlu0 %3940  ;;  %v2215_v19 = vadd.f32 6.0, %v6232_v36  ;;  %v6286_v22 = vadd.f32 1.0, %v6186_v30 }
 0x4e4   :  { %8167 = vst [vmem:[#allocation39_spill] sm:$0xff] %v6261_v28  ;;  %v1942_v15 = vadd.f32 %v1926_v40, %v1910_v42  ;;  %4655 = vlog2.f32 %v6261_v28  ;;  %v2118_v43 = vmul.f32 %v2054_v38, %v2038_v23  ;;  %v6278_v42 = vadd.f32 1.0, %v6198_v11 }
 0x4e5   :  { %v1991_v7 = vmul.f32 %v1975_v29, %v1943_v63  ;;  %v2086_v29 = vmul.f32 -176.61504, %v2038_v23  ;;  %v2087_v62 = vmul.f32 -176.61504, %v2039_v54  ;;  %v6305_v23 = vadd.f32 7.0, %v6232_v36 }
 0x4e6   :  { %4004 = vrot.lane.b32.xlu1 %v3981_v31, %s5028_s24  ;;  %3994 = vrot.lane.b32.xlu0 %v3976_v2, %s5028_s24  ;;  %v1990_v31 = vmul.f32 %v1974_v24, %v1942_v15  ;;  %v2119_v2 = vmul.f32 %v2055_v9, %v2039_v54  ;;  %v2198_v24 = vmul.f32 %v2134_v17, %v2118_v43  ;;  %v2166_v54 = vmul.f32 12.507343, %v2118_v43 }
 0x4e7   :  { %v2023_v8 = vadd.f32 %v2007_v60, %v1991_v7  ;;  %v1471_v60 = vsub.f32 %v6002_v12, %v6182_v4  ;;  %v6311_v12 = vpop.permute.xlu0 %3838 }
 0x4e8   :  { %v2022_v40 = vadd.f32 %v2006_v13, %v1990_v31  ;;  %v8170_v31 = vld [vmem:[#allocation41_spill] sm:$0xff]  ;;  %v1470_v13 = vsub.f32 %v6007_v56, %v6182_v4  ;;  %v2199_v0 = vmul.f32 %v2135_v1, %v2119_v2  ;;  %v6297_v45 = vmul.f32 %v2214_v41, %v2198_v24 }
 0x4e9   :  { %v2071_v63 = vmul.f32 %v2055_v9, %v2023_v8  ;;  %v6291_v7 = vmul.f32 %v8170_v31, %v8169_v10  ;;  %v2710_v10 = vadd.f32 676.5204, %v6278_v42  ;;  %v2711_v56 = vadd.f32 676.5204, %v6286_v22  ;;  %v6309_v9 = vpop.eup %4651  ;;  %8179 = vst [vmem:[#allocation41_spill] sm:$0xff] %v6343_v52 }
 0x4ea   :  { %3998 = vrot.lane.b32.xlu0 %v3978_v59, %s5028_s24  ;;  %v2070_v15 = vmul.f32 %v2054_v38, %v2022_v40  ;;  %v6300_v59 = vadd.f32 7.0, %v6229_v53  ;;  %v6302_v38 = vmul.f32 %v2215_v19, %v2199_v0  ;;  %8172 = vst [vmem:[#allocation33_spill] sm:$0xff] %v6309_v9  ;;  %v2167_v40 = vmul.f32 12.507343, %v2119_v2 }
 0x4eb   :  { %8171 = vst [vmem:[#allocation30_spill] sm:$0xff] %v6291_v7  ;;  %v2103_v26 = vadd.f32 %v2087_v62, %v2071_v63  ;;  %4657 = vlog2.f32 %v6291_v7  ;;  %v1494_v8 = vmul.f32 1.442695, %v1470_v13  ;;  %v2727_v63 = vadd.f32 2.0, %v6186_v30  ;;  %v6345_v33 = vpop.permute.xlu0 %3842 }
 0x4ec   :  { %v2102_v51 = vadd.f32 %v2086_v29, %v2070_v15  ;;  %v2726_v15 = vadd.f32 2.0, %v6198_v11  ;;  %v6317_v29 = vpop.eup %4653  ;;  %v6321_v9 = vmul.f32 %v6300_v59, %v6297_v45 }
 0x4ed   :  { %v2151_v4 = vmul.f32 %v2135_v1, %v2103_v26  ;;  %8173 = vst [vmem:[#allocation40_spill] sm:$0xff] %v6317_v29  ;;  %v1496_v26 = vmul.f32 1.442695, %v1471_v60  ;;  %v2758_v1 = vmul.f32 -1259.1392, %v6278_v42  ;;  %4659 = vpow2.f32 %v1494_v8 }
 0x4ee   :  { %4002 = vrot.lane.b32.xlu0 %v3980_v46, %s5028_s24  ;;  %v2150_v62 = vmul.f32 %v2134_v17, %v2102_v51  ;;  %v6324_v51 = vadd.f32 8.0, %v6229_v53  ;;  %v8174_v46 = vld [vmem:[#allocation35_spill] sm:$0xff]  ;;  %v2742_v17 = vmul.f32 %v2726_v15, %v2710_v10  ;;  %v2246_v29 = vmul.f32 -0.1385711, %v2198_v24 }
 0x4ef   :  { %v2183_v57 = vadd.f32 %v2167_v40, %v2151_v4  ;;  %v6328_v43 = vmul.f32 %v6226_v37, %v8174_v46  ;;  %v6336_v4 = vadd.f32 8.0, %v6232_v36  ;;  %v2759_v40 = vmul.f32 -1259.1392, %v6286_v22  ;;  %v8176_v46 = vld [vmem:[#allocation10_spill] sm:$0xff] }
 0x4f0   :  { %v2182_v31 = vadd.f32 %v2166_v54, %v2150_v62  ;;  %v6333_v62 = vmul.f32 %v6305_v23, %v6302_v38  ;;  %v2743_v54 = vmul.f32 %v2727_v63, %v2711_v56  ;;  %v2247_v37 = vmul.f32 -0.1385711, %v2199_v0 }
 0x4f1   :  { %8175 = vst [vmem:[#allocation31_spill] sm:$0xff] %v6328_v43  ;;  %v4656_v2 = vpop.eup %4655  ;;  %v2231_v7 = vmul.f32 %v2215_v19, %v2183_v57  ;;  %v6340_v10 = vadd.f32 -1.0, %v8176_v46  ;;  %v2438_v27 = vmul.f32 %v6324_v51, %v6321_v9  ;;  %v6350_v56 = vadd.f32 -1.0, %v8180_v58 }
 0x4f2   :  { %v2230_v60 = vmul.f32 %v2214_v41, %v2182_v31  ;;  %4661 = vpow2.f32 %v1496_v26  ;;  %v2774_v41 = vadd.f32 %v2758_v1, %v2742_v17  ;;  %v6355_v24 = vmul.f32 0.6931472, %v4656_v2  ;;  %v8183_v1 = vld [vmem:[#allocation34_spill] sm:$0xff] }
 0x4f3   :  { %8177 = vst [vmem:[#allocation36_spill] sm:$0xff] %v6340_v10  ;;  %8181 = vst [vmem:[#allocation35_spill] sm:$0xff] %v6350_v56  ;;  %4663 = vlog2.f32 %v6328_v43  ;;  %v2439_v6 = vmul.f32 %v6336_v4, %v6333_v62  ;;  %v2263_v8 = vadd.f32 %v2247_v37, %v2231_v7  ;;  %v2775_v31 = vadd.f32 %v2759_v40, %v2743_v54 }
 0x4f4   :  { %v1461_v13 = vpop.xlane.xlu1 %1460  ;;  %8182 = vst [vmem:[#allocation10_spill] sm:$0xff] %v6355_v24  ;;  %v2262_v19 = vadd.f32 %v2246_v29, %v2230_v60  ;;  %v2806_v46 = vadd.f32 3.0, %v6198_v11  ;;  %v6362_v58 = vsel %vm1167_vm0, %v6114_v3, 0.0  ;;  %4665 = vrcp.f32 %v2438_v27 }
 0x4f5   :  { %v1476_v57 = vsub.f32 %v6071_v20, %v1461_v13  ;;  %v1477_v0 = vsub.f32 %v6067_v39, %v1461_v13  ;;  %v6366_v20 = vsel %vm1167_vm0, %v6122_v44, 0.0  ;;  %v2790_v39 = vmul.f32 %v2726_v15, %v6278_v42  ;;  %v3845_v13 = vpop.permute.xlu0 %3844 }
 0x4f6   :  { %v2791_v17 = vmul.f32 %v2727_v63, %v6286_v22  ;;  %v2807_v29 = vadd.f32 3.0, %v6186_v30  ;;  %v2822_v7 = vmul.f32 %v2806_v46, %v2774_v41  ;;  %v6373_v2 = vmul.f32 %v6265_v55, %v8183_v1 }
 0x4f7   :  { %v1506_v26 = vmul.f32 1.442695, %v1476_v57  ;;  %v1508_v3 = vmul.f32 1.442695, %v1477_v0  ;;  %4667 = vrcp.f32 %v2439_v6  ;;  %v2838_v40 = vmul.f32 771.3234, %v2790_v39 }
 0x4f8   :  { %8184 = vst [vmem:[#allocation12_spill] sm:$0xff] %v6373_v2  ;;  %v1455_v54 = vpop.xlane.xlu1 %1454  ;;  %v2310_v44 = vmul.f32 %v6300_v59, %v2262_v19  ;;  %v2311_v27 = vmul.f32 %v6305_v23, %v2263_v8  ;;  %v2326_v42 = vmul.f32 9.984369e-06, %v6297_v45  ;;  %v2823_v15 = vmul.f32 %v2807_v29, %v2775_v31  ;;  %v6378_v22 = vpop.eup %4657  ;;  %v8186_v57 = vld [vmem:[#allocation37_spill] sm:$0xff] }
 0x4f9   :  { %8185 = vst [vmem:[#allocation13_spill] sm:$0xff] %v6378_v22  ;;  %v2327_v63 = vmul.f32 9.984369e-06, %v6302_v38  ;;  %v2839_v60 = vmul.f32 771.3234, %v2791_v17  ;;  %v2854_v37 = vadd.f32 %v2838_v40, %v2822_v7  ;;  %v2870_v55 = vmul.f32 %v2806_v46, %v2790_v39  ;;  %v6389_v46 = vpop.permute.xlu0 %3846 }
 0x4fa   :  { %v6383_v41 = vmul.f32 %v6280_v5, %v8186_v57  ;;  %4669 = vpow2.f32 %v1506_v26  ;;  %v1472_v0 = vsub.f32 %v6081_v61, %v1455_v54  ;;  %v2871_v6 = vmul.f32 %v2807_v29, %v2791_v17  ;;  %v6391_v57 = vpop.eup %4659 }
 0x4fb   :  { %v2855_v19 = vadd.f32 %v2839_v60, %v2823_v15  ;;  %v2886_v8 = vadd.f32 4.0, %v6198_v11  ;;  %v2887_v45 = vadd.f32 4.0, %v6186_v30  ;;  %v2918_v31 = vmul.f32 -176.61504, %v2870_v55  ;;  %8188 = vst [vmem:[#allocation37_spill] sm:$0xff] %v6391_v57 }
 0x4fc   :  { %8187 = vst [vmem:[#allocation34_spill] sm:$0xff] %v6383_v41  ;;  %4671 = vpow2.f32 %v1508_v3  ;;  %v1473_v38 = vsub.f32 %v6075_v21, %v1455_v54  ;;  %v2342_v1 = vadd.f32 %v2326_v42, %v2310_v44  ;;  %v2919_v7 = vmul.f32 -176.61504, %v2871_v6 }
 0x4fd   :  { %v2343_v39 = vadd.f32 %v2327_v63, %v2311_v27  ;;  %v2902_v5 = vmul.f32 %v2886_v8, %v2854_v37  ;;  %v2903_v40 = vmul.f32 %v2887_v45, %v2855_v19  ;;  %v2950_v26 = vmul.f32 %v2886_v8, %v2870_v55 }
 0x4fe   :  { %v1498_v61 = vmul.f32 1.442695, %v1472_v0  ;;  %v2406_v17 = vmul.f32 1.5056327e-07, %v6321_v9  ;;  %v2951_v29 = vmul.f32 %v2887_v45, %v2871_v6  ;;  %v2966_v15 = vadd.f32 5.0, %v6198_v11 }
 0x4ff   :  { %v6395_v60 = vpop.eup %4661  ;;  %v2407_v21 = vmul.f32 1.5056327e-07, %v6333_v62  ;;  %v2934_v3 = vadd.f32 %v2918_v31, %v2902_v5  ;;  %v2935_v54 = vadd.f32 %v2919_v7, %v2903_v40  ;;  %v2967_v44 = vadd.f32 5.0, %v6186_v30  ;;  %v3849_v7 = vpop.permute.xlu0 %3848 }
 0x500   :  { %8189 = vst [vmem:[#allocation63_spill] sm:$0xff] %v6395_v60  ;;  %v6399_v27 = vpop.eup %4663  ;;  %v2390_v42 = vmul.f32 %v6324_v51, %v2342_v1  ;;  %v2998_v63 = vmul.f32 12.507343, %v2950_v26  ;;  %v2999_v37 = vmul.f32 12.507343, %v2951_v29  ;;  %v3030_v55 = vmul.f32 %v2966_v15, %v2950_v26 }
 0x501   :  { %v2391_v9 = vmul.f32 %v6336_v4, %v2343_v39  ;;  %v2982_v0 = vmul.f32 %v2966_v15, %v2934_v3  ;;  %v2983_v6 = vmul.f32 %v2967_v44, %v2935_v54  ;;  %v3046_v19 = vadd.f32 6.0, %v6198_v11  ;;  %v4666_v8 = vpop.eup %4665 }
 0x502   :  { %4673 = vlog2.f32 %v6383_v41  ;;  %v1500_v62 = vmul.f32 1.442695, %v1473_v38  ;;  %v3862_v45 = vsel %vm1167_vm0, %v6311_v12, 0.0  ;;  %v3871_v31 = vsel %vm1167_vm0, %v3845_v13, 0.0  ;;  %v4983_v12 = vld [vmem:[%s8072_s27 + $0x10] sm:$0xff] }
 0x503   :  { %v3014_v51 = vadd.f32 %v2998_v63, %v2982_v0  ;;  %v3015_v1 = vadd.f32 %v2999_v37, %v2983_v6  ;;  %v3031_v5 = vmul.f32 %v2967_v44, %v2951_v29  ;;  %v3047_v40 = vadd.f32 6.0, %v6186_v30  ;;  %v3851_v6 = vpop.permute.xlu0 %3850 }
 0x504   :  { %v4668_v4 = vpop.eup %4667  ;;  %v2422_v39 = vadd.f32 %v2406_v17, %v2390_v42  ;;  %v3110_v26 = vmul.f32 %v3046_v19, %v3030_v55  ;;  %v6411_v15 = vadd.f32 7.0, %v6198_v11  ;;  %v6417_v13 = vadd.f32 %v4983_v12, %v6171_v18 }
 0x505   :  { %4675 = vpow2.f32 %v1498_v61  ;;  %v2423_v38 = vadd.f32 %v2407_v21, %v2391_v9  ;;  %v6420_v29 = vadd.f32 0.5, %v6300_v59  ;;  %v6429_v3 = vadd.f32 0.5, %v6305_v23 }
 0x506   :  { %8190 = vst [vmem:[#allocation64_spill] sm:$0xff] %v6417_v13  ;;  %4677 = vpow2.f32 %v1500_v62  ;;  %v3078_v54 = vmul.f32 -0.1385711, %v3030_v55  ;;  %v3079_v44 = vmul.f32 -0.1385711, %v3031_v5  ;;  %v3062_v61 = vmul.f32 %v3046_v19, %v3014_v51 }
 0x507   :  { %v6431_v42 = vpop.eup %4669  ;;  %v3063_v21 = vmul.f32 %v3047_v40, %v3015_v1  ;;  %v3111_v63 = vmul.f32 %v3047_v40, %v3031_v5  ;;  %v6434_v59 = vadd.f32 7.0, %v6186_v30  ;;  %v2455_v37 = vmul.f32 %v4666_v8, %v2422_v39 }
 0x508   :  { %8192 = vst [vmem:[#allocation66_spill] sm:$0xff] %v6431_v42  ;;  %v6437_v9 = vmul.f32 %v6411_v15, %v3110_v26  ;;  %v6440_v0 = vadd.f32 8.0, %v6198_v11  ;;  %v6443_v23 = vadd.f32 -1.0, %v6417_v13  ;;  %v3868_v19 = vsel %vm1167_vm0, %v6345_v33, 0.0 }
 0x509   :  { %v6445_v55 = vpop.eup %4671  ;;  %v1522_v62 = vadd.f32 %v6395_v60, %v6391_v57  ;;  %4679 = vlog2.f32 %v6420_v29  ;;  %v3877_v8 = vsel %vm1167_vm0, %v3849_v7, 0.0  ;;  %v3874_v51 = vsel %vm1167_vm0, %v6389_v46, 0.0 }
 0x50a   :  { %3866 = vadd.xlane.f32.xlu1 %v6362_v58  ;;  %v4984_v58 = vld [vmem:[%s8072_s27 + $0x18] sm:$0xff]  ;;  %8193 = vst [vmem:[#allocation67_spill] sm:$0xff] %v6445_v55  ;;  %4681 = vlog2.f32 %v6429_v3  ;;  %v3094_v5 = vadd.f32 %v3078_v54, %v3062_v61  ;;  %v3095_v40 = vadd.f32 %v3079_v44, %v3063_v21  ;;  %v6460_v33 = vmul.f32 %v6434_v59, %v3111_v63 }
 0x50b   :  { %v6426_v17 = vadd.f32 %v4984_v58, %v6174_v47  ;;  %4683 = vlog2.f32 %v2455_v37  ;;  %v3270_v46 = vmul.f32 %v6440_v0, %v6437_v9  ;;  %v1864_v7 = vadd.f32 1.0, %v6443_v23 }
 0x50c   :  { %v6470_v39 = vadd.f32 0.5, %v6229_v53  ;;  %v6473_v12 = vadd.f32 0.5, %v6232_v36  ;;  %v1531_v58 = vadd.f32 %v6445_v55, %v6431_v42  ;;  %v3159_v54 = vmul.f32 9.984369e-06, %v3111_v63 }
 0x50d   :  { %8191 = vst [vmem:[#allocation65_spill] sm:$0xff] %v6426_v17  ;;  %3863 = vadd.xlane.f32.xlu0 %v3862_v45  ;;  %v6457_v1 = vadd.f32 -1.0, %v6426_v17  ;;  %v3880_v45 = vsel %vm1167_vm0, %v3851_v6, 0.0  ;;  %v1880_v61 = vadd.f32 676.5204, %v1864_v7  ;;  %v3142_v37 = vmul.f32 %v6411_v15, %v3094_v5 }
 0x50e   :  { %3872 = vadd.xlane.f32.xlu1 %v3871_v31  ;;  %v2457_v31 = vmul.f32 %v4668_v4, %v2423_v38  ;;  %v6463_v4 = vadd.f32 8.0, %v6186_v30  ;;  %v3158_v38 = vmul.f32 9.984369e-06, %v3110_v26  ;;  %v3143_v53 = vmul.f32 %v6434_v59, %v3095_v40 }
 0x50f   :  { %v1865_v44 = vadd.f32 1.0, %v6457_v1  ;;  %v6478_v21 = vpop.eup %4673  ;;  %v1896_v6 = vadd.f32 2.0, %v6443_v23  ;;  %v1897_v63 = vadd.f32 2.0, %v6457_v1  ;;  %v1976_v10 = vadd.f32 3.0, %v6443_v23 }
 0x510   :  { %4685 = vlog2.f32 %v2457_v31  ;;  %v3271_v36 = vmul.f32 %v6463_v4, %v6460_v33  ;;  %v1977_v55 = vadd.f32 3.0, %v6457_v1  ;;  %v2056_v42 = vadd.f32 4.0, %v6443_v23 }
 0x511   :  { %3869 = vadd.xlane.f32.xlu0 %v3868_v19  ;;  %4687 = vrcp.f32 %v3270_v46  ;;  %v1881_v26 = vadd.f32 676.5204, %v1865_v44  ;;  %v1928_v19 = vmul.f32 -1259.1392, %v1864_v7  ;;  %v1912_v31 = vmul.f32 %v1896_v6, %v1880_v61 }
 0x512   :  { %3878 = vadd.xlane.f32.xlu1 %v3877_v8  ;;  %v1929_v8 = vmul.f32 -1259.1392, %v1865_v44  ;;  %v1960_v56 = vmul.f32 %v1896_v6, %v1864_v7  ;;  %v6488_v5 = vpop.eup %4675  ;;  %v1961_v52 = vmul.f32 %v1897_v63, %v1865_v44  ;;  %v2057_v61 = vadd.f32 4.0, %v6457_v1 }
 0x513   :  { %8194 = vst [vmem:[#allocation68_spill] sm:$0xff] %v6488_v5  ;;  %v1913_v40 = vmul.f32 %v1897_v63, %v1881_v26  ;;  %v1944_v46 = vadd.f32 %v1928_v19, %v1912_v31  ;;  %v2136_v17 = vadd.f32 5.0, %v6443_v23  ;;  %4689 = vrcp.f32 %v3271_v36 }
 0x514   :  { %v2008_v60 = vmul.f32 771.3234, %v1960_v56  ;;  %v2040_v57 = vmul.f32 %v1976_v10, %v1960_v56  ;;  %v2009_v6 = vmul.f32 771.3234, %v1961_v52  ;;  %v2041_v22 = vmul.f32 %v1977_v55, %v1961_v52 }
 0x515   :  { %3875 = vadd.xlane.f32.xlu0 %v3874_v51  ;;  %v1945_v7 = vadd.f32 %v1929_v8, %v1913_v40  ;;  %v1992_v51 = vmul.f32 %v1976_v10, %v1944_v46  ;;  %v2137_v26 = vadd.f32 5.0, %v6457_v1  ;;  %v3174_v31 = vadd.f32 %v3158_v38, %v3142_v37 }
 0x516   :  { %3884 = vadd.xlane.f32.xlu1 %v6366_v20  ;;  %v6492_v20 = vpop.eup %4677  ;;  %v2120_v44 = vmul.f32 %v2056_v42, %v2040_v57  ;;  %v2121_v13 = vmul.f32 %v2057_v61, %v2041_v22  ;;  %v2088_v8 = vmul.f32 -176.61504, %v2040_v57  ;;  %v2216_v52 = vadd.f32 6.0, %v6443_v23 }
 0x517   :  { %8195 = vst [vmem:[#allocation69_spill] sm:$0xff] %v6492_v20  ;;  %v4680_v63 = vpop.eup %4679  ;;  %v1525_v19 = vadd.f32 %v6492_v20, %v6488_v5  ;;  %v1993_v56 = vmul.f32 %v1977_v55, %v1945_v7  ;;  %v2089_v10 = vmul.f32 -176.61504, %v2041_v22  ;;  %v2217_v43 = vadd.f32 6.0, %v6457_v1 }
 0x518   :  { %v4682_v41 = vpop.eup %4681  ;;  %v2200_v40 = vmul.f32 %v2136_v17, %v2120_v44  ;;  %v2201_v46 = vmul.f32 %v2137_v26, %v2121_v13  ;;  %v3175_v28 = vadd.f32 %v3159_v54, %v3143_v53  ;;  %v6504_v38 = vadd.f32 0.5, %v6411_v15 }
 0x519   :  { %3881 = vadd.xlane.f32.xlu0 %v3880_v45  ;;  %v2025_v36 = vadd.f32 %v2009_v6, %v1993_v56  ;;  %v6501_v24 = vpop.eup %4683  ;;  %v2519_v45 = vmul.f32 0.6931472, %v4680_v63  ;;  %v2521_v57 = vmul.f32 0.6931472, %v4682_v41  ;;  %v2168_v6 = vmul.f32 12.507343, %v2120_v44 }
 0x51a   :  { %1523 = vadd.xlane.f32.xlu1 %v1522_v62  ;;  %v2024_v62 = vadd.f32 %v2008_v60, %v1992_v51  ;;  %v3222_v60 = vmul.f32 %v6440_v0, %v3174_v31  ;;  %v2169_v51 = vmul.f32 12.507343, %v2121_v13  ;;  %v2280_v56 = vmul.f32 %v2216_v52, %v2200_v40 }
 0x51b   :  { %v2073_v7 = vmul.f32 %v2057_v61, %v2025_v36  ;;  %v2281_v63 = vmul.f32 %v2217_v43, %v2201_v46  ;;  %v2296_v54 = vadd.f32 7.0, %v6443_v23  ;;  %v2297_v15 = vadd.f32 7.0, %v6457_v1 }
 0x51c   :  { %v2072_v55 = vmul.f32 %v2056_v42, %v2024_v62  ;;  %v3223_v53 = vmul.f32 %v6463_v4, %v3175_v28  ;;  %v3239_v41 = vmul.f32 1.5056327e-07, %v6460_v33  ;;  %v6515_v0 = vadd.f32 0.5, %v6434_v59 }
 0x51d   :  { %v6506_v37 = vpop.eup %4685  ;;  %v2105_v20 = vadd.f32 %v2089_v10, %v2073_v7  ;;  %v6518_v61 = vmul.f32 %v2519_v45, %v6470_v39  ;;  %4691 = vlog2.f32 %v6504_v38  ;;  %v2248_v31 = vmul.f32 -0.1385711, %v2200_v40 }
 0x51e   :  { %1532 = vadd.xlane.f32.xlu1 %v1531_v58  ;;  %v3238_v58 = vmul.f32 1.5056327e-07, %v6437_v9  ;;  %v2104_v22 = vadd.f32 %v2088_v8, %v2072_v55  ;;  %v4688_v42 = vpop.eup %4687  ;;  %v2360_v62 = vmul.f32 %v2296_v54, %v2280_v56  ;;  %v6522_v8 = vadd.f32 8.0, %v6443_v23 }
 0x51f   :  { %v2153_v44 = vmul.f32 %v2137_v26, %v2105_v20  ;;  %v2249_v4 = vmul.f32 -0.1385711, %v2201_v46  ;;  %v2361_v33 = vmul.f32 %v2297_v15, %v2281_v63  ;;  %v6525_v59 = vadd.f32 8.0, %v6457_v1 }
 0x520   :  { %v2152_v9 = vmul.f32 %v2136_v17, %v2104_v22  ;;  %v3254_v13 = vadd.f32 %v3238_v58, %v3222_v60  ;;  %v6528_v17 = vmul.f32 %v2521_v57, %v6473_v12  ;;  %v3255_v39 = vadd.f32 %v3239_v41, %v3223_v53  ;;  %v4690_v20 = vpop.eup %4689 }
 0x521   :  { %v2185_v28 = vadd.f32 %v2169_v51, %v2153_v44  ;;  %4693 = vlog2.f32 %v6515_v0  ;;  %v6532_v40 = vadd.f32 0.5, %v6198_v11  ;;  %v6535_v10 = vadd.f32 0.5, %v6186_v30 }
 0x522   :  { %1526 = vadd.xlane.f32.xlu1 %v1525_v19  ;;  %v2184_v19 = vadd.f32 %v2168_v6, %v2152_v9  ;;  %v3287_v26 = vmul.f32 %v4688_v42, %v3254_v13  ;;  %v2328_v55 = vmul.f32 9.984369e-06, %v2280_v56  ;;  %v2440_v60 = vmul.f32 %v6522_v8, %v2360_v62 }
 0x523   :  { %v2233_v46 = vmul.f32 %v2217_v43, %v2185_v28  ;;  %v2696_v12 = vadd.f32 1.0, %v6213_v16  ;;  %v2441_v58 = vmul.f32 %v6525_v59, %v2361_v33  ;;  %v2728_v7 = vadd.f32 2.0, %v6213_v16 }
 0x524   :  { %v2232_v36 = vmul.f32 %v2216_v52, %v2184_v19  ;;  %v2697_v52 = vadd.f32 1.0, %v6195_v35  ;;  %v3289_v22 = vmul.f32 %v4690_v20, %v3255_v39  ;;  %v2329_v11 = vmul.f32 9.984369e-06, %v2281_v63 }
 0x525   :  { %v2265_v57 = vadd.f32 %v2249_v4, %v2233_v46  ;;  %v2712_v6 = vadd.f32 676.5204, %v2696_v12  ;;  %v2729_v30 = vadd.f32 2.0, %v6195_v35  ;;  %4695 = vlog2.f32 %v3287_v26 }
 0x526   :  { %v2264_v45 = vadd.f32 %v2248_v31, %v2232_v36  ;;  %v6543_v43 = vadd.f32 0.5, %v2296_v54  ;;  %v2713_v51 = vadd.f32 676.5204, %v2697_v52  ;;  %v2760_v56 = vmul.f32 -1259.1392, %v2696_v12 }
 0x527   :  { %4697 = vrcp.f32 %v2440_v60  ;;  %v2744_v53 = vmul.f32 %v2728_v7, %v2712_v6  ;;  %v2761_v41 = vmul.f32 -1259.1392, %v2697_v52  ;;  %v2313_v9 = vmul.f32 %v2297_v15, %v2265_v57 }
 0x528   :  { %v2312_v42 = vmul.f32 %v2296_v54, %v2264_v45  ;;  %4699 = vrcp.f32 %v2441_v58  ;;  %v2745_v13 = vmul.f32 %v2729_v30, %v2713_v51  ;;  %v2792_v44 = vmul.f32 %v2728_v7, %v2696_v12 }
 0x529   :  { %v2408_v19 = vmul.f32 1.5056327e-07, %v2360_v62  ;;  %v2776_v31 = vadd.f32 %v2760_v56, %v2744_v53  ;;  %v2793_v28 = vmul.f32 %v2729_v30, %v2697_v52  ;;  %v2808_v63 = vadd.f32 3.0, %v6213_v16 }
 0x52a   :  { %v2409_v4 = vmul.f32 1.5056327e-07, %v2361_v33  ;;  %v6546_v39 = vadd.f32 0.5, %v2297_v15  ;;  %v2777_v36 = vadd.f32 %v2761_v41, %v2745_v13  ;;  %v2809_v20 = vadd.f32 3.0, %v6195_v35  ;;  %v4692_v26 = vpop.eup %4691 }
 0x52b   :  { %v2344_v54 = vadd.f32 %v2328_v55, %v2312_v42  ;;  %4701 = vlog2.f32 %v6543_v43  ;;  %v2824_v46 = vmul.f32 %v2808_v63, %v2776_v31  ;;  %v2840_v45 = vmul.f32 771.3234, %v2792_v44 }
 0x52c   :  { %v2345_v60 = vadd.f32 %v2329_v11, %v2313_v9  ;;  %v2825_v57 = vmul.f32 %v2809_v20, %v2777_v36  ;;  %v2841_v12 = vmul.f32 771.3234, %v2793_v28  ;;  %v2872_v62 = vmul.f32 %v2808_v63, %v2792_v44 }
 0x52d   :  { %v2856_v58 = vadd.f32 %v2840_v45, %v2824_v46  ;;  %v2873_v52 = vmul.f32 %v2809_v20, %v2793_v28  ;;  %v2888_v7 = vadd.f32 4.0, %v6213_v16  ;;  %v2889_v15 = vadd.f32 4.0, %v6195_v35 }
 0x52e   :  { %v4694_v33 = vpop.eup %4693  ;;  %4703 = vlog2.f32 %v6546_v39  ;;  %v2857_v6 = vadd.f32 %v2841_v12, %v2825_v57  ;;  %v2920_v30 = vmul.f32 -176.61504, %v2872_v62  ;;  %v2968_v55 = vadd.f32 5.0, %v6213_v16 }
 0x52f   :  { %v2392_v51 = vmul.f32 %v6522_v8, %v2344_v54  ;;  %v2904_v56 = vmul.f32 %v2888_v7, %v2856_v58  ;;  %v2921_v11 = vmul.f32 -176.61504, %v2873_v52  ;;  %v2952_v42 = vmul.f32 %v2888_v7, %v2872_v62 }
 0x530   :  { %v2393_v53 = vmul.f32 %v6525_v59, %v2345_v60  ;;  %v2905_v41 = vmul.f32 %v2889_v15, %v2857_v6  ;;  %v2953_v9 = vmul.f32 %v2889_v15, %v2873_v52  ;;  %v2969_v13 = vadd.f32 5.0, %v6195_v35 }
 0x531   :  { %v3351_v44 = vmul.f32 0.6931472, %v4692_v26  ;;  %v3353_v31 = vmul.f32 0.6931472, %v4694_v33  ;;  %v2936_v28 = vadd.f32 %v2920_v30, %v2904_v56  ;;  %v3000_v63 = vmul.f32 12.507343, %v2952_v42 }
 0x532   :  { %v2937_v36 = vadd.f32 %v2921_v11, %v2905_v41  ;;  %v3001_v20 = vmul.f32 12.507343, %v2953_v9  ;;  %v3032_v46 = vmul.f32 %v2968_v55, %v2952_v42  ;;  %v3048_v45 = vadd.f32 6.0, %v6213_v16  ;;  %v4696_v57 = vpop.eup %4695 }
 0x533   :  { %v6559_v8 = vadd.f32 0.9189385, %v6518_v61  ;;  %4705 = vlog2.f32 %v3289_v22  ;;  %v2424_v54 = vadd.f32 %v2408_v19, %v2392_v51  ;;  %v2984_v59 = vmul.f32 %v2968_v55, %v2936_v28 }
 0x534   :  { %v4698_v60 = vpop.eup %4697  ;;  %v2425_v12 = vadd.f32 %v2409_v4, %v2393_v53  ;;  %v2985_v62 = vmul.f32 %v2969_v13, %v2937_v36  ;;  %v3033_v58 = vmul.f32 %v2969_v13, %v2953_v9  ;;  %v3049_v26 = vadd.f32 6.0, %v6195_v35 }
 0x535   :  { %v4700_v52 = vpop.eup %4699  ;;  %4707 = vlog2.f32 %v6373_v2  ;;  %v3382_v7 = vmul.f32 %v3351_v44, %v6532_v40  ;;  %v3383_v15 = vmul.f32 %v3353_v31, %v6535_v10  ;;  %v3016_v33 = vadd.f32 %v3000_v63, %v2984_v59  ;;  %v6602_v59 = vld [vmem:[%s8072_s27 + $0x20] sm:$0xff] }
 0x536   :  { %v6566_v61 = vmul.f32 0.6931472, %v6399_v27  ;;  %v3017_v22 = vadd.f32 %v3001_v20, %v2985_v62  ;;  %v3112_v19 = vmul.f32 %v3048_v45, %v3032_v46  ;;  %v3128_v6 = vadd.f32 7.0, %v6213_v16  ;;  %8198 = vst [vmem:[#allocation72_spill] sm:$0xff] %v6602_v59 }
 0x537   :  { %v6570_v4 = vmul.f32 0.6931472, %v6478_v21  ;;  %v6573_v30 = vadd.f32 0.9189385, %v6528_v17  ;;  %v6576_v55 = vmul.f32 0.6931472, %v6501_v24  ;;  %v2459_v40 = vmul.f32 %v4698_v60, %v2424_v54 }
 0x538   :  { %8196 = vst [vmem:[#allocation70_spill] sm:$0xff] %v6566_v61  ;;  %v4702_v51 = vpop.eup %4701  ;;  %v2461_v27 = vmul.f32 %v4700_v52, %v2425_v12  ;;  %v3113_v56 = vmul.f32 %v3049_v26, %v3033_v58  ;;  %v3129_v11 = vadd.f32 7.0, %v6195_v35  ;;  %v6581_v42 = vadd.f32 0.9189385, %v3382_v7 }
 0x539   :  { %8197 = vst [vmem:[#allocation71_spill] sm:$0xff] %v6570_v4  ;;  %v6583_v53 = vadd.f32 0.9189385, %v3383_v15  ;;  %v3064_v21 = vmul.f32 %v3048_v45, %v3016_v33  ;;  %v3080_v41 = vmul.f32 -0.1385711, %v3032_v46  ;;  %v3065_v17 = vmul.f32 %v3049_v26, %v3017_v22 }
 0x53a   :  { %v3081_v9 = vmul.f32 -0.1385711, %v3033_v58  ;;  %v6585_v13 = vmul.f32 %v3128_v6, %v3112_v19  ;;  %v6588_v24 = vadd.f32 8.0, %v6213_v16  ;;  %v2583_v31 = vsub.f32 %v6573_v30, %v6429_v3 }
 0x53b   :  { %v4704_v44 = vpop.eup %4703  ;;  %v2601_v28 = vmul.f32 0.6931472, %v6506_v37  ;;  %v2504_v63 = vadd.f32 0.5, %v6443_v23  ;;  %4709 = vlog2.f32 %v2459_v40  ;;  %v2523_v36 = vmul.f32 0.6931472, %v4702_v51  ;;  %v6611_v23 = vld [vmem:[%s8072_s27 + $0x28] sm:$0xff] }
 0x53c   :  { %4711 = vlog2.f32 %v2461_v27  ;;  %v3193_v20 = vmul.f32 %v3129_v11, %v3113_v56  ;;  %v6595_v46 = vadd.f32 8.0, %v6195_v35  ;;  %v3414_v45 = vsub.f32 %v6581_v42, %v6504_v38  ;;  %8200 = vst [vmem:[#allocation74_spill] sm:$0xff] %v6611_v23  ;;  %v1706_v42 = vld [vmem:[%s7962_s16] sm:$0x3] }
 0x53d   :  { %v3096_v54 = vadd.f32 %v3080_v41, %v3064_v21  ;;  %v6606_v3 = vadd.f32 %v6602_v59, %v6171_v18  ;;  %v6615_v37 = vadd.f32 %v6611_v23, %v6174_v47  ;;  %v3415_v38 = vsub.f32 %v6583_v53, %v6515_v0 }
 0x53e   :  { %v2505_v60 = vadd.f32 0.5, %v6457_v1  ;;  %v3097_v12 = vadd.f32 %v3081_v9, %v3065_v17  ;;  %v3272_v62 = vmul.f32 %v6588_v24, %v6585_v13  ;;  %v3431_v58 = vmul.f32 0.6931472, %v4696_v57 }
 0x53f   :  { %8199 = vst [vmem:[#allocation73_spill] sm:$0xff] %v6606_v3  ;;  %8201 = vst [vmem:[#allocation75_spill] sm:$0xff] %v6615_v37  ;;  %v6622_v26 = vadd.f32 0.5, %v3128_v6  ;;  %v6625_v52 = vadd.f32 -1.0, %v6606_v3  ;;  %v6628_v7 = vadd.f32 -1.0, %v6615_v37  ;;  %v2552_v22 = vmul.f32 %v2523_v36, %v2504_v63 }
 0x540   :  { %v4706_v15 = vpop.eup %4705  ;;  %v2525_v33 = vmul.f32 0.6931472, %v4704_v44  ;;  %v3160_v30 = vmul.f32 9.984369e-06, %v3112_v19  ;;  %v3273_v0 = vmul.f32 %v6595_v46, %v3193_v20  ;;  %v3144_v1 = vmul.f32 %v3128_v6, %v3096_v54 }
 0x541   :  { %8202 = vst [vmem:[#allocation76_spill] sm:$0xff] %v6625_v52  ;;  %8203 = vst [vmem:[#allocation77_spill] sm:$0xff] %v6628_v7  ;;  %v3161_v40 = vmul.f32 9.984369e-06, %v3113_v56  ;;  %v1866_v51 = vadd.f32 1.0, %v6625_v52  ;;  %v1867_v57 = vadd.f32 1.0, %v6628_v7  ;;  %v3145_v53 = vmul.f32 %v3129_v11, %v3097_v12 }
 0x542   :  { %v6633_v27 = vpop.eup %4707  ;;  %4713 = vrcp.f32 %v3272_v62  ;;  %v6638_v21 = vadd.f32 0.5, %v3129_v11  ;;  %v1898_v19 = vadd.f32 2.0, %v6625_v52  ;;  %v1899_v41 = vadd.f32 2.0, %v6628_v7 }
 0x543   :  { %8204 = vst [vmem:[#allocation78_spill] sm:$0xff] %v6633_v27  ;;  %4715 = vlog2.f32 %v6622_v26  ;;  %v1882_v6 = vadd.f32 676.5204, %v1866_v51  ;;  %v1883_v56 = vadd.f32 676.5204, %v1867_v57  ;;  %v2553_v44 = vmul.f32 %v2525_v33, %v2505_v60 }
 0x544   :  { %v3433_v9 = vmul.f32 0.6931472, %v4706_v15  ;;  %v2568_v63 = vadd.f32 0.9189385, %v2552_v22  ;;  %4717 = vrcp.f32 %v3273_v0  ;;  %v6644_v36 = vrot.slane %v1706_v42, %v5569_v49 }
 0x545   :  { %v1914_v54 = vmul.f32 %v1898_v19, %v1882_v6  ;;  %v1930_v11 = vmul.f32 -1259.1392, %v1866_v51  ;;  %v6647_v12 = vrot.slane %v1706_v42, %v5578_v25  ;;  %v3176_v62 = vadd.f32 %v3160_v30, %v3144_v1 }
 0x546   :  { %v3177_v10 = vadd.f32 %v3161_v40, %v3145_v53  ;;  %v8205_v2 = vsub.f32 %v6559_v8, %v6420_v29  ;;  %v6656_v15 = vadd.f32 %v2601_v28, %v2583_v31  ;;  %v1915_v33 = vmul.f32 %v1899_v41, %v1883_v56 }
 0x547   :  { %v1931_v49 = vmul.f32 -1259.1392, %v1867_v57  ;;  %v6658_v6 = vadd.f32 %v3431_v58, %v3414_v45  ;;  %v6660_v25 = vadd.f32 %v3433_v9, %v3415_v38  ;;  %v2569_v30 = vadd.f32 0.9189385, %v2553_v44 }
 0x548   :  { %v6654_v60 = vadd.f32 %v6576_v55, %v8205_v2  ;;  %v4710_v22 = vpop.eup %4709  ;;  %v2584_v1 = vsub.f32 %v2568_v63, %v6543_v43  ;;  %v3240_v29 = vmul.f32 1.5056327e-07, %v6585_v13  ;;  %v3241_v8 = vmul.f32 1.5056327e-07, %v3193_v20 }
 0x549   :  { %v4712_v40 = vpop.eup %4711  ;;  %v1946_v2 = vadd.f32 %v1930_v11, %v1914_v54  ;;  %v3224_v55 = vmul.f32 %v6588_v24, %v3176_v62  ;;  %v3225_v31 = vmul.f32 %v6595_v46, %v3177_v10  ;;  %v6667_v28 = vadd.f32 1.0, %v6224_v50 }
 0x54a   :  { %v1512_v17 = vpop.xlane.xlu1 %1511  ;;  %v6670_v45 = vadd.f32 1.0, %v6216_v32  ;;  %v2603_v38 = vmul.f32 0.6931472, %v4710_v22  ;;  %v1947_v58 = vadd.f32 %v1931_v49, %v1915_v33  ;;  %v1962_v42 = vmul.f32 %v1898_v19, %v1866_v51 }
 0x54b   :  { %4719 = vrcp.f32 %v1512_v17  ;;  %8206 = vst [vmem:[#allocation79_spill] sm:$0xff] %v6667_v28  ;;  %v1978_v43 = vadd.f32 3.0, %v6625_v52  ;;  %v2585_v13 = vsub.f32 %v2569_v30, %v6546_v39  ;;  %v2605_v20 = vmul.f32 0.6931472, %v4712_v40 }
 0x54c   :  { %4721 = vlog2.f32 %v6638_v21  ;;  %8207 = vst [vmem:[#allocation80_spill] sm:$0xff] %v6670_v45  ;;  %v3336_v56 = vadd.f32 0.5, %v6213_v16  ;;  %v6676_v24 = vadd.f32 0.5, %v6195_v35  ;;  %v1963_v10 = vmul.f32 %v1899_v41, %v1867_v57 }
 0x54d   :  { %v1979_v46 = vadd.f32 3.0, %v6628_v7  ;;  %v1994_v17 = vmul.f32 %v1978_v43, %v1946_v2  ;;  %v2010_v9 = vmul.f32 771.3234, %v1962_v42  ;;  %v3256_v44 = vadd.f32 %v3240_v29, %v3224_v55 }
 0x54e   :  { %v1515_v0 = vpop.xlane.xlu1 %1514  ;;  %v6680_v63 = vadd.f32 676.5204, %v6667_v28  ;;  %v6683_v51 = vadd.f32 676.5204, %v6670_v45  ;;  %v6686_v39 = vadd.f32 2.0, %v6224_v50  ;;  %v6688_v16 = vadd.f32 %v2603_v38, %v2584_v1 }
 0x54f   :  { %4723 = vrcp.f32 %v1515_v0  ;;  %v4714_v19 = vpop.eup %4713  ;;  %v3257_v35 = vadd.f32 %v3241_v8, %v3225_v31  ;;  %v1995_v54 = vmul.f32 %v1979_v46, %v1947_v58  ;;  %v2011_v57 = vmul.f32 771.3234, %v1963_v10 }
 0x550   :  { %v4716_v41 = vpop.eup %4715  ;;  %v6690_v62 = vadd.f32 %v2605_v20, %v2585_v13  ;;  %v2042_v33 = vmul.f32 %v1978_v43, %v1962_v42  ;;  %v2058_v49 = vadd.f32 4.0, %v6625_v52  ;;  %v2059_v22 = vadd.f32 4.0, %v6628_v7 }
 0x551   :  { %v4718_v0 = vpop.eup %4717  ;;  %v2026_v30 = vadd.f32 %v2010_v9, %v1994_v17  ;;  %v2043_v40 = vmul.f32 %v1979_v46, %v1963_v10  ;;  %v2138_v29 = vadd.f32 5.0, %v6625_v52  ;;  %v6696_v1 = vadd.f32 5.0, %v6628_v7 }
 0x552   :  { %v1518_v53 = vpop.xlane.xlu1 %1517  ;;  %v3291_v2 = vmul.f32 %v4714_v19, %v3256_v44  ;;  %v2090_v55 = vmul.f32 -176.61504, %v2042_v33  ;;  %v6699_v31 = vadd.f32 6.0, %v6625_v52  ;;  %v3355_v43 = vmul.f32 0.6931472, %v4716_v41  ;;  %v8208_v44 = vld [vmem:[#allocation39_spill] sm:$0xff] }
 0x553   :  { %4725 = vrcp.f32 %v1518_v53  ;;  %v2027_v13 = vadd.f32 %v2011_v57, %v1995_v54  ;;  %v3293_v10 = vmul.f32 %v4718_v0, %v3257_v35  ;;  %v2091_v46 = vmul.f32 -176.61504, %v2043_v40  ;;  %v8209_v57 = vld [vmem:[#allocation49_spill] sm:$0xff] }
 0x554   :  { %v2122_v17 = vmul.f32 %v2058_v49, %v2042_v33  ;;  %v2074_v5 = vmul.f32 %v2058_v49, %v2026_v30  ;;  %v6711_v54 = vadd.f32 6.0, %v6628_v7 }
 0x555   :  { %v2075_v33 = vmul.f32 %v2059_v22, %v2027_v13 }
 0x556   :  { %v1521_v11 = vpop.xlane.xlu1 %1520 }
 0x557   :  { %4727 = vrcp.f32 %v1521_v11  ;;  %v3384_v11 = vmul.f32 %v3355_v43, %v3336_v56  ;;  %v2202_v56 = vmul.f32 %v2138_v29, %v2122_v17  ;;  %v2107_v13 = vadd.f32 %v2091_v46, %v2075_v33 }
 0x558   :  { %v4720_v8 = vpop.eup %4719  ;;  %4729 = vlog2.f32 %v3291_v2 }
 0x559   :  { %v4722_v38 = vpop.eup %4721  ;;  %v1542_v58 = vmul.f32 %v4720_v8, %v6116_v34  ;;  %v1543_v42 = vmul.f32 %v4720_v8, %v6118_v48  ;;  %v2123_v48 = vmul.f32 %v2059_v22, %v2043_v40  ;;  %v8212_v40 = vld [vmem:[#allocation31_spill] sm:$0xff]  ;;  %4731 = vlog2.f32 %v3293_v10 }
 0x55a   :  { %v3997_v20 = vpop.permute.xlu1 %3996  ;;  %v3357_v34 = vmul.f32 0.6931472, %v4722_v38  ;;  %v6726_v43 = vadd.f32 0.9189385, %v3384_v11  ;;  %v6731_v10 = vmul.f32 -0.1385711, %v2202_v56  ;;  %v2282_v11 = vmul.f32 %v6699_v31, %v2202_v56 }
 0x55b   :  { %v6704_v9 = vmul.f32 %v6088_v14, %v1542_v58  ;;  %v6707_v53 = vmul.f32 %v6088_v14, %v1543_v42  ;;  %v4017_v19 = vadd.f32 %v3997_v20, %v8208_v44  ;;  %v2170_v58 = vmul.f32 12.507343, %v2122_v17  ;;  %v8213_v20 = vld [vmem:[#allocation50_spill] sm:$0xff] }
 0x55c   :  { %v4724_v27 = vpop.eup %4723  ;;  %v2171_v49 = vmul.f32 12.507343, %v2123_v48  ;;  %v2106_v42 = vadd.f32 %v2090_v55, %v2074_v5  ;;  %v3385_v22 = vmul.f32 %v3357_v34, %v6676_v24  ;;  %v2203_v23 = vmul.f32 %v6696_v1, %v2123_v48  ;;  %v8219_v34 = vld [vmem:[#allocation52_spill] sm:$0xff] }
 0x55d   :  { %v1544_v35 = vmul.f32 %v4724_v27, %v8209_v57  ;;  %v6714_v41 = vadd.f32 -1.0, %v4017_v19  ;;  %v3494_v14 = vadd.f32 1.0, %v6704_v9  ;;  %v3503_v8 = vadd.f32 1.0, %v6707_v53  ;;  %v8214_v19 = vld [vmem:[#allocation43_spill] sm:$0xff] }
 0x55e   :  { %v4001_v0 = vpop.permute.xlu1 %4000  ;;  %v1545_v44 = vmul.f32 %v4724_v27, %v8213_v20  ;;  %v6734_v5 = vadd.f32 7.0, %v6625_v52  ;;  %v8216_v27 = vld [vmem:[#allocation34_spill] sm:$0xff]  ;;  %v3497_v17 = vmul.f32 -0.5, %v6704_v9  ;;  %v6738_v24 = vmul.f32 -0.1385711, %v2203_v23 }
 0x55f   :  { %8210 = vst [vmem:[#allocation39_spill] sm:$0xff] %v6714_v41  ;;  %v4019_v38 = vadd.f32 %v4001_v0, %v8212_v40  ;;  %v6723_v57 = vmul.f32 %v8214_v19, %v1544_v35  ;;  %4733 = vlog2.f32 %v3494_v14  ;;  %v2154_v35 = vmul.f32 %v2138_v29, %v2106_v42 }
 0x560   :  { %4735 = vlog2.f32 %v3503_v8  ;;  %v6741_v46 = vmul.f32 %v8214_v19, %v1545_v44  ;;  %v4726_v33 = vpop.eup %4725  ;;  %v3506_v0 = vmul.f32 -0.5, %v6707_v53  ;;  %v6748_v14 = vadd.f32 0.9189385, %v3385_v22  ;;  %v8218_v22 = vld [vmem:[#allocation51_spill] sm:$0xff] }
 0x561   :  { %v6729_v59 = vadd.f32 -1.0, %v4019_v38  ;;  %v3512_v48 = vadd.f32 1.0, %v6723_v57  ;;  %v2155_v8 = vmul.f32 %v6696_v1, %v2107_v13  ;;  %v2283_v40 = vmul.f32 %v6711_v54, %v2203_v23 }
 0x562   :  { %v4005_v2 = vpop.permute.xlu1 %4004  ;;  %v6757_v38 = vadd.f32 7.0, %v6628_v7  ;;  %v3498_v20 = vadd.f32 1.0, %v3497_v17  ;;  %v3500_v44 = vand.u32 2147483647, %v6704_v9  ;;  %v2186_v19 = vadd.f32 %v2170_v58, %v2154_v35  ;;  %v8220_v35 = vld [vmem:[#allocation55_spill] sm:$0xff] }
 0x563   :  { %8215 = vst [vmem:[#allocation49_spill] sm:$0xff] %v6729_v59  ;;  %v4021_v55 = vadd.f32 %v4005_v2, %v8216_v27  ;;  %4737 = vlog2.f32 %v3512_v48  ;;  %v6760_v56 = vmul.f32 9.984369e-06, %v2282_v11  ;;  %v1546_v27 = vmul.f32 %v4726_v33, %v8218_v22  ;;  %v8227_v59 = vld [vmem:[#allocation42_spill] sm:$0xff] }
 0x564   :  { %v4728_v42 = vpop.eup %4727  ;;  %v1547_v29 = vmul.f32 %v4726_v33, %v8219_v34  ;;  %v3521_v13 = vadd.f32 1.0, %v6741_v46  ;;  %v3509_v48 = vand.u32 2147483647, %v6707_v53  ;;  %v2187_v58 = vadd.f32 %v2171_v49, %v2155_v8  ;;  %v8223_v8 = vld [vmem:[#allocation44_spill] sm:$0xff] }
 0x565   :  { %v6753_v2 = vadd.f32 -1.0, %v4021_v55  ;;  %v6767_v23 = vpop.eup %4729  ;;  %v3507_v55 = vadd.f32 1.0, %v3506_v0  ;;  %v1548_v61 = vmul.f32 %v4728_v42, %v8220_v35  ;;  %v6773_v22 = vmul.f32 9.984369e-06, %v2283_v40 }
 0x566   :  { %4739 = vlog2.f32 %v3521_v13  ;;  %v6776_v34 = vmul.f32 %v6734_v5, %v2282_v11  ;;  %vm6778_vm0 = vcmp.lt.f32.partialorder %v3500_v44, 0.0004427343  ;;  %v3515_v0 = vmul.f32 -0.5, %v6723_v57  ;;  %v6789_v49 = vpop.eup %4731 }
 0x567   :  { %8217 = vst [vmem:[#allocation31_spill] sm:$0xff] %v6753_v2  ;;  %v6784_v1 = vmul.f32 %v6699_v31, %v2186_v19  ;;  %v6787_v17 = vmul.f32 %v6757_v38, %v2283_v40  ;;  %v6792_v13 = vmul.f32 %v8223_v8, %v1546_v27  ;;  %v6795_v11 = vmul.f32 %v8223_v8, %v1547_v29  ;;  %v8224_v2 = vld [vmem:[#allocation56_spill] sm:$0xff] }
 0x568   :  { %v3499_v44 = vmul.f32 %v3498_v20, %v6704_v9  ;;  %v1642_v35 = vadd.f32 %v6171_v18, %v6704_v9  ;;  %v1549_v31 = vmul.f32 %v4728_v42, %v8224_v2  ;;  %v3508_v19 = vmul.f32 %v3507_v55, %v6707_v53 }
 0x569   :  { %vm6802_vm2 = vcmp.lt.f32.partialorder %v3509_v48, 0.0004427343  ;;  %v1643_v27 = vadd.f32 %v6174_v47, %v6707_v53  ;;  %v6809_v29 = vmul.f32 %v8227_v59, %v1548_v61  ;;  %v1766_v30 = vadd.f32 1e-08, %v6704_v9  ;;  %v8228_v61 = vld [vmem:[#allocation14_spill] sm:$0xff] }
 0x56a   :  { %v1658_v20 = vadd.f32 1e-08, %v1642_v35  ;;  %v3516_v37 = vadd.f32 1.0, %v3515_v0  ;;  %v3524_v2 = vmul.f32 -0.5, %v6741_v46  ;;  %v1767_v55 = vadd.f32 1e-08, %v6707_v53  ;;  %v6820_v0 = vpop.permute.xlu0 %3990 }
 0x56b   :  { %v1659_v42 = vadd.f32 1e-08, %v1643_v27  ;;  %v3530_v50 = vadd.f32 1.0, %v6792_v13  ;;  %v3539_v9 = vadd.f32 1.0, %v6795_v11  ;;  %8229 = vst [vmem:[#allocation50_spill] sm:$0xff] %v6820_v0  ;;  %v6823_v35 = vmul.f32 %v8227_v59, %v1549_v31 }
 0x56c   :  { %v4734_v4 = vpop.eup %4733  ;;  %4741 = vlog2.f32 %v1658_v20  ;;  %v3517_v20 = vmul.f32 %v3516_v37, %v6723_v57  ;;  %v6834_v40 = vmul.f32 %v6711_v54, %v2187_v58  ;;  %v6837_v37 = vadd.f32 8.0, %v6625_v52 }
 0x56d   :  { %v3496_v8 = vmul.f32 0.6931472, %v4734_v4  ;;  %v4736_v41 = vpop.eup %4735  ;;  %v3518_v4 = vand.u32 2147483647, %v6723_v57  ;;  %4743 = vlog2.f32 %v1659_v42  ;;  %v1644_v54 = vadd.f32 %v6171_v18, %v6723_v57 }
 0x56e   :  { %v3505_v3 = vmul.f32 0.6931472, %v4736_v41  ;;  %v3527_v41 = vand.u32 2147483647, %v6741_v46  ;;  %4745 = vlog2.f32 %v1766_v30  ;;  %v1530_v31 = vpop.xlane.xlu0 %1529  ;;  %v3542_v30 = vmul.f32 -0.5, %v6795_v11 }
 0x56f   :  { %v3502_v48 = vsel %vm6778_vm0, %v3499_v44, %v3496_v8  ;;  %v8230_v44 = vld [vmem:[#allocation5_spill] sm:$0xff]  ;;  %4747 = vlog2.f32 %v1767_v55  ;;  %vm3519_vm3 = vcmp.lt.f32.partialorder %v3518_v4, 0.0004427343  ;;  %v6846_v58 = vadd.f32 8.0, %v6628_v7 }
 0x570   :  { %v3638_v45 = vsub.f32 %v8228_v61, %v3502_v48  ;;  %v3511_v53 = vsel %vm6802_vm2, %v3508_v19, %v3505_v3  ;;  %v4738_v33 = vpop.eup %4737  ;;  %v3525_v48 = vadd.f32 1.0, %v3524_v2  ;;  %4749 = vlog2.f32 %v3530_v50  ;;  %v8231_v50 = vld [vmem:[#allocation16_spill] sm:$0xff] }
 0x571   :  { %v3639_v27 = vsub.f32 %v8230_v44, %v3511_v53  ;;  %v3514_v42 = vmul.f32 0.6931472, %v4738_v33  ;;  %v3533_v61 = vmul.f32 -0.5, %v6792_v13  ;;  %4751 = vlog2.f32 %v3539_v9 }
 0x572   :  { %v3654_v8 = vmul.f32 %v3638_v45, %v3638_v45  ;;  %v3548_v3 = vadd.f32 1.0, %v6809_v29  ;;  %v3536_v53 = vand.u32 2147483647, %v6792_v13  ;;  %v3526_v9 = vmul.f32 %v3525_v48, %v6741_v46 }
 0x573   :  { %v3655_v59 = vmul.f32 %v3639_v27, %v3639_v27  ;;  %v3520_v19 = vsel %vm3519_vm3, %v3517_v20, %v3514_v42  ;;  %v4740_v45 = vpop.eup %4739  ;;  %v3534_v33 = vadd.f32 1.0, %v3533_v61  ;;  %v3557_v44 = vadd.f32 1.0, %v6823_v35  ;;  %v8232_v42 = vld [vmem:[#allocation7_spill] sm:$0xff] }
 0x574   :  { %v3640_v55 = vsub.f32 %v8231_v50, %v3520_v19  ;;  %4753 = vlog2.f32 %v3548_v3  ;;  %v3523_v4 = vmul.f32 0.6931472, %v4740_v45  ;;  %vm3528_vm4 = vcmp.lt.f32.partialorder %v3527_v41, 0.0004427343 }
 0x575   :  { %v3702_v2 = vadd.f32 %v3655_v59, %v3654_v8  ;;  %4755 = vrcp.f32 %v1530_v31  ;;  %v3543_v8 = vadd.f32 1.0, %v3542_v30  ;;  %v1645_v20 = vadd.f32 %v6174_v47, %v6741_v46  ;;  %v8244_v59 = vld [vmem:[#allocation18_spill] sm:$0xff] }
 0x576   :  { %v3529_v27 = vsel %vm3528_vm4, %v3526_v9, %v3523_v4  ;;  %4757 = vlog2.f32 %v3557_v44  ;;  %v3656_v61 = vmul.f32 %v3640_v55, %v3640_v55  ;;  %vm6851_vm5 = vcmp.lt.f32.partialorder %v3536_v53, 0.0004427343 }
 0x577   :  { %3703 = vadd.xlane.f32.xlu0 %v3702_v2  ;;  %v3641_v48 = vsub.f32 %v8232_v42, %v3529_v27  ;;  %v3551_v41 = vmul.f32 -0.5, %v6809_v29  ;;  %v1660_v3 = vadd.f32 1e-08, %v1644_v54  ;;  %v3535_v31 = vmul.f32 %v3534_v33, %v6792_v13  ;;  %v8235_v42 = vld [vmem:[#allocation59_spill] sm:$0xff] }
 0x578   :  { %v1661_v19 = vadd.f32 1e-08, %v1645_v20  ;;  %v1768_v45 = vadd.f32 1e-08, %v6723_v57  ;;  %v1769_v30 = vadd.f32 1e-08, %v6741_v46  ;;  %v3544_v44 = vmul.f32 %v3543_v8, %v6795_v11 }
 0x579   :  { %v4742_v2 = vpop.eup %4741  ;;  %v3657_v50 = vmul.f32 %v3641_v48, %v3641_v48  ;;  %v3545_v4 = vand.u32 2147483647, %v6795_v11  ;;  %v3554_v55 = vand.u32 2147483647, %v6809_v29  ;;  %4759 = vlog2.f32 %v1660_v3 }
 0x57a   :  { %v4744_v53 = vpop.eup %4743  ;;  %v1675_v9 = vmul.f32 0.6931472, %v4742_v2  ;;  %v3560_v54 = vmul.f32 -0.5, %v6823_v35  ;;  %4761 = vlog2.f32 %v1661_v19  ;;  %v3552_v57 = vadd.f32 1.0, %v3551_v41  ;;  %v8236_v2 = vld [vmem:[#allocation60_spill] sm:$0xff] }
 0x57b   :  { %v4746_v33 = vpop.eup %4745  ;;  %v3705_v27 = vadd.f32 %v3657_v50, %v3656_v61  ;;  %v1677_v20 = vmul.f32 0.6931472, %v4744_v53  ;;  %4763 = vlog2.f32 %v1768_v45  ;;  %v3563_v7 = vand.u32 2147483647, %v6823_v35  ;;  %v4987_v45 = vld [vmem:[%s8072_s27] sm:$0xff] }
 0x57c   :  { %v4748_v46 = vpop.eup %4747  ;;  %v1723_v48 = vmul.f32 %v8235_v42, %v1675_v9  ;;  %v1783_v0 = vmul.f32 0.6931472, %v4746_v33  ;;  %4765 = vlog2.f32 %v1769_v30  ;;  %vm6866_vm6 = vcmp.lt.f32.partialorder %v3545_v4, 0.0004427343  ;;  %v4988_v4 = vld [vmem:[%s8072_s27 + $0x8] sm:$0xff] }
 0x57d   :  { %v4750_v3 = vpop.eup %4749  ;;  %3706 = vadd.xlane.f32.xlu1 %v3705_v27  ;;  %v1724_v52 = vmul.f32 %v8236_v2, %v1677_v20  ;;  %v1785_v8 = vmul.f32 0.6931472, %v4748_v46  ;;  %vm6870_vm7 = vcmp.lt.f32.partialorder %v3554_v55, 0.0004427343  ;;  %v3561_v53 = vadd.f32 1.0, %v3560_v54 }
 0x57e   :  { %v4752_v41 = vpop.eup %4751  ;;  %v1750_v19 = vsub.f32 %v6644_v36, %v1723_v48  ;;  %v1814_v30 = vmul.f32 %v4987_v45, %v1783_v0  ;;  %v3532_v50 = vmul.f32 0.6931472, %v4750_v3  ;;  %v3553_v27 = vmul.f32 %v3552_v57, %v6809_v29  ;;  %v8243_v3 = vld [vmem:[#allocation20_spill] sm:$0xff] }
 0x57f   :  { %v1751_v9 = vsub.f32 %v6647_v12, %v1724_v52  ;;  %v1815_v55 = vmul.f32 %v4988_v4, %v1785_v8  ;;  %v3541_v33 = vmul.f32 0.6931472, %v4752_v41  ;;  %vm6885_vm8 = vcmp.lt.f32.partialorder %v3563_v7, 0.0004427343 }
 0x580   :  { %v1830_v46 = vadd.f32 %v1814_v30, %v1750_v19  ;;  %v3538_v42 = vsel %vm6851_vm5, %v3535_v31, %v3532_v50  ;;  %v1646_v52 = vadd.f32 %v6171_v18, %v6792_v13  ;;  %v3562_v7 = vmul.f32 %v3561_v53, %v6823_v35 }
 0x581   :  { %v4754_v20 = vpop.eup %4753  ;;  %v1831_v0 = vadd.f32 %v1815_v55, %v1751_v9  ;;  %v3547_v54 = vsel %vm6866_vm6, %v3544_v44, %v3541_v33  ;;  %v3642_v2 = vsub.f32 %v8243_v3, %v3538_v42  ;;  %v2266_v19 = vadd.f32 %v6731_v10, %v6784_v1  ;;  %v8245_v55 = vld [vmem:[#allocation21_spill] sm:$0xff]  ;;  %v8246_v42 = vld [vmem:[#allocation19_spill] sm:$0xff] }
 0x582   :  { %v3550_v8 = vmul.f32 0.6931472, %v4754_v20  ;;  %v6894_v57 = vpop.eup %4755  ;;  %v2646_v41 = vadd.f32 %v6654_v60, %v1830_v46  ;;  %v3643_v31 = vsub.f32 %v8244_v59, %v3547_v54  ;;  %v3435_v44 = vmul.f32 0.6931472, %v6767_v23 }
 0x583   :  { %v4758_v45 = vpop.eup %4757  ;;  %v2647_v30 = vadd.f32 %v6656_v15, %v1831_v0  ;;  %v3658_v50 = vmul.f32 %v3642_v2, %v3642_v2  ;;  %v3437_v20 = vmul.f32 0.6931472, %v6789_v49  ;;  %v1647_v10 = vadd.f32 %v6174_v47, %v6795_v11 }
 0x584   :  { %v3556_v28 = vsel %vm6870_vm7, %v3553_v27, %v3550_v8  ;;  %v3478_v9 = vsub.f32 %v2646_v41, %v6658_v6  ;;  %v3659_v4 = vmul.f32 %v3643_v31, %v3643_v31  ;;  %v3559_v60 = vmul.f32 0.6931472, %v4758_v45  ;;  %v8247_v41 = vld [vmem:[#allocation64_spill] sm:$0xff] }
 0x585   :  { %v3644_v33 = vsub.f32 %v8245_v55, %v3556_v28  ;;  %v3479_v53 = vsub.f32 %v2647_v30, %v6660_v25  ;;  %v2267_v15 = vadd.f32 %v6738_v24, %v6834_v40  ;;  %v2314_v6 = vmul.f32 %v6734_v5, %v2266_v19  ;;  %v8248_v19 = vld [vmem:[#allocation65_spill] sm:$0xff] }
 0x586   :  { %v4760_v1 = vpop.eup %4759  ;;  %v3708_v61 = vadd.f32 %v3659_v4, %v3658_v50  ;;  %v3565_v23 = vsel %vm6885_vm8, %v3562_v7, %v3559_v60  ;;  %v2442_v27 = vmul.f32 %v6837_v37, %v6776_v34  ;;  %v1662_v24 = vadd.f32 1e-08, %v1646_v52 }
 0x587   :  { %v4762_v46 = vpop.eup %4761  ;;  %v3670_v25 = vadd.f32 %v3479_v53, %v3478_v9  ;;  %v3645_v49 = vsub.f32 %v8246_v42, %v3565_v23  ;;  %v3660_v0 = vmul.f32 %v3644_v33, %v3644_v33  ;;  %v1679_v54 = vmul.f32 0.6931472, %v4760_v1  ;;  %v4989_v9 = vld [vmem:[%s8072_s27 + $0x10] sm:$0xff]  ;;  %v4990_v33 = vld [vmem:[%s8072_s27 + $0x18] sm:$0xff] }
 0x588   :  { %v4764_v3 = vpop.eup %4763  ;;  %3709 = vadd.xlane.f32.xlu0 %v3708_v61  ;;  %v1681_v2 = vmul.f32 0.6931472, %v4762_v46  ;;  %v2443_v40 = vmul.f32 %v6846_v58, %v6787_v17  ;;  %4767 = vrcp.f32 %v2442_v27  ;;  %v2315_v7 = vmul.f32 %v6757_v38, %v2267_v15 }
 0x589   :  { %v4766_v48 = vpop.eup %4765  ;;  %3671 = vadd.xlane.f32.xlu1 %v3670_v25  ;;  %v3661_v8 = vmul.f32 %v3645_v49, %v3645_v49  ;;  %v1725_v59 = vmul.f32 %v8247_v41, %v1679_v54  ;;  %v1787_v31 = vmul.f32 0.6931472, %v4764_v3  ;;  %v2346_v50 = vadd.f32 %v6760_v56, %v2314_v6 }
 0x58a   :  { %v1726_v45 = vmul.f32 %v8248_v19, %v1681_v2  ;;  %v1789_v30 = vmul.f32 0.6931472, %v4766_v48  ;;  %4769 = vrcp.f32 %v2443_v40  ;;  %v2410_v60 = vmul.f32 1.5056327e-07, %v6776_v34 }
 0x58b   :  { %v3711_v28 = vadd.f32 %v3661_v8, %v3660_v0  ;;  %v1752_v52 = vsub.f32 %v6644_v36, %v1725_v59  ;;  %v1816_v4 = vmul.f32 %v4989_v9, %v1787_v31  ;;  %v1663_v15 = vadd.f32 1e-08, %v1647_v10 }
 0x58c   :  { %v1753_v55 = vsub.f32 %v6647_v12, %v1726_v45  ;;  %v1817_v53 = vmul.f32 %v4990_v33, %v1789_v30  ;;  %v6935_v56 = vadd.f32 0.5, %v6734_v5  ;;  %v8249_v61 = vsub.f32 %v6726_v43, %v6622_v26  ;;  %v8251_v5 = vld [vmem:[#allocation57_spill] sm:$0xff]  ;;  %v8253_v43 = vld [vmem:[#allocation58_spill] sm:$0xff] }
 0x58d   :  { %3712 = vadd.xlane.f32.xlu1 %v3711_v28  ;;  %v1832_v1 = vadd.f32 %v1816_v4, %v1752_v52  ;;  %v8250_v34 = vsub.f32 %v6748_v14, %v6638_v21  ;;  %v2347_v27 = vadd.f32 %v6773_v22, %v2315_v7  ;;  %4771 = vlog2.f32 %v1662_v24  ;;  %v8255_v24 = vld [vmem:[#allocation80_spill] sm:$0xff]  ;;  %v8258_v4 = vld [vmem:[#allocation45_spill] sm:$0xff] }
 0x58e   :  { %v3464_v23 = vadd.f32 %v3435_v44, %v8249_v61  ;;  %v1833_v46 = vadd.f32 %v1817_v53, %v1753_v55  ;;  %v2394_v25 = vmul.f32 %v6837_v37, %v2346_v50  ;;  %v6946_v10 = vadd.f32 0.5, %v6757_v38 }
 0x58f   :  { %v3465_v6 = vadd.f32 %v3437_v20, %v8250_v34  ;;  %v1554_v42 = vmul.f32 %v6894_v57, %v8251_v5  ;;  %v2648_v49 = vadd.f32 %v6688_v16, %v1832_v1  ;;  %4773 = vlog2.f32 %v6935_v56 }
 0x590   :  { %v2731_v26 = vadd.f32 2.0, %v6216_v32  ;;  %v6957_v14 = vmul.f32 %v6894_v57, %v8253_v43  ;;  %v2649_v22 = vadd.f32 %v6690_v62, %v1833_v46  ;;  %4775 = vlog2.f32 %v1663_v15  ;;  %v8254_v62 = vld [vmem:[#allocation79_spill] sm:$0xff] }
 0x591   :  { %v1770_v38 = vadd.f32 1e-08, %v6792_v13  ;;  %v3480_v37 = vsub.f32 %v2648_v49, %v3464_v23  ;;  %v2395_v44 = vmul.f32 %v6846_v58, %v2347_v27  ;;  %v2411_v16 = vmul.f32 1.5056327e-07, %v6787_v17 }
 0x592   :  { %v2746_v20 = vmul.f32 %v6686_v39, %v6680_v63  ;;  %v3481_v0 = vsub.f32 %v2649_v22, %v3465_v6  ;;  %v2426_v54 = vadd.f32 %v2410_v60, %v2394_v25  ;;  %4777 = vlog2.f32 %v6946_v10  ;;  %v8256_v63 = vld [vmem:[#allocation62_spill] sm:$0xff] }
 0x593   :  { %v6953_v21 = vpop.xlane.xlu1 %3866  ;;  %v2747_v57 = vmul.f32 %v2731_v26, %v6683_v51  ;;  %v1771_v3 = vadd.f32 1e-08, %v6795_v11  ;;  %v2762_v2 = vmul.f32 -1259.1392, %v8254_v62  ;;  %v2763_v13 = vmul.f32 -1259.1392, %v8255_v24 }
 0x594   :  { %8252 = vst [vmem:[#allocation43_spill] sm:$0xff] %v6953_v21  ;;  %v2794_v58 = vmul.f32 %v6686_v39, %v8254_v62  ;;  %v3673_v40 = vadd.f32 %v3481_v0, %v3480_v37  ;;  %4779 = vlog2.f32 %v1770_v38  ;;  %v2795_v17 = vmul.f32 %v2731_v26, %v8255_v24 }
 0x595   :  { %v2810_v48 = vadd.f32 3.0, %v8256_v63  ;;  %v4768_v41 = vpop.eup %4767  ;;  %v2427_v59 = vadd.f32 %v2411_v16, %v2395_v44  ;;  %v2778_v51 = vadd.f32 %v2762_v2, %v2746_v20  ;;  %v2779_v31 = vadd.f32 %v2763_v13, %v2747_v57 }
 0x596   :  { %v2811_v11 = vadd.f32 3.0, %v6216_v32  ;;  %3674 = vadd.xlane.f32.xlu0 %v3673_v40  ;;  %v2463_v7 = vmul.f32 %v4768_v41, %v2426_v54  ;;  %v2842_v19 = vmul.f32 771.3234, %v2794_v58  ;;  %v2843_v45 = vmul.f32 771.3234, %v2795_v17  ;;  %v8260_v41 = vld [vmem:[#allocation77_spill] sm:$0xff] }
 0x597   :  { %v6974_v8 = vpop.xlane.xlu1 %3872  ;;  %v2874_v30 = vmul.f32 %v2810_v48, %v2794_v58  ;;  %v4770_v39 = vpop.eup %4769  ;;  %v2826_v50 = vmul.f32 %v2810_v48, %v2778_v51  ;;  %v2890_v9 = vadd.f32 4.0, %v8256_v63  ;;  %v6979_v60 = vmul.f32 %v8258_v4, %v1554_v42 }
 0x598   :  { %8257 = vst [vmem:[#allocation34_spill] sm:$0xff] %v6974_v8  ;;  %v2827_v28 = vmul.f32 %v2811_v11, %v2779_v31  ;;  %v2875_v52 = vmul.f32 %v2811_v11, %v2795_v17  ;;  %4781 = vlog2.f32 %v1771_v3  ;;  %v2891_v55 = vadd.f32 4.0, %v6216_v32  ;;  %v8259_v3 = vld [vmem:[#allocation76_spill] sm:$0xff] }
 0x599   :  { %v2922_v33 = vmul.f32 -176.61504, %v2874_v30  ;;  %v2858_v53 = vadd.f32 %v2842_v19, %v2826_v50  ;;  %v2954_v61 = vmul.f32 %v2890_v9, %v2874_v30  ;;  %v2465_v23 = vmul.f32 %v4770_v39, %v2427_v59 }
 0x59a   :  { %v2859_v15 = vadd.f32 %v2843_v45, %v2827_v28  ;;  %v2923_v1 = vmul.f32 -176.61504, %v2875_v52  ;;  %v2955_v34 = vmul.f32 %v2891_v55, %v2875_v52  ;;  %v2970_v6 = vadd.f32 5.0, %v8256_v63  ;;  %v4772_v25 = vpop.eup %4771 }
 0x59b   :  { %v2971_v27 = vadd.f32 5.0, %v6216_v32  ;;  %v6984_v46 = vpop.xlane.xlu1 %3878  ;;  %4783 = vlog2.f32 %v2463_v7  ;;  %v2906_v5 = vmul.f32 %v2890_v9, %v2858_v53  ;;  %v3050_v49 = vadd.f32 6.0, %v8256_v63 }
 0x59c   :  { %v2907_v42 = vmul.f32 %v2891_v55, %v2859_v15  ;;  %v4774_v26 = vpop.eup %4773  ;;  %v3002_v43 = vmul.f32 12.507343, %v2954_v61  ;;  %v3034_v22 = vmul.f32 %v2970_v6, %v2954_v61  ;;  %v3051_v37 = vadd.f32 6.0, %v6216_v32 }
 0x59d   :  { %v3035_v38 = vmul.f32 %v2971_v27, %v2955_v34  ;;  %v4776_v44 = vpop.eup %4775  ;;  %v2938_v16 = vadd.f32 %v2922_v33, %v2906_v5  ;;  %v3003_v0 = vmul.f32 12.507343, %v2955_v34  ;;  %v3130_v54 = vadd.f32 7.0, %v8256_v63  ;;  %v8261_v5 = vld [vmem:[#allocation73_spill] sm:$0xff] }
 0x59e   :  { %v2939_v20 = vadd.f32 %v2923_v1, %v2907_v42  ;;  %v6991_v57 = vmul.f32 %v8258_v4, %v6957_v14  ;;  %v2506_v62 = vadd.f32 0.5, %v8259_v3  ;;  %4785 = vlog2.f32 %v2465_v23 }
 0x59f   :  { %v3114_v2 = vmul.f32 %v3050_v49, %v3034_v22  ;;  %v4778_v24 = vpop.eup %4777  ;;  %v2527_v13 = vmul.f32 0.6931472, %v4774_v26  ;;  %v2986_v58 = vmul.f32 %v2970_v6, %v2938_v16  ;;  %v3115_v17 = vmul.f32 %v3051_v37, %v3035_v38  ;;  %v6996_v11 = vpop.xlane.xlu1 %3884  ;;  %v8262_v16 = vld [vmem:[#allocation15_spill] sm:$0xff] }
 0x5a0   :  { %v2987_v40 = vmul.f32 %v2971_v27, %v2939_v20  ;;  %v1683_v48 = vmul.f32 0.6931472, %v4772_v25  ;;  %v2507_v59 = vadd.f32 0.5, %v8260_v41  ;;  %v3131_v51 = vadd.f32 7.0, %v6216_v32 }
 0x5a1   :  { %v3194_v31 = vmul.f32 %v3130_v54, %v3114_v2  ;;  %v4780_v7 = vpop.eup %4779  ;;  %v3018_v14 = vadd.f32 %v3002_v43, %v2986_v58  ;;  %v3082_v45 = vmul.f32 -0.1385711, %v3034_v22  ;;  %v3083_v30 = vmul.f32 -0.1385711, %v3035_v38 }
 0x5a2   :  { %v3019_v19 = vadd.f32 %v3003_v0, %v2987_v40  ;;  %v2529_v39 = vmul.f32 0.6931472, %v4778_v24  ;;  %v3195_v50 = vmul.f32 %v3131_v51, %v3115_v17  ;;  %v3210_v28 = vadd.f32 8.0, %v8256_v63  ;;  %v8263_v0 = vld [vmem:[#allocation40_spill] sm:$0xff] }
 0x5a3   :  { %v3211_v52 = vadd.f32 8.0, %v6216_v32  ;;  %v1685_v9 = vmul.f32 0.6931472, %v4776_v44  ;;  %v2554_v4 = vmul.f32 %v2527_v13, %v2506_v62  ;;  %v3066_v55 = vmul.f32 %v3050_v49, %v3018_v14  ;;  %v1524_v22 = vpop.xlane.xlu1 %1523 }
 0x5a4   :  { %v3067_v33 = vmul.f32 %v3051_v37, %v3019_v19  ;;  %v3162_v53 = vmul.f32 9.984369e-06, %v3114_v2  ;;  %v3163_v15 = vmul.f32 9.984369e-06, %v3115_v17  ;;  %v3274_v1 = vmul.f32 %v3210_v28, %v3194_v31  ;;  %v8264_v2 = vld [vmem:[#allocation13_spill] sm:$0xff]  ;;  %v8270_v19 = vld [vmem:[#allocation72_spill] sm:$0xff] }
 0x5a5   :  { %v3275_v61 = vmul.f32 %v3211_v52, %v3195_v50  ;;  %v4782_v23 = vpop.eup %4781  ;;  %v3098_v34 = vadd.f32 %v3082_v45, %v3066_v55  ;;  %v7000_v27 = vadd.f32 0.5, %v3130_v54  ;;  %v7002_v25 = vadd.f32 0.5, %v3131_v51 }
 0x5a6   :  { %v3099_v6 = vadd.f32 %v3083_v30, %v3067_v33  ;;  %v1727_v42 = vmul.f32 %v8261_v5, %v1683_v48  ;;  %v1791_v26 = vmul.f32 0.6931472, %v4780_v7  ;;  %v2555_v43 = vmul.f32 %v2529_v39, %v2507_v59  ;;  %v8266_v59 = vld [vmem:[#allocation54_spill] sm:$0xff] }
 0x5a7   :  { %4787 = vrcp.f32 %v3274_v1  ;;  %v3146_v38 = vmul.f32 %v3130_v54, %v3098_v34  ;;  %v3602_v37 = vadd.f32 1.0, %v6979_v60  ;;  %v7007_v20 = vadd.f32 -1.0, %v8262_v16  ;;  %v8265_v54 = vld [vmem:[#allocation75_spill] sm:$0xff] }
 0x5a8   :  { %v3147_v49 = vmul.f32 %v3131_v51, %v3099_v6  ;;  %4789 = vrcp.f32 %v3275_v61  ;;  %v4784_v44 = vpop.eup %4783  ;;  %v7010_v3 = vmul.f32 0.6931472, %v8263_v0  ;;  %v2570_v62 = vadd.f32 0.9189385, %v2554_v4  ;;  %v8267_v51 = vld [vmem:[#allocation53_spill] sm:$0xff]  ;;  %v8273_v6 = vld [vmem:[#allocation74_spill] sm:$0xff] }
 0x5a9   :  { %4791 = vlog2.f32 %v7000_v27  ;;  %v7014_v24 = vmul.f32 0.6931472, %v8264_v2  ;;  %v3178_v13 = vadd.f32 %v3162_v53, %v3146_v38  ;;  %v1728_v40 = vmul.f32 %v8265_v54, %v1685_v9  ;;  %v1533_v53 = vpop.xlane.xlu1 %1532 }
 0x5aa   :  { %v3179_v58 = vadd.f32 %v3163_v15, %v3147_v49  ;;  %4793 = vlog2.f32 %v7002_v25  ;;  %v1754_v17 = vsub.f32 %v6644_v36, %v1727_v42  ;;  %v1793_v48 = vmul.f32 0.6931472, %v4782_v23 }
 0x5ab   :  { %4795 = vlog2.f32 %v3602_v37  ;;  %v4786_v41 = vpop.eup %4785  ;;  %v8268_v7 = vsub.f32 %v8266_v59, %v8267_v51  ;;  %v1818_v45 = vmul.f32 %v8270_v19, %v1791_v26  ;;  %v2571_v30 = vadd.f32 0.9189385, %v2555_v43  ;;  %v8276_v37 = vld [vmem:[#allocation78_spill] sm:$0xff] }
 0x5ac   :  { %v3611_v39 = vadd.f32 1.0, %v6991_v57  ;;  %v2586_v4 = vsub.f32 %v2570_v62, %v6935_v56  ;;  %v2607_v55 = vmul.f32 0.6931472, %v4784_v44  ;;  %v3226_v33 = vmul.f32 %v3210_v28, %v3178_v13 }
 0x5ad   :  { %v7022_v14 = vmul.f32 0.5, %v8268_v7  ;;  %v3242_v9 = vmul.f32 1.5056327e-07, %v3194_v31  ;;  %v3227_v15 = vmul.f32 %v3211_v52, %v3179_v58  ;;  %v3243_v1 = vmul.f32 1.5056327e-07, %v3195_v50 }
 0x5ae   :  { %4797 = vlog2.f32 %v3611_v39  ;;  %v8271_v61 = vlaneseq  ;;  %v1755_v34 = vsub.f32 %v6647_v12, %v1728_v40  ;;  %v1819_v5 = vmul.f32 %v8273_v6, %v1793_v48  ;;  %v8288_v39 = vld [vmem:[#allocation47_spill] sm:$0xff] }
 0x5af   :  { %8269 = vst [vmem:[#allocation51_spill] sm:$0xff] %v7022_v14  ;;  %v1834_v42 = vadd.f32 %v1818_v45, %v1754_v17  ;;  %4799 = vrcp.f32 %v1524_v22  ;;  %v2587_v26 = vsub.f32 %v2571_v30, %v6946_v10  ;;  %v2609_v43 = vmul.f32 0.6931472, %v4786_v41  ;;  %v7049_v22 = vld [vmem:[%s8072_s27 + $0x30] sm:$0xff]  ;;  %v7067_v41 = vld [vmem:[%s8072_s27 + $0x38] sm:$0xff] }
 0x5b0   :  { %v7028_v23 = vand.u32 127, %v8271_v61  ;;  %v3605_v56 = vmul.f32 -0.5, %v6979_v60  ;;  %4801 = vrcp.f32 %v1533_v53  ;;  %v2634_v31 = vadd.f32 %v2607_v55, %v2586_v4  ;;  %v1527_v4 = vpop.xlane.xlu1 %1526 }
 0x5b1   :  { %v3258_v28 = vadd.f32 %v3242_v9, %v3226_v33  ;;  %v3614_v50 = vmul.f32 -0.5, %v6991_v57  ;;  %v3259_v52 = vadd.f32 %v3243_v1, %v3227_v15  ;;  %v7053_v49 = vadd.f32 %v7049_v22, %v6171_v18 }
 0x5b2   :  { %8272 = vst [vmem:[#allocation52_spill] sm:$0xff] %v7028_v23  ;;  %vm4073_vm9 = vcmp.eq.s32.totalorder %v7028_v23, 1  ;;  %v7056_v44 = vmul.f32 0.6931472, %v8276_v37  ;;  %v1835_v16 = vadd.f32 %v1819_v5, %v1755_v34  ;;  %v1648_v0 = vadd.f32 %v6171_v18, %v6809_v29 }
 0x5b3   :  { %v7039_v38 = vsel %vm4073_vm9, %v6984_v46, 0.0  ;;  %v7044_v10 = vsel %vm4073_vm9, %v6996_v11, 0.0  ;;  %v3608_v46 = vand.u32 2147483647, %v6979_v60  ;;  %v2635_v62 = vadd.f32 %v2609_v43, %v2587_v26 }
 0x5b4   :  { %8274 = vst [vmem:[#allocation55_spill] sm:$0xff] %v7039_v38  ;;  %8275 = vst [vmem:[#allocation44_spill] sm:$0xff] %v7044_v10  ;;  %v4788_v11 = vpop.eup %4787  ;;  %v3338_v2 = vadd.f32 0.5, %v8256_v63  ;;  %v3339_v13 = vadd.f32 0.5, %v6216_v32  ;;  %v3606_v58 = vadd.f32 1.0, %v3605_v56  ;;  %v3615_v17 = vadd.f32 1.0, %v3614_v50 }
 0x5b5   :  { %8277 = vst [vmem:[#allocation56_spill] sm:$0xff] %v7056_v44  ;;  %v4790_v54 = vpop.eup %4789  ;;  %v3295_v40 = vmul.f32 %v4788_v11, %v3258_v28  ;;  %v3617_v48 = vand.u32 2147483647, %v6991_v57  ;;  %v7071_v59 = vadd.f32 %v7067_v41, %v6174_v47  ;;  %v7073_v7 = vadd.f32 %v2634_v31, %v1834_v42 }
 0x5b6   :  { %v4792_v51 = vpop.eup %4791  ;;  %v3297_v63 = vmul.f32 %v4790_v54, %v3259_v52  ;;  %v1649_v32 = vadd.f32 %v6174_v47, %v6823_v35  ;;  %v7078_v19 = vadd.f32 -1.0, %v7053_v49  ;;  %vm7080_vm10 = vcmp.lt.f32.partialorder %v3608_v46, 0.0004427343  ;;  %v8285_v54 = vld [vmem:[#allocation63_spill] sm:$0xff] }
 0x5b7   :  { %v4794_v45 = vpop.eup %4793  ;;  %v3359_v30 = vmul.f32 0.6931472, %v4792_v51  ;;  %4803 = vlog2.f32 %v3295_v40  ;;  %v1664_v55 = vadd.f32 1e-08, %v1648_v0  ;;  %v7084_v9 = vadd.f32 %v2635_v62, %v1835_v16  ;;  %v8282_v16 = vld [vmem:[#allocation28_spill] sm:$0xff]  ;;  %v8283_v0 = vld [vmem:[#allocation6_spill] sm:$0xff] }
 0x5b8   :  { %v4796_v33 = vpop.eup %4795  ;;  %v3361_v53 = vmul.f32 0.6931472, %v4794_v45  ;;  %4805 = vlog2.f32 %v3297_v63  ;;  %v3607_v15 = vmul.f32 %v3606_v58, %v6979_v60  ;;  %v3616_v61 = vmul.f32 %v3615_v17, %v6991_v57 }
 0x5b9   :  { %v3604_v1 = vmul.f32 0.6931472, %v4796_v33  ;;  %vm7088_vm11 = vcmp.lt.f32.partialorder %v3617_v48, 0.0004427343  ;;  %v7093_v6 = vadd.f32 -1.0, %v7071_v59  ;;  %v3386_v5 = vmul.f32 %v3359_v30, %v3338_v2  ;;  %v8284_v2 = vld [vmem:[#allocation37_spill] sm:$0xff] }
 0x5ba   :  { %4807 = vrcp.f32 %v1527_v4  ;;  %v1665_v42 = vadd.f32 1e-08, %v1649_v32  ;;  %v7096_v26 = vadd.f32 1.0, %v7078_v19  ;;  %v1772_v31 = vadd.f32 1e-08, %v6809_v29  ;;  %v8287_v32 = vld [vmem:[#allocation26_spill] sm:$0xff] }
 0x5bb   :  { %v4798_v43 = vpop.eup %4797  ;;  %v3610_v56 = vsel %vm7080_vm10, %v3607_v15, %v3604_v1  ;;  %4809 = vlog2.f32 %v1664_v55  ;;  %v1773_v28 = vadd.f32 1e-08, %v6823_v35  ;;  %v3387_v52 = vmul.f32 %v3361_v53, %v3339_v13  ;;  %v8286_v13 = vld [vmem:[#allocation66_spill] sm:$0xff]  ;;  %v8289_v53 = vld [vmem:[#allocation67_spill] sm:$0xff]  ;;  %v8290_v1 = vld [vmem:[#allocation61_spill] sm:$0xff] }
 0x5bc   :  { %v4800_v50 = vpop.eup %4799  ;;  %v3613_v37 = vmul.f32 0.6931472, %v4798_v43  ;;  %v3650_v46 = vsub.f32 %v8282_v16, %v3610_v56  ;;  %v7104_v11 = vadd.f32 1.0, %v8283_v0  ;;  %v1869_v17 = vadd.f32 1.0, %v7093_v6 }
 0x5bd   :  { %v4802_v62 = vpop.eup %4801  ;;  %v1550_v58 = vmul.f32 %v4800_v50, %v8284_v2  ;;  %v1551_v40 = vmul.f32 %v4800_v50, %v8285_v54  ;;  %v1900_v48 = vadd.f32 2.0, %v7078_v19  ;;  %v3402_v29 = vadd.f32 0.9189385, %v3386_v5  ;;  %v8291_v5 = vld [vmem:[#allocation46_spill] sm:$0xff] }
 0x5be   :  { %v3619_v35 = vsel %vm7088_vm11, %v3616_v61, %v3613_v37  ;;  %v1556_v51 = vmul.f32 %v4802_v62, %v8286_v13  ;;  %v1884_v63 = vadd.f32 676.5204, %v7096_v26  ;;  %v3666_v30 = vmul.f32 %v3650_v46, %v3650_v46 }
 0x5bf   :  { %v3651_v45 = vsub.f32 %v8287_v32, %v3619_v35  ;;  %v7116_v4 = vmul.f32 %v8288_v39, %v1550_v58  ;;  %v7119_v55 = vmul.f32 %v8288_v39, %v1551_v40  ;;  %v3403_v33 = vadd.f32 0.9189385, %v3387_v52 }
 0x5c0   :  { %v1557_v15 = vmul.f32 %v4802_v62, %v8289_v53  ;;  %4811 = vlog2.f32 %v1665_v42  ;;  %v7123_v34 = vadd.f32 1.0, %v8290_v1  ;;  %v7126_v43 = vmul.f32 %v8291_v5, %v1556_v51 }
 0x5c1   :  { %v3667_v61 = vmul.f32 %v3651_v45, %v3651_v45  ;;  %v1885_v56 = vadd.f32 676.5204, %v1869_v17  ;;  %v1901_v50 = vadd.f32 2.0, %v7093_v6  ;;  %v3566_v37 = vadd.f32 1.0, %v7116_v4 }
 0x5c2   :  { %8292 = vst [vmem:[#allocation42_spill] sm:$0xff] %v7126_v43  ;;  %v3575_v16 = vadd.f32 1.0, %v7119_v55  ;;  %4813 = vlog2.f32 %v1772_v31  ;;  %v1916_v46 = vmul.f32 %v1900_v48, %v1884_v63  ;;  %v3418_v52 = vsub.f32 %v3402_v29, %v7000_v27 }
 0x5c3   :  { %v3720_v62 = vadd.f32 %v3667_v61, %v3666_v30  ;;  %v1932_v42 = vmul.f32 -1259.1392, %v7096_v26  ;;  %v1933_v2 = vmul.f32 -1259.1392, %v1869_v17  ;;  %v3419_v54 = vsub.f32 %v3403_v33, %v7002_v25 }
 0x5c4   :  { %v4804_v58 = vpop.eup %4803  ;;  %v7135_v40 = vmul.f32 %v8291_v5, %v1557_v15  ;;  %4815 = vlog2.f32 %v3566_v37  ;;  %v3569_v35 = vmul.f32 -0.5, %v7116_v4  ;;  %v3620_v31 = vadd.f32 1.0, %v7126_v43 }
 0x5c5   :  { %v4806_v13 = vpop.eup %4805  ;;  %v3439_v51 = vmul.f32 0.6931472, %v4804_v58  ;;  %3721 = vadd.xlane.f32.xlu0 %v3720_v62  ;;  %4817 = vlog2.f32 %v3575_v16  ;;  %v1917_v27 = vmul.f32 %v1901_v50, %v1885_v56  ;;  %v3578_v63 = vmul.f32 -0.5, %v7119_v55 }
 0x5c6   :  { %8293 = vst [vmem:[#allocation14_spill] sm:$0xff] %v7135_v40  ;;  %v3441_v29 = vmul.f32 0.6931472, %v4806_v13  ;;  %4819 = vlog2.f32 %v1773_v28  ;;  %v1980_v32 = vadd.f32 3.0, %v7078_v19  ;;  %v3623_v30 = vmul.f32 -0.5, %v7126_v43 }
 0x5c7   :  { %v7141_v25 = vpop.eup %4807  ;;  %v3466_v45 = vadd.f32 %v3439_v51, %v3418_v52  ;;  %4821 = vlog2.f32 %v3620_v31  ;;  %v1948_v39 = vadd.f32 %v1932_v42, %v1916_v46  ;;  %v3570_v15 = vadd.f32 1.0, %v3569_v35  ;;  %v8294_v42 = vld [vmem:[#allocation68_spill] sm:$0xff] }
 0x5c8   :  { %v7144_v33 = vpop.eup %4809  ;;  %v3467_v53 = vadd.f32 %v3441_v29, %v3419_v54  ;;  %v3572_v61 = vand.u32 2147483647, %v7116_v4  ;;  %v3629_v5 = vadd.f32 1.0, %v7135_v40  ;;  %v3581_v28 = vand.u32 2147483647, %v7119_v55 }
 0x5c9   :  { %v3482_v56 = vsub.f32 %v7073_v7, %v3466_v45  ;;  %v3632_v37 = vmul.f32 -0.5, %v7135_v40  ;;  %v1949_v16 = vadd.f32 %v1933_v2, %v1917_v27  ;;  %v3579_v62 = vadd.f32 1.0, %v3578_v63 }
 0x5ca   :  { %v3483_v52 = vsub.f32 %v7084_v9, %v3467_v53  ;;  %4823 = vlog2.f32 %v3629_v5  ;;  %v1964_v46 = vmul.f32 %v1900_v48, %v7096_v26  ;;  %v7155_v58 = vmul.f32 %v7141_v25, %v8294_v42 }
 0x5cb   :  { %v3624_v54 = vadd.f32 1.0, %v3623_v30  ;;  %v3626_v35 = vand.u32 2147483647, %v7126_v43  ;;  %v1965_v13 = vmul.f32 %v1901_v50, %v1869_v17  ;;  %v3571_v51 = vmul.f32 %v3570_v15, %v7116_v4  ;;  %v8306_v15 = vld [vmem:[#allocation27_spill] sm:$0xff] }
 0x5cc   :  { %v3676_v7 = vadd.f32 %v3483_v52, %v3482_v56  ;;  %vm7159_vm12 = vcmp.lt.f32.partialorder %v3572_v61, 0.0004427343  ;;  %v1981_v9 = vadd.f32 3.0, %v7093_v6  ;;  %vm7166_vm13 = vcmp.lt.f32.partialorder %v3581_v28, 0.0004427343 }
 0x5cd   :  { %v7164_v2 = vpop.eup %4811  ;;  %v3633_v48 = vadd.f32 1.0, %v3632_v37  ;;  %v3635_v27 = vand.u32 2147483647, %v7135_v40  ;;  %v1996_v29 = vmul.f32 %v1980_v32, %v1948_v39  ;;  %v3580_v17 = vmul.f32 %v3579_v62, %v7119_v55 }
 0x5ce   :  { %3677 = vadd.xlane.f32.xlu1 %v3676_v7  ;;  %v1997_v50 = vmul.f32 %v1981_v9, %v1949_v16  ;;  %v2012_v63 = vmul.f32 771.3234, %v1964_v46  ;;  %v2013_v45 = vmul.f32 771.3234, %v1965_v13  ;;  %v3625_v53 = vmul.f32 %v3624_v54, %v7126_v43 }
 0x5cf   :  { %v7172_v30 = vpop.eup %4813  ;;  %vm7175_vm14 = vcmp.lt.f32.partialorder %v3626_v35, 0.0004427343  ;;  %v2044_v61 = vmul.f32 %v1980_v32, %v1964_v46  ;;  %v2045_v5 = vmul.f32 %v1981_v9, %v1965_v13  ;;  %v2060_v39 = vadd.f32 4.0, %v7078_v19 }
 0x5d0   :  { %v2028_v56 = vadd.f32 %v2012_v63, %v1996_v29  ;;  %v2029_v28 = vadd.f32 %v2013_v45, %v1997_v50  ;;  %v2061_v37 = vadd.f32 4.0, %v7093_v6  ;;  %v3634_v16 = vmul.f32 %v3633_v48, %v7135_v40 }
 0x5d1   :  { %v4816_v52 = vpop.eup %4815  ;;  %vm7182_vm15 = vcmp.lt.f32.partialorder %v3635_v27, 0.0004427343  ;;  %v2092_v42 = vmul.f32 -176.61504, %v2044_v61  ;;  %v2093_v54 = vmul.f32 -176.61504, %v2045_v5  ;;  %v2124_v9 = vmul.f32 %v2060_v39, %v2044_v61 }
 0x5d2   :  { %v2140_v35 = vadd.f32 5.0, %v7078_v19  ;;  %v4818_v7 = vpop.eup %4817  ;;  %v3568_v32 = vmul.f32 0.6931472, %v4816_v52  ;;  %v2076_v46 = vmul.f32 %v2060_v39, %v2028_v56  ;;  %v2077_v13 = vmul.f32 %v2061_v37, %v2029_v28  ;;  %v8303_v28 = vld [vmem:[#allocation24_spill] sm:$0xff] }
 0x5d3   :  { %v7187_v29 = vpop.eup %4819  ;;  %v3577_v50 = vmul.f32 0.6931472, %v4818_v7  ;;  %v2125_v63 = vmul.f32 %v2061_v37, %v2045_v5  ;;  %v2141_v45 = vadd.f32 5.0, %v7093_v6  ;;  %v2220_v48 = vadd.f32 6.0, %v7078_v19  ;;  %v8304_v7 = vld [vmem:[#allocation22_spill] sm:$0xff] }
 0x5d4   :  { %v4822_v27 = vpop.eup %4821  ;;  %v3574_v38 = vsel %vm7159_vm12, %v3571_v51, %v3568_v32  ;;  %v2108_v10 = vadd.f32 %v2092_v42, %v2076_v46  ;;  %v2109_v8 = vadd.f32 %v2093_v54, %v2077_v13  ;;  %v2172_v21 = vmul.f32 12.507343, %v2124_v9 }
 0x5d5   :  { %v3583_v56 = vsel %vm7166_vm13, %v3580_v17, %v3577_v50  ;;  %v3646_v61 = vsub.f32 %v8303_v28, %v3574_v38  ;;  %v3622_v39 = vmul.f32 0.6931472, %v4822_v27  ;;  %v2173_v52 = vmul.f32 12.507343, %v2125_v63  ;;  %v8305_v17 = vld [vmem:[#allocation29_spill] sm:$0xff] }
 0x5d6   :  { %v3647_v5 = vsub.f32 %v8304_v7, %v3583_v56  ;;  %v2156_v37 = vmul.f32 %v2140_v35, %v2108_v10  ;;  %v2157_v23 = vmul.f32 %v2141_v45, %v2109_v8  ;;  %v2204_v40 = vmul.f32 %v2140_v35, %v2124_v9 }
 0x5d7   :  { %v4824_v43 = vpop.eup %4823  ;;  %v3662_v14 = vmul.f32 %v3646_v61, %v3646_v61  ;;  %v3628_v51 = vsel %vm7175_vm14, %v3625_v53, %v3622_v39  ;;  %v2205_v31 = vmul.f32 %v2141_v45, %v2125_v63  ;;  %v2221_v42 = vadd.f32 6.0, %v7093_v6 }
 0x5d8   :  { %v3663_v54 = vmul.f32 %v3647_v5, %v3647_v5  ;;  %v3631_v26 = vmul.f32 0.6931472, %v4824_v43  ;;  %v3652_v32 = vsub.f32 %v8305_v17, %v3628_v51  ;;  %v2188_v38 = vadd.f32 %v2172_v21, %v2156_v37 }
 0x5d9   :  { %v2189_v46 = vadd.f32 %v2173_v52, %v2157_v23  ;;  %v2252_v13 = vmul.f32 -0.1385711, %v2204_v40  ;;  %v2253_v50 = vmul.f32 -0.1385711, %v2205_v31  ;;  %v2284_v27 = vmul.f32 %v2220_v48, %v2204_v40  ;;  %v8307_v40 = vld [vmem:[#allocation69_spill] sm:$0xff] }
 0x5da   :  { %v3714_v10 = vadd.f32 %v3663_v54, %v3662_v14  ;;  %v3637_v8 = vsel %vm7182_vm15, %v3634_v16, %v3631_v26  ;;  %v3668_v35 = vmul.f32 %v3652_v32, %v3652_v32  ;;  %v2236_v9 = vmul.f32 %v2220_v48, %v2188_v38  ;;  %v8308_v48 = vld [vmem:[#allocation48_spill] sm:$0xff] }
 0x5db   :  { %v3653_v53 = vsub.f32 %v8306_v15, %v3637_v8  ;;  %v2237_v63 = vmul.f32 %v2221_v42, %v2189_v46  ;;  %v2285_v45 = vmul.f32 %v2221_v42, %v2205_v31  ;;  %v2300_v56 = vadd.f32 7.0, %v7078_v19 }
 0x5dc   :  { %3715 = vadd.xlane.f32.xlu0 %v3714_v10  ;;  %v2268_v43 = vadd.f32 %v2252_v13, %v2236_v9  ;;  %v2301_v21 = vadd.f32 7.0, %v7093_v6  ;;  %v2332_v23 = vmul.f32 9.984369e-06, %v2284_v27  ;;  %v2380_v28 = vadd.f32 8.0, %v7078_v19 }
 0x5dd   :  { %v1553_v14 = vmul.f32 %v7141_v25, %v8307_v40  ;;  %v3669_v62 = vmul.f32 %v3653_v53, %v3653_v53  ;;  %v2269_v16 = vadd.f32 %v2253_v50, %v2237_v63  ;;  %v2364_v61 = vmul.f32 %v2300_v56, %v2284_v27 }
 0x5de   :  { %v7211_v39 = vmul.f32 %v8308_v48, %v7155_v58  ;;  %v2316_v52 = vmul.f32 %v2300_v56, %v2268_v43  ;;  %v2365_v7 = vmul.f32 %v2301_v21, %v2285_v45  ;;  %v2381_v5 = vadd.f32 8.0, %v7093_v6 }
 0x5df   :  { %v3723_v37 = vadd.f32 %v3669_v62, %v3668_v35  ;;  %v2317_v51 = vmul.f32 %v2301_v21, %v2269_v16  ;;  %v2333_v31 = vmul.f32 9.984369e-06, %v2285_v45  ;;  %v2444_v42 = vmul.f32 %v2380_v28, %v2364_v61 }
 0x5e0   :  { %v1687_v54 = vmul.f32 0.6931472, %v7144_v33  ;;  %v2348_v26 = vadd.f32 %v2332_v23, %v2316_v52  ;;  %v2445_v17 = vmul.f32 %v2381_v5, %v2365_v7  ;;  %v7215_v25 = vadd.f32 0.5, %v2300_v56 }
 0x5e1   :  { %3724 = vadd.xlane.f32.xlu1 %v3723_v37  ;;  %v7218_v32 = vmul.f32 0.6931472, %v7164_v2  ;;  %v2412_v58 = vmul.f32 1.5056327e-07, %v2364_v61  ;;  %4825 = vrcp.f32 %v2444_v42  ;;  %v7220_v38 = vadd.f32 0.5, %v2301_v21 }
 0x5e2   :  { %v7223_v46 = vmul.f32 %v8308_v48, %v1553_v14  ;;  %v2413_v13 = vmul.f32 1.5056327e-07, %v2365_v7  ;;  %v2716_v50 = vadd.f32 676.5204, %v7104_v11  ;;  %v2717_v33 = vadd.f32 676.5204, %v7123_v34 }
 0x5e3   :  { %v2349_v27 = vadd.f32 %v2333_v31, %v2317_v51  ;;  %4827 = vrcp.f32 %v2445_v17  ;;  %v2732_v10 = vadd.f32 2.0, %v8283_v0  ;;  %v2733_v8 = vadd.f32 2.0, %v8290_v1 }
 0x5e4   :  { %8309 = vst [vmem:[#allocation5_spill] sm:$0xff] %v7223_v46  ;;  %v2396_v2 = vmul.f32 %v2380_v28, %v2348_v26  ;;  %4829 = vlog2.f32 %v7215_v25  ;;  %v2764_v35 = vmul.f32 -1259.1392, %v7104_v11  ;;  %v2765_v9 = vmul.f32 -1259.1392, %v7123_v34 }
 0x5e5   :  { %4831 = vlog2.f32 %v7220_v38  ;;  %v2748_v15 = vmul.f32 %v2732_v10, %v2716_v50  ;;  %v2749_v53 = vmul.f32 %v2733_v8, %v2717_v33  ;;  %v2796_v63 = vmul.f32 %v2732_v10, %v7104_v11 }
 0x5e6   :  { %v2797_v45 = vmul.f32 %v2733_v8, %v7123_v34  ;;  %v2812_v56 = vadd.f32 3.0, %v8283_v0  ;;  %v2813_v43 = vadd.f32 3.0, %v8290_v1  ;;  %v2892_v21 = vadd.f32 4.0, %v8283_v0 }
 0x5e7   :  { %v2780_v23 = vadd.f32 %v2764_v35, %v2748_v15  ;;  %v2781_v28 = vadd.f32 %v2765_v9, %v2749_v53  ;;  %v2844_v40 = vmul.f32 771.3234, %v2796_v63  ;;  %v2893_v14 = vadd.f32 4.0, %v8290_v1 }
 0x5e8   :  { %v2845_v62 = vmul.f32 771.3234, %v2797_v45  ;;  %v2876_v16 = vmul.f32 %v2812_v56, %v2796_v63  ;;  %v2877_v61 = vmul.f32 %v2813_v43, %v2797_v45  ;;  %v2972_v48 = vadd.f32 5.0, %v8283_v0 }
 0x5e9   :  { %v2397_v52 = vmul.f32 %v2381_v5, %v2349_v27  ;;  %v2828_v11 = vmul.f32 %v2812_v56, %v2780_v23  ;;  %v2829_v7 = vmul.f32 %v2813_v43, %v2781_v28  ;;  %v2973_v34 = vadd.f32 5.0, %v8290_v1 }
 0x5ea   :  { %v2924_v37 = vmul.f32 -176.61504, %v2876_v16  ;;  %v2956_v51 = vmul.f32 %v2892_v21, %v2876_v16  ;;  %v2957_v31 = vmul.f32 %v2893_v14, %v2877_v61  ;;  %v3052_v42 = vadd.f32 6.0, %v8283_v0 }
 0x5eb   :  { %v2860_v26 = vadd.f32 %v2844_v40, %v2828_v11  ;;  %v2861_v17 = vadd.f32 %v2845_v62, %v2829_v7  ;;  %v2925_v50 = vmul.f32 -176.61504, %v2877_v61  ;;  %v3053_v33 = vadd.f32 6.0, %v8290_v1 }
 0x5ec   :  { %v2428_v10 = vadd.f32 %v2412_v58, %v2396_v2  ;;  %v3036_v8 = vmul.f32 %v2972_v48, %v2956_v51  ;;  %v3037_v35 = vmul.f32 %v2973_v34, %v2957_v31  ;;  %v3132_v9 = vadd.f32 7.0, %v8283_v0 }
 0x5ed   :  { %v7245_v5 = vmul.f32 %v7053_v49, %v1687_v54  ;;  %v2429_v27 = vadd.f32 %v2413_v13, %v2397_v52  ;;  %v2908_v15 = vmul.f32 %v2892_v21, %v2860_v26  ;;  %v2909_v53 = vmul.f32 %v2893_v14, %v2861_v17 }
 0x5ee   :  { %v4826_v63 = vpop.eup %4825  ;;  %v3004_v45 = vmul.f32 12.507343, %v2956_v51  ;;  %v3116_v56 = vmul.f32 %v3052_v42, %v3036_v8  ;;  %v3117_v43 = vmul.f32 %v3053_v33, %v3037_v35  ;;  %v3133_v23 = vadd.f32 7.0, %v8290_v1 }
 0x5ef   :  { %v2940_v28 = vadd.f32 %v2924_v37, %v2908_v15  ;;  %v2941_v40 = vadd.f32 %v2925_v50, %v2909_v53  ;;  %v3005_v62 = vmul.f32 12.507343, %v2957_v31  ;;  %v3212_v58 = vadd.f32 8.0, %v8283_v0 }
 0x5f0   :  { %v4828_v2 = vpop.eup %4827  ;;  %v1795_v16 = vmul.f32 0.6931472, %v7172_v30  ;;  %v2467_v61 = vmul.f32 %v4826_v63, %v2428_v10  ;;  %v3196_v49 = vmul.f32 %v3132_v9, %v3116_v56  ;;  %v3213_v54 = vadd.f32 8.0, %v8290_v1 }
 0x5f1   :  { %v4830_v13 = vpop.eup %4829  ;;  %v1797_v21 = vmul.f32 0.6931472, %v7187_v29  ;;  %v2508_v14 = vadd.f32 0.5, %v7078_v19  ;;  %v2988_v52 = vmul.f32 %v2972_v48, %v2940_v28  ;;  %v2989_v11 = vmul.f32 %v2973_v34, %v2941_v40 }
 0x5f2   :  { %v4832_v7 = vpop.eup %4831  ;;  %v2509_v37 = vadd.f32 0.5, %v7093_v6  ;;  %v3084_v51 = vmul.f32 -0.1385711, %v3036_v8  ;;  %v3085_v31 = vmul.f32 -0.1385711, %v3037_v35  ;;  %v3197_v26 = vmul.f32 %v3133_v23, %v3117_v43 }
 0x5f3   :  { %v2469_v17 = vmul.f32 %v4828_v2, %v2429_v27  ;;  %v3020_v50 = vadd.f32 %v3004_v45, %v2988_v52  ;;  %v3021_v30 = vadd.f32 %v3005_v62, %v2989_v11  ;;  %v3276_v10 = vmul.f32 %v3212_v58, %v3196_v49 }
 0x5f4   :  { %v2531_v15 = vmul.f32 0.6931472, %v4830_v13  ;;  %4833 = vlog2.f32 %v2467_v61  ;;  %v3277_v53 = vmul.f32 %v3213_v54, %v3197_v26  ;;  %v7254_v63 = vadd.f32 0.5, %v3132_v9  ;;  %v3995_v61 = vpop.permute.xlu0 %3994 }
 0x5f5   :  { %v2533_v29 = vmul.f32 0.6931472, %v4832_v7  ;;  %v3068_v44 = vmul.f32 %v3052_v42, %v3020_v50  ;;  %v3069_v19 = vmul.f32 %v3053_v33, %v3021_v30  ;;  %4835 = vrcp.f32 %v3276_v10 }
 0x5f6   :  { %v1730_v48 = vmul.f32 %v7071_v59, %v7218_v32  ;;  %v3164_v6 = vmul.f32 9.984369e-06, %v3116_v56  ;;  %4837 = vrcp.f32 %v3277_v53  ;;  %v7258_v34 = vadd.f32 0.5, %v3133_v23 }
 0x5f7   :  { %4839 = vlog2.f32 %v2469_v17  ;;  %v3100_v8 = vadd.f32 %v3084_v51, %v3068_v44  ;;  %v3101_v35 = vadd.f32 %v3085_v31, %v3069_v19  ;;  %v3165_v27 = vmul.f32 9.984369e-06, %v3117_v43 }
 0x5f8   :  { %v1756_v45 = vsub.f32 %v6644_v36, %v7245_v5  ;;  %v2556_v28 = vmul.f32 %v2531_v15, %v2508_v14  ;;  %4841 = vlog2.f32 %v7254_v63  ;;  %v3584_v42 = vadd.f32 1.0, %v7211_v39 }
 0x5f9   :  { %v2557_v33 = vmul.f32 %v2533_v29, %v2509_v37  ;;  %v3148_v40 = vmul.f32 %v3132_v9, %v3100_v8  ;;  %v3149_v62 = vmul.f32 %v3133_v23, %v3101_v35  ;;  %4843 = vlog2.f32 %v7258_v34 }
 0x5fa   :  { %v1820_v59 = vmul.f32 %v7049_v22, %v1795_v16  ;;  %4845 = vlog2.f32 %v3584_v42  ;;  %v3587_v44 = vmul.f32 -0.5, %v7211_v39  ;;  %v3593_v32 = vadd.f32 1.0, %v7223_v46 }
 0x5fb   :  { %v3180_v56 = vadd.f32 %v3164_v6, %v3148_v40  ;;  %v3181_v43 = vadd.f32 %v3165_v27, %v3149_v62  ;;  %v3244_v5 = vmul.f32 1.5056327e-07, %v3196_v49  ;;  %v3596_v2 = vmul.f32 -0.5, %v7223_v46  ;;  %v7279_v49 = vld [vmem:[%s8072_s27 + $0x60] sm:$0xff] }
 0x5fc   :  { %v1757_v13 = vsub.f32 %v6647_v12, %v1730_v48  ;;  %v1821_v9 = vmul.f32 %v7067_v41, %v1797_v21  ;;  %v3245_v23 = vmul.f32 1.5056327e-07, %v3197_v26  ;;  %4847 = vlog2.f32 %v3593_v32  ;;  %v7288_v41 = vld [vmem:[%s8072_s27 + $0x68] sm:$0xff] }
 0x5fd   :  { %v7271_v14 = vadd.f32 0.9189385, %v2556_v28  ;;  %v7273_v22 = vadd.f32 0.9189385, %v2557_v33  ;;  %v3228_v16 = vmul.f32 %v3212_v58, %v3180_v56  ;;  %v3229_v52 = vmul.f32 %v3213_v54, %v3181_v43  ;;  %v8310_v54 = vld [vmem:[#allocation32_spill] sm:$0xff] }
 0x5fe   :  { %v3588_v11 = vadd.f32 1.0, %v3587_v44  ;;  %v3590_v7 = vand.u32 2147483647, %v7211_v39  ;;  %v7283_v37 = vadd.f32 %v7279_v49, %v6171_v18  ;;  %v7292_v58 = vadd.f32 %v7288_v41, %v6174_v47 }
 0x5ff   :  { %v7295_v21 = vadd.f32 %v3995_v61, %v8310_v54  ;;  %v3260_v51 = vadd.f32 %v3244_v5, %v3228_v16  ;;  %v3597_v31 = vadd.f32 1.0, %v3596_v2  ;;  %v3599_v26 = vand.u32 2147483647, %v7223_v46 }
 0x600   :  { %v7298_v17 = vadd.f32 %v1820_v59, %v1756_v45  ;;  %v7300_v50 = vadd.f32 %v1821_v9, %v1757_v13  ;;  %v3261_v30 = vadd.f32 %v3245_v23, %v3229_v52  ;;  %v1654_v10 = vadd.f32 %v6171_v18, %v6979_v60 }
 0x601   :  { %v4834_v15 = vpop.eup %4833  ;;  %v3340_v29 = vadd.f32 0.5, %v8283_v0  ;;  %v7308_v19 = vadd.f32 -1.0, %v7283_v37  ;;  %v7311_v48 = vadd.f32 -1.0, %v7292_v58  ;;  %v3341_v35 = vadd.f32 0.5, %v8290_v1 }
 0x602   :  { %v4836_v6 = vpop.eup %4835  ;;  %v3589_v27 = vmul.f32 %v3588_v11, %v7211_v39  ;;  %vm7317_vm1 = vcmp.lt.f32.partialorder %v3590_v7, 0.0004427343  ;;  %v3598_v42 = vmul.f32 %v3597_v31, %v7223_v46  ;;  %vm7322_vm0 = vcmp.lt.f32.partialorder %v3599_v26, 0.0004427343 }
 0x603   :  { %v4838_v28 = vpop.eup %4837  ;;  %v3299_v0 = vmul.f32 %v4836_v6, %v3260_v51  ;;  %v1655_v40 = vadd.f32 %v6174_v47, %v6991_v57  ;;  %v1874_v62 = vadd.f32 1.0, %v7308_v19  ;;  %v1670_v44 = vadd.f32 1e-08, %v1654_v10 }
 0x604   :  { %v4840_v1 = vpop.eup %4839  ;;  %v3301_v59 = vmul.f32 %v4838_v28, %v3261_v30  ;;  %v1875_v32 = vadd.f32 1.0, %v7311_v48  ;;  %v1906_v56 = vadd.f32 2.0, %v7308_v19  ;;  %v1907_v2 = vadd.f32 2.0, %v7311_v48 }
 0x605   :  { %v4842_v43 = vpop.eup %4841  ;;  %4849 = vlog2.f32 %v3299_v0  ;;  %v1890_v5 = vadd.f32 676.5204, %v1874_v62  ;;  %v1938_v61 = vmul.f32 -1259.1392, %v1874_v62  ;;  %v2611_v11 = vmul.f32 0.6931472, %v4834_v15 }
 0x606   :  { %v4844_v13 = vpop.eup %4843  ;;  %v3363_v9 = vmul.f32 0.6931472, %v4842_v43  ;;  %4851 = vlog2.f32 %v3301_v59  ;;  %v1891_v23 = vadd.f32 676.5204, %v1875_v32  ;;  %v1939_v16 = vmul.f32 -1259.1392, %v1875_v32 }
 0x607   :  { %v4846_v52 = vpop.eup %4845  ;;  %v3365_v7 = vmul.f32 0.6931472, %v4844_v13  ;;  %v1922_v54 = vmul.f32 %v1906_v56, %v1890_v5  ;;  %v1970_v51 = vmul.f32 %v1906_v56, %v1874_v62  ;;  %v1971_v10 = vmul.f32 %v1907_v2, %v1875_v32  ;;  %v8315_v13 = vld [vmem:[#allocation25_spill] sm:$0xff] }
 0x608   :  { %v3388_v31 = vmul.f32 %v3363_v9, %v3340_v29  ;;  %v3586_v26 = vmul.f32 0.6931472, %v4846_v52  ;;  %v1923_v30 = vmul.f32 %v1907_v2, %v1891_v23  ;;  %v1986_v8 = vadd.f32 3.0, %v7308_v19 }
 0x609   :  { %v4848_v6 = vpop.eup %4847  ;;  %v3389_v28 = vmul.f32 %v3365_v7, %v3341_v35  ;;  %v1954_v0 = vadd.f32 %v1938_v61, %v1922_v54  ;;  %v2018_v53 = vmul.f32 771.3234, %v1970_v51  ;;  %v1987_v15 = vadd.f32 3.0, %v7311_v48  ;;  %v8316_v61 = vld [vmem:[#allocation23_spill] sm:$0xff] }
 0x60a   :  { %v3592_v59 = vsel %vm7317_vm1, %v3589_v27, %v3586_v26  ;;  %v3595_v43 = vmul.f32 0.6931472, %v4848_v6  ;;  %v1955_v46 = vadd.f32 %v1939_v16, %v1923_v30  ;;  %v1671_v62 = vadd.f32 1e-08, %v1655_v40 }
 0x60b   :  { %v3648_v5 = vsub.f32 %v8315_v13, %v3592_v59  ;;  %v2002_v29 = vmul.f32 %v1986_v8, %v1954_v0  ;;  %v2019_v56 = vmul.f32 771.3234, %v1971_v10  ;;  %v2613_v9 = vmul.f32 0.6931472, %v4840_v1 }
 0x60c   :  { %v3404_v32 = vadd.f32 0.9189385, %v3388_v31  ;;  %v3601_v35 = vsel %vm7322_vm0, %v3598_v42, %v3595_v43  ;;  %v2003_v2 = vmul.f32 %v1987_v15, %v1955_v46  ;;  %v2050_v27 = vmul.f32 %v1986_v8, %v1970_v51 }
 0x60d   :  { %v3649_v23 = vsub.f32 %v8316_v61, %v3601_v35  ;;  %v3664_v52 = vmul.f32 %v3648_v5, %v3648_v5  ;;  %v2034_v45 = vadd.f32 %v2018_v53, %v2002_v29  ;;  %v3405_v7 = vadd.f32 0.9189385, %v3389_v28 }
 0x60e   :  { %v2035_v16 = vadd.f32 %v2019_v56, %v2003_v2  ;;  %v2051_v54 = vmul.f32 %v1987_v15, %v1971_v10  ;;  %v2066_v26 = vadd.f32 4.0, %v7308_v19  ;;  %v8317_v40 = vsub.f32 %v7271_v14, %v7215_v25 }
 0x60f   :  { %v3665_v1 = vmul.f32 %v3649_v23, %v3649_v23  ;;  %v2067_v31 = vadd.f32 4.0, %v7311_v48  ;;  %v2098_v33 = vmul.f32 -176.61504, %v2050_v27  ;;  %v8318_v46 = vsub.f32 %v7273_v22, %v7220_v38 }
 0x610   :  { %v2636_v30 = vadd.f32 %v2611_v11, %v8317_v40  ;;  %4853 = vlog2.f32 %v1670_v44  ;;  %v2082_v53 = vmul.f32 %v2066_v26, %v2034_v45  ;;  %v2099_v8 = vmul.f32 -176.61504, %v2051_v54 }
 0x611   :  { %v2637_v42 = vadd.f32 %v2613_v9, %v8318_v46  ;;  %v3420_v51 = vsub.f32 %v3404_v32, %v7254_v63  ;;  %v3717_v10 = vadd.f32 %v3665_v1, %v3664_v52  ;;  %v1778_v6 = vadd.f32 1e-08, %v6979_v60 }
 0x612   :  { %v2083_v28 = vmul.f32 %v2067_v31, %v2035_v16  ;;  %v4850_v0 = vpop.eup %4849  ;;  %v3421_v25 = vsub.f32 %v3405_v7, %v7258_v34  ;;  %v1779_v14 = vadd.f32 1e-08, %v6991_v57  ;;  %v2114_v11 = vadd.f32 %v2098_v33, %v2082_v53 }
 0x613   :  { %v2130_v59 = vmul.f32 %v2066_v26, %v2050_v27  ;;  %v4852_v43 = vpop.eup %4851  ;;  %v2652_v38 = vadd.f32 %v2636_v30, %v7298_v17  ;;  %v3443_v22 = vmul.f32 0.6931472, %v4850_v0  ;;  %3718 = vadd.xlane.f32.xlu1 %v3717_v10  ;;  %4855 = vlog2.f32 %v1671_v62 }
 0x614   :  { %v2115_v44 = vadd.f32 %v2099_v8, %v2083_v28  ;;  %v2653_v63 = vadd.f32 %v2637_v42, %v7300_v50  ;;  %v3445_v15 = vmul.f32 0.6931472, %v4852_v43  ;;  %v2131_v13 = vmul.f32 %v2067_v31, %v2051_v54  ;;  %v8319_v42 = vld [vmem:[#allocation41_spill] sm:$0xff] }
 0x615   :  { %v2146_v60 = vadd.f32 5.0, %v7308_v19  ;;  %v3468_v5 = vadd.f32 %v3443_v22, %v3420_v51  ;;  %v2147_v34 = vadd.f32 5.0, %v7311_v48  ;;  %v2178_v29 = vmul.f32 12.507343, %v2130_v59 }
 0x616   :  { %v2706_v57 = vadd.f32 1.0, %v7007_v20  ;;  %v3469_v56 = vadd.f32 %v3445_v15, %v3421_v25  ;;  %v2179_v32 = vmul.f32 12.507343, %v2131_v13  ;;  %v2226_v61 = vadd.f32 6.0, %v7308_v19  ;;  %v8320_v25 = vld [vmem:[#allocation39_spill] sm:$0xff] }
 0x617   :  { %v2162_v9 = vmul.f32 %v2146_v60, %v2114_v11  ;;  %v2210_v17 = vmul.f32 %v2146_v60, %v2130_v59  ;;  %v3484_v35 = vsub.f32 %v2652_v38, %v3468_v5  ;;  %v2163_v2 = vmul.f32 %v2147_v34, %v2115_v44  ;;  %v8321_v11 = vld [vmem:[#allocation10_spill] sm:$0xff] }
 0x618   :  { %v2211_v62 = vmul.f32 %v2147_v34, %v2131_v13  ;;  %v3485_v50 = vsub.f32 %v2653_v63, %v3469_v56  ;;  %v2227_v52 = vadd.f32 6.0, %v7311_v48  ;;  %v2306_v54 = vadd.f32 7.0, %v7308_v19 }
 0x619   :  { %v2194_v23 = vadd.f32 %v2178_v29, %v2162_v9  ;;  %v2258_v45 = vmul.f32 -0.1385711, %v2210_v17  ;;  %v2195_v27 = vadd.f32 %v2179_v32, %v2163_v2  ;;  %v2290_v16 = vmul.f32 %v2226_v61, %v2210_v17 }
 0x61a   :  { %v2259_v7 = vmul.f32 -0.1385711, %v2211_v62  ;;  %v3679_v26 = vadd.f32 %v3485_v50, %v3484_v35  ;;  %v2291_v30 = vmul.f32 %v2227_v52, %v2211_v62  ;;  %v2307_v1 = vadd.f32 7.0, %v7311_v48 }
 0x61b   :  { %v2242_v40 = vmul.f32 %v2226_v61, %v2194_v23  ;;  %v2243_v31 = vmul.f32 %v2227_v52, %v2195_v27  ;;  %v2370_v33 = vmul.f32 %v2306_v54, %v2290_v16  ;;  %v2386_v46 = vadd.f32 8.0, %v7308_v19 }
 0x61c   :  { %v2707_v53 = vadd.f32 1.0, %v8319_v42  ;;  %3680 = vadd.xlane.f32.xlu0 %v3679_v26  ;;  %v2338_v51 = vmul.f32 9.984369e-06, %v2290_v16  ;;  %v2371_v10 = vmul.f32 %v2307_v1, %v2291_v30  ;;  %v2387_v28 = vadd.f32 8.0, %v7311_v48 }
 0x61d   :  { %v2274_v8 = vadd.f32 %v2258_v45, %v2242_v40  ;;  %v7364_v0 = vpop.eup %4853  ;;  %v8322_v59 = vsub.f32 %v8320_v25, %v8321_v11  ;;  %4857 = vlog2.f32 %v1778_v6  ;;  %v2275_v38 = vadd.f32 %v2259_v7, %v2243_v31 }
 0x61e   :  { %v2450_v22 = vmul.f32 %v2386_v46, %v2370_v33  ;;  %4859 = vlog2.f32 %v1779_v14  ;;  %v2339_v63 = vmul.f32 9.984369e-06, %v2291_v30  ;;  %v2451_v15 = vmul.f32 %v2387_v28, %v2371_v10 }
 0x61f   :  { %v7369_v43 = vmul.f32 0.5, %v8322_v59  ;;  %v2322_v44 = vmul.f32 %v2306_v54, %v2274_v8  ;;  %v7372_v13 = vadd.f32 -1.0, %v7295_v21  ;;  %v2323_v60 = vmul.f32 %v2307_v1, %v2275_v38 }
 0x620   :  { %4861 = vrcp.f32 %v2450_v22  ;;  %v7374_v5 = vadd.f32 0.5, %v2306_v54  ;;  %v4856_v34 = vpop.eup %4855  ;;  %v2418_v56 = vmul.f32 1.5056327e-07, %v2370_v33  ;;  %v2722_v9 = vadd.f32 676.5204, %v2706_v57 }
 0x621   :  { %v2354_v29 = vadd.f32 %v2338_v51, %v2322_v44  ;;  %v2723_v32 = vadd.f32 676.5204, %v2707_v53  ;;  %v2419_v17 = vmul.f32 1.5056327e-07, %v2371_v10  ;;  %v7376_v6 = vadd.f32 0.5, %v2307_v1 }
 0x622   :  { %v2738_v14 = vadd.f32 2.0, %v7007_v20  ;;  %v2739_v35 = vadd.f32 2.0, %v8319_v42  ;;  %v2355_v2 = vadd.f32 %v2339_v63, %v2323_v60  ;;  %4863 = vrcp.f32 %v2451_v15 }
 0x623   :  { %v2770_v21 = vmul.f32 -1259.1392, %v2706_v57  ;;  %v2771_v62 = vmul.f32 -1259.1392, %v2707_v53  ;;  %4865 = vlog2.f32 %v7374_v5  ;;  %v2402_v52 = vmul.f32 %v2386_v46, %v2354_v29 }
 0x624   :  { %v2754_v61 = vmul.f32 %v2738_v14, %v2722_v9  ;;  %v2755_v50 = vmul.f32 %v2739_v35, %v2723_v32  ;;  %v2802_v23 = vmul.f32 %v2738_v14, %v2706_v57  ;;  %v2803_v45 = vmul.f32 %v2739_v35, %v2707_v53 }
 0x625   :  { %v2818_v27 = vadd.f32 3.0, %v7007_v20  ;;  %v2819_v7 = vadd.f32 3.0, %v8319_v42  ;;  %4867 = vlog2.f32 %v7376_v6  ;;  %v2898_v31 = vadd.f32 4.0, %v7007_v20 }
 0x626   :  { %v2786_v16 = vadd.f32 %v2770_v21, %v2754_v61  ;;  %v2787_v54 = vadd.f32 %v2771_v62, %v2755_v50  ;;  %v2850_v26 = vmul.f32 771.3234, %v2802_v23  ;;  %v2851_v40 = vmul.f32 771.3234, %v2803_v45 }
 0x627   :  { %v2882_v30 = vmul.f32 %v2818_v27, %v2802_v23  ;;  %v2883_v1 = vmul.f32 %v2819_v7, %v2803_v45  ;;  %v2899_v57 = vadd.f32 4.0, %v8319_v42  ;;  %v2978_v46 = vadd.f32 5.0, %v7007_v20 }
 0x628   :  { %v2834_v33 = vmul.f32 %v2818_v27, %v2786_v16  ;;  %v2835_v8 = vmul.f32 %v2819_v7, %v2787_v54  ;;  %v2979_v25 = vadd.f32 5.0, %v8319_v42  ;;  %v3058_v22 = vadd.f32 6.0, %v7007_v20  ;;  %v3999_v27 = vpop.permute.xlu0 %3998 }
 0x629   :  { %v2930_v53 = vmul.f32 -176.61504, %v2882_v30  ;;  %v2931_v51 = vmul.f32 -176.61504, %v2883_v1  ;;  %v2962_v10 = vmul.f32 %v2898_v31, %v2882_v30  ;;  %v2963_v38 = vmul.f32 %v2899_v57, %v2883_v1 }
 0x62a   :  { %v2866_v11 = vadd.f32 %v2850_v26, %v2834_v33  ;;  %v2867_v59 = vadd.f32 %v2851_v40, %v2835_v8  ;;  %v4858_v44 = vpop.eup %4857  ;;  %v2403_v63 = vmul.f32 %v2387_v28, %v2355_v2  ;;  %v3059_v60 = vadd.f32 6.0, %v8319_v42  ;;  %v8323_v33 = vld [vmem:[#allocation30_spill] sm:$0xff] }
 0x62b   :  { %v3042_v15 = vmul.f32 %v2978_v46, %v2962_v10  ;;  %v3138_v29 = vadd.f32 7.0, %v7007_v20  ;;  %v4860_v9 = vpop.eup %4859  ;;  %v2434_v32 = vadd.f32 %v2418_v56, %v2402_v52  ;;  %v3043_v21 = vmul.f32 %v2979_v25, %v2963_v38 }
 0x62c   :  { %v2914_v14 = vmul.f32 %v2898_v31, %v2866_v11  ;;  %v2915_v35 = vmul.f32 %v2899_v57, %v2867_v59  ;;  %v1699_v61 = vmul.f32 0.6931472, %v7364_v0  ;;  %v1701_v50 = vmul.f32 0.6931472, %v4856_v34 }
 0x62d   :  { %v4862_v62 = vpop.eup %4861  ;;  %v3122_v23 = vmul.f32 %v3058_v22, %v3042_v15  ;;  %v3139_v45 = vadd.f32 7.0, %v8319_v42  ;;  %v3010_v2 = vmul.f32 12.507343, %v2962_v10  ;;  %v3011_v16 = vmul.f32 12.507343, %v2963_v38 }
 0x62e   :  { %v2946_v7 = vadd.f32 %v2930_v53, %v2914_v14  ;;  %v2947_v28 = vadd.f32 %v2931_v51, %v2915_v35  ;;  %v2435_v54 = vadd.f32 %v2419_v17, %v2403_v63  ;;  %v3123_v26 = vmul.f32 %v3059_v60, %v3043_v21 }
 0x62f   :  { %v3202_v40 = vmul.f32 %v3138_v29, %v3122_v23  ;;  %v3218_v56 = vadd.f32 8.0, %v7007_v20  ;;  %v4864_v52 = vpop.eup %4863  ;;  %v4048_v30 = vsub.f32 %v7372_v13, %v7010_v3  ;;  %v2479_v1 = vmul.f32 %v4862_v62, %v2434_v32 }
 0x630   :  { %v2994_v0 = vmul.f32 %v2978_v46, %v2946_v7  ;;  %v2995_v34 = vmul.f32 %v2979_v25, %v2947_v28  ;;  %v4866_v31 = vpop.eup %4865  ;;  %v4018_v8 = vadd.f32 %v3999_v27, %v8323_v33  ;;  %v1735_v57 = vmul.f32 %v7283_v37, %v1699_v61 }
 0x631   :  { %v3090_v53 = vmul.f32 -0.1385711, %v3042_v15  ;;  %v3203_v51 = vmul.f32 %v3139_v45, %v3123_v26  ;;  %v3091_v11 = vmul.f32 -0.1385711, %v3043_v21  ;;  %v3219_v59 = vadd.f32 8.0, %v8319_v42 }
 0x632   :  { %v3026_v10 = vadd.f32 %v3010_v2, %v2994_v0  ;;  %v3027_v17 = vadd.f32 %v3011_v16, %v2995_v34  ;;  %v4868_v38 = vpop.eup %4867  ;;  %v1736_v63 = vmul.f32 %v7292_v58, %v1701_v50  ;;  %v1807_v14 = vmul.f32 0.6931472, %v4858_v44  ;;  %v7413_v16 = vld [vmem:[%s8072_s27 + $0x40] sm:$0xff] }
 0x633   :  { %v2481_v35 = vmul.f32 %v4864_v52, %v2435_v54  ;;  %v3282_v32 = vmul.f32 %v3218_v56, %v3202_v40  ;;  %4869 = vlog2.f32 %v2479_v1  ;;  %v3283_v62 = vmul.f32 %v3219_v59, %v3203_v51 }
 0x634   :  { %v3074_v46 = vmul.f32 %v3058_v22, %v3026_v10  ;;  %v3075_v25 = vmul.f32 %v3059_v60, %v3027_v17  ;;  %v3170_v27 = vmul.f32 9.984369e-06, %v3122_v23  ;;  %v7400_v37 = vadd.f32 0.5, %v3138_v29 }
 0x635   :  { %4871 = vrcp.f32 %v3282_v32  ;;  %v7402_v15 = vadd.f32 0.5, %v3139_v45  ;;  %v3171_v7 = vmul.f32 9.984369e-06, %v3123_v26  ;;  %v1762_v28 = vsub.f32 %v6644_v36, %v1735_v57 }
 0x636   :  { %v3106_v61 = vadd.f32 %v3090_v53, %v3074_v46  ;;  %v3107_v21 = vadd.f32 %v3091_v11, %v3075_v25  ;;  %4873 = vrcp.f32 %v3283_v62  ;;  %v1763_v58 = vsub.f32 %v6647_v12, %v1736_v63 }
 0x637   :  { %v1809_v44 = vmul.f32 0.6931472, %v4860_v9  ;;  %4875 = vlog2.f32 %v7400_v37  ;;  %v2514_v22 = vadd.f32 0.5, %v7308_v19  ;;  %v2515_v23 = vadd.f32 0.5, %v7311_v48  ;;  %v7422_v19 = vld [vmem:[%s8072_s27 + $0x48] sm:$0xff] }
 0x638   :  { %v3154_v60 = vmul.f32 %v3138_v29, %v3106_v61  ;;  %v3155_v50 = vmul.f32 %v3139_v45, %v3107_v21  ;;  %4877 = vlog2.f32 %v7402_v15  ;;  %v2543_v2 = vmul.f32 0.6931472, %v4866_v31 }
 0x639   :  { %v7417_v54 = vadd.f32 %v7413_v16, %v6171_v18  ;;  %v7426_v29 = vadd.f32 %v7422_v19, %v6174_v47  ;;  %v2545_v48 = vmul.f32 0.6931472, %v4868_v38  ;;  %4879 = vlog2.f32 %v2481_v35 }
 0x63a   :  { %v3186_v9 = vadd.f32 %v3170_v27, %v3154_v60  ;;  %v3187_v45 = vadd.f32 %v3171_v7, %v3155_v50  ;;  %v3250_v26 = vmul.f32 1.5056327e-07, %v3202_v40  ;;  %v3251_v52 = vmul.f32 1.5056327e-07, %v3203_v51 }
 0x63b   :  { %v7429_v1 = vadd.f32 -1.0, %v7417_v54  ;;  %v7432_v0 = vadd.f32 -1.0, %v7426_v29  ;;  %v1826_v34 = vmul.f32 %v7279_v49, %v1807_v14  ;;  %v1827_v31 = vmul.f32 %v7288_v41, %v1809_v44 }
 0x63c   :  { %v3234_v33 = vmul.f32 %v3218_v56, %v3186_v9  ;;  %v3235_v57 = vmul.f32 %v3219_v59, %v3187_v45  ;;  %v2562_v53 = vmul.f32 %v2543_v2, %v2514_v22  ;;  %v7439_v51 = vadd.f32 -1.0, %v4018_v8 }
 0x63d   :  { %v1870_v10 = vadd.f32 1.0, %v7429_v1  ;;  %v1871_v17 = vadd.f32 1.0, %v7432_v0  ;;  %v1902_v40 = vadd.f32 2.0, %v7429_v1  ;;  %v7441_v11 = vadd.f32 %v1826_v34, %v1762_v28 }
 0x63e   :  { %v7443_v38 = vadd.f32 %v1827_v31, %v1763_v58  ;;  %v2563_v63 = vmul.f32 %v2545_v48, %v2515_v23  ;;  %v3266_v35 = vadd.f32 %v3250_v26, %v3234_v33  ;;  %v3267_v49 = vadd.f32 %v3251_v52, %v3235_v57 }
 0x63f   :  { %v1886_v14 = vadd.f32 676.5204, %v1870_v10  ;;  %v1887_v41 = vadd.f32 676.5204, %v1871_v17  ;;  %v1903_v56 = vadd.f32 2.0, %v7432_v0  ;;  %v1966_v46 = vmul.f32 %v1902_v40, %v1870_v10 }
 0x640   :  { %v1934_v59 = vmul.f32 -1259.1392, %v1870_v10  ;;  %v1935_v32 = vmul.f32 -1259.1392, %v1871_v17  ;;  %v4870_v25 = vpop.eup %4869  ;;  %v2578_v62 = vadd.f32 0.9189385, %v2562_v53 }
 0x641   :  { %v1918_v27 = vmul.f32 %v1902_v40, %v1886_v14  ;;  %v1982_v8 = vadd.f32 3.0, %v7429_v1  ;;  %v1983_v61 = vadd.f32 3.0, %v7432_v0  ;;  %v2579_v7 = vadd.f32 0.9189385, %v2563_v63 }
 0x642   :  { %v4872_v21 = vpop.eup %4871  ;;  %v3346_v28 = vadd.f32 0.5, %v7007_v20  ;;  %v1919_v58 = vmul.f32 %v1903_v56, %v1887_v41  ;;  %v1967_v44 = vmul.f32 %v1903_v56, %v1871_v17  ;;  %v3347_v50 = vadd.f32 0.5, %v8319_v42 }
 0x643   :  { %v4874_v22 = vpop.eup %4873  ;;  %v3311_v60 = vmul.f32 %v4872_v21, %v3266_v35  ;;  %v1950_v23 = vadd.f32 %v1934_v59, %v1918_v27  ;;  %v2014_v2 = vmul.f32 771.3234, %v1966_v46  ;;  %v2046_v52 = vmul.f32 %v1982_v8, %v1966_v46 }
 0x644   :  { %v4876_v48 = vpop.eup %4875  ;;  %v3313_v9 = vmul.f32 %v4874_v22, %v3267_v49  ;;  %v1951_v45 = vadd.f32 %v1935_v32, %v1919_v58  ;;  %v2015_v26 = vmul.f32 771.3234, %v1967_v44  ;;  %v2047_v57 = vmul.f32 %v1983_v61, %v1967_v44 }
 0x645   :  { %v4878_v34 = vpop.eup %4877  ;;  %v3375_v31 = vmul.f32 0.6931472, %v4876_v48  ;;  %4881 = vlog2.f32 %v3311_v60  ;;  %v1998_v33 = vmul.f32 %v1982_v8, %v1950_v23  ;;  %v2062_v10 = vadd.f32 4.0, %v7429_v1 }
 0x646   :  { %v3377_v53 = vmul.f32 0.6931472, %v4878_v34  ;;  %4883 = vlog2.f32 %v3313_v9  ;;  %v1999_v20 = vmul.f32 %v1983_v61, %v1951_v45  ;;  %v4880_v17 = vpop.eup %4879  ;;  %v2594_v42 = vsub.f32 %v2578_v62, %v7374_v5 }
 0x647   :  { %v2030_v40 = vadd.f32 %v2014_v2, %v1998_v33  ;;  %v2063_v63 = vadd.f32 4.0, %v7432_v0  ;;  %v2094_v35 = vmul.f32 -176.61504, %v2046_v52  ;;  %v2623_v49 = vmul.f32 0.6931472, %v4870_v25 }
 0x648   :  { %v3394_v14 = vmul.f32 %v3375_v31, %v3346_v28  ;;  %v2031_v41 = vadd.f32 %v2015_v26, %v1999_v20  ;;  %v2095_v56 = vmul.f32 -176.61504, %v2047_v57  ;;  %v2595_v59 = vsub.f32 %v2579_v7, %v7376_v6 }
 0x649   :  { %v3395_v32 = vmul.f32 %v3377_v53, %v3347_v50  ;;  %v1650_v46 = vadd.f32 %v6171_v18, %v7116_v4  ;;  %v2078_v27 = vmul.f32 %v2062_v10, %v2030_v40  ;;  %v1651_v8 = vadd.f32 %v6174_v47, %v7119_v55 }
 0x64a   :  { %v2079_v61 = vmul.f32 %v2063_v63, %v2031_v41  ;;  %v2126_v5 = vmul.f32 %v2062_v10, %v2046_v52  ;;  %v2142_v62 = vadd.f32 5.0, %v7429_v1  ;;  %v2625_v21 = vmul.f32 0.6931472, %v4880_v17 }
 0x64b   :  { %v2110_v58 = vadd.f32 %v2094_v35, %v2078_v27  ;;  %v2127_v25 = vmul.f32 %v2063_v63, %v2047_v57  ;;  %v2143_v28 = vadd.f32 5.0, %v7432_v0  ;;  %v2642_v44 = vadd.f32 %v2623_v49, %v2594_v42  ;;  %v4003_v27 = vpop.permute.xlu0 %4002 }
 0x64c   :  { %v3410_v22 = vadd.f32 0.9189385, %v3394_v14  ;;  %v1774_v6 = vadd.f32 1e-08, %v7116_v4  ;;  %v2111_v7 = vadd.f32 %v2095_v56, %v2079_v61  ;;  %v3411_v60 = vadd.f32 0.9189385, %v3395_v32 }
 0x64d   :  { %v2158_v50 = vmul.f32 %v2142_v62, %v2110_v58  ;;  %v2174_v23 = vmul.f32 12.507343, %v2126_v5  ;;  %v2175_v2 = vmul.f32 12.507343, %v2127_v25  ;;  %v1666_v48 = vadd.f32 1e-08, %v1650_v46 }
 0x64e   :  { %v1667_v9 = vadd.f32 1e-08, %v1651_v8  ;;  %v2159_v45 = vmul.f32 %v2143_v28, %v2111_v7  ;;  %v2206_v26 = vmul.f32 %v2142_v62, %v2126_v5  ;;  %v2643_v52 = vadd.f32 %v2625_v21, %v2595_v59 }
 0x64f   :  { %v2190_v34 = vadd.f32 %v2174_v23, %v2158_v50  ;;  %v2207_v31 = vmul.f32 %v2143_v28, %v2127_v25  ;;  %v2222_v33 = vadd.f32 6.0, %v7429_v1  ;;  %v2658_v57 = vadd.f32 %v2642_v44, %v7441_v11 }
 0x650   :  { %v2191_v53 = vadd.f32 %v2175_v2, %v2159_v45  ;;  %v2223_v20 = vadd.f32 6.0, %v7432_v0  ;;  %v2254_v4 = vmul.f32 -0.1385711, %v2206_v26  ;;  %v3426_v10 = vsub.f32 %v3410_v22, %v7400_v37 }
 0x651   :  { %v3427_v17 = vsub.f32 %v3411_v60, %v7402_v15  ;;  %v2238_v42 = vmul.f32 %v2222_v33, %v2190_v34  ;;  %v2286_v40 = vmul.f32 %v2222_v33, %v2206_v26  ;;  %v2255_v49 = vmul.f32 -0.1385711, %v2207_v31  ;;  %v8324_v60 = vld [vmem:[#allocation36_spill] sm:$0xff] }
 0x652   :  { %v4882_v63 = vpop.eup %4881  ;;  %v2239_v35 = vmul.f32 %v2223_v20, %v2191_v53  ;;  %v2287_v14 = vmul.f32 %v2223_v20, %v2207_v31  ;;  %v2302_v41 = vadd.f32 7.0, %v7429_v1  ;;  %v2303_v11 = vadd.f32 7.0, %v7432_v0 }
 0x653   :  { %v4884_v56 = vpop.eup %4883  ;;  %v3455_v59 = vmul.f32 0.6931472, %v4882_v63  ;;  %v2270_v32 = vadd.f32 %v2254_v4, %v2238_v42  ;;  %v2382_v46 = vadd.f32 8.0, %v7429_v1  ;;  %v2659_v37 = vadd.f32 %v2643_v52, %v7443_v38 }
 0x654   :  { %v3457_v8 = vmul.f32 0.6931472, %v4884_v56  ;;  %v2334_v15 = vmul.f32 9.984369e-06, %v2286_v40  ;;  %v2366_v61 = vmul.f32 %v2302_v41, %v2286_v40  ;;  %v1775_v62 = vadd.f32 1e-08, %v7119_v55  ;;  %v7482_v55 = vpop.xlane.xlu0 %3863 }
 0x655   :  { %v3474_v5 = vadd.f32 %v3455_v59, %v3426_v10  ;;  %4885 = vlog2.f32 %v1774_v6  ;;  %v2318_v21 = vmul.f32 %v2302_v41, %v2270_v32  ;;  %v2271_v25 = vadd.f32 %v2255_v49, %v2239_v35 }
 0x656   :  { %v3475_v58 = vadd.f32 %v3457_v8, %v3427_v17  ;;  %4887 = vlog2.f32 %v1666_v48  ;;  %v2446_v28 = vmul.f32 %v2382_v46, %v2366_v61  ;;  %v7471_v22 = vmul.f32 %v2303_v11, %v2287_v14  ;;  %v8325_v48 = vld [vmem:[#allocation12_spill] sm:$0xff] }
 0x657   :  { %v3490_v44 = vsub.f32 %v2658_v57, %v3474_v5  ;;  %v7474_v7 = vadd.f32 8.0, %v7432_v0  ;;  %v2702_v38 = vadd.f32 1.0, %v8324_v60  ;;  %v7480_v50 = vmul.f32 0.5, %v4048_v30  ;;  %v8326_v30 = vld [vmem:[#allocation8_spill] sm:$0xff] }
 0x658   :  { %v3491_v6 = vsub.f32 %v2659_v37, %v3475_v58  ;;  %4889 = vlog2.f32 %v1667_v9  ;;  %v2350_v23 = vadd.f32 %v2334_v15, %v2318_v21  ;;  %v4020_v45 = vadd.f32 %v4003_v27, %v8325_v48  ;;  %v7496_v63 = vpop.xlane.xlu0 %3869 }
 0x659   :  { %4891 = vlog2.f32 %v1775_v62  ;;  %v2335_v26 = vmul.f32 9.984369e-06, %v2287_v14  ;;  %v2319_v34 = vmul.f32 %v2303_v11, %v2271_v25  ;;  %v2414_v31 = vmul.f32 1.5056327e-07, %v2366_v61 }
 0x65a   :  { %v3688_v52 = vadd.f32 %v3491_v6, %v3490_v44  ;;  %4893 = vrcp.f32 %v2446_v28  ;;  %v2447_v3 = vmul.f32 %v7474_v7, %v7471_v22  ;;  %v7489_v13 = vadd.f32 0.5, %v2302_v41 }
 0x65b   :  { %v2703_v33 = vadd.f32 1.0, %v8326_v30  ;;  %v2718_v9 = vadd.f32 676.5204, %v2702_v38  ;;  %v2398_v57 = vmul.f32 %v2382_v46, %v2350_v23  ;;  %v2734_v53 = vadd.f32 2.0, %v8324_v60 }
 0x65c   :  { %3689 = vadd.xlane.f32.xlu0 %v3688_v52  ;;  %v2735_v20 = vadd.f32 2.0, %v8326_v30  ;;  %v2766_v4 = vmul.f32 -1259.1392, %v2702_v38  ;;  %v2814_v42 = vadd.f32 3.0, %v8324_v60  ;;  %v2815_v40 = vadd.f32 3.0, %v8326_v30  ;;  %v7508_v23 = vpop.xlane.xlu0 %3875 }
 0x65d   :  { %v2719_v10 = vadd.f32 676.5204, %v2703_v33  ;;  %v2767_v17 = vmul.f32 -1259.1392, %v2703_v33  ;;  %v2750_v35 = vmul.f32 %v2734_v53, %v2718_v9  ;;  %v2798_v49 = vmul.f32 %v2734_v53, %v2702_v38  ;;  %8327 = vst [vmem:[#allocation16_spill] sm:$0xff] %v7508_v23 }
 0x65e   :  { %v2799_v14 = vmul.f32 %v2735_v20, %v2703_v33  ;;  %v2894_v41 = vadd.f32 4.0, %v8324_v60  ;;  %4895 = vrcp.f32 %v2447_v3  ;;  %v7499_v56 = vadd.f32 0.5, %v2303_v11 }
 0x65f   :  { %v2751_v59 = vmul.f32 %v2735_v20, %v2719_v10  ;;  %v2895_v32 = vadd.f32 4.0, %v8326_v30  ;;  %v2782_v46 = vadd.f32 %v2766_v4, %v2750_v35  ;;  %v2846_v27 = vmul.f32 771.3234, %v2798_v49 }
 0x660   :  { %v2878_v37 = vmul.f32 %v2814_v42, %v2798_v49  ;;  %v2974_v8 = vadd.f32 5.0, %v8324_v60  ;;  %v2847_v61 = vmul.f32 771.3234, %v2799_v14  ;;  %v2879_v5 = vmul.f32 %v2815_v40, %v2799_v14 }
 0x661   :  { %v2783_v15 = vadd.f32 %v2767_v17, %v2751_v59  ;;  %v2975_v62 = vadd.f32 5.0, %v8326_v30  ;;  %4897 = vlog2.f32 %v7489_v13  ;;  %v2830_v58 = vmul.f32 %v2814_v42, %v2782_v46 }
 0x662   :  { %v4886_v21 = vpop.eup %4885  ;;  %v2958_v25 = vmul.f32 %v2894_v41, %v2878_v37  ;;  %v3054_v11 = vadd.f32 6.0, %v8324_v60  ;;  %4899 = vlog2.f32 %v7499_v56  ;;  %v2959_v38 = vmul.f32 %v2895_v32, %v2879_v5 }
 0x663   :  { %v4888_v28 = vpop.eup %4887  ;;  %v2831_v44 = vmul.f32 %v2815_v40, %v2783_v15  ;;  %v3055_v6 = vadd.f32 6.0, %v8326_v30  ;;  %v2351_v48 = vadd.f32 %v2335_v26, %v2319_v34  ;;  %v2862_v52 = vadd.f32 %v2846_v27, %v2830_v58  ;;  %v7518_v15 = vpop.xlane.xlu1 %3706 }
 0x664   :  { %v2926_v3 = vmul.f32 -176.61504, %v2878_v37  ;;  %v3038_v33 = vmul.f32 %v2974_v8, %v2958_v25  ;;  %v2430_v53 = vadd.f32 %v2414_v31, %v2398_v57  ;;  %v2927_v4 = vmul.f32 -176.61504, %v2879_v5 }
 0x665   :  { %v4890_v9 = vpop.eup %4889  ;;  %v2863_v20 = vadd.f32 %v2847_v61, %v2831_v44  ;;  %v3039_v10 = vmul.f32 %v2975_v62, %v2959_v38  ;;  %v2910_v42 = vmul.f32 %v2894_v41, %v2862_v52  ;;  %v3134_v40 = vadd.f32 7.0, %v8324_v60 }
 0x666   :  { %v7510_v17 = vpop.eup %4891  ;;  %v3118_v35 = vmul.f32 %v3054_v11, %v3038_v33  ;;  %v3135_v49 = vadd.f32 7.0, %v8326_v30  ;;  %v7514_v59 = vadd.f32 -1.0, %v4020_v45  ;;  %v1691_v26 = vmul.f32 0.6931472, %v4888_v28  ;;  %v7526_v45 = vpop.xlane.xlu0 %3881 }
 0x667   :  { %v4894_v14 = vpop.eup %4893  ;;  %v2911_v34 = vmul.f32 %v2895_v32, %v2863_v20  ;;  %v3119_v46 = vmul.f32 %v3055_v6, %v3039_v10  ;;  %v2399_v27 = vmul.f32 %v7474_v7, %v2351_v48  ;;  %v2415_v31 = vmul.f32 1.5056327e-07, %v7471_v22  ;;  %v8328_v48 = vld [vmem:[#allocation56_spill] sm:$0xff] }
 0x668   :  { %v2942_v57 = vadd.f32 %v2926_v3, %v2910_v42  ;;  %v3006_v37 = vmul.f32 12.507343, %v2958_v25  ;;  %v3007_v61 = vmul.f32 12.507343, %v2959_v38  ;;  %v7521_v5 = vadd.f32 8.0, %v8324_v60 }
 0x669   :  { %v2943_v41 = vadd.f32 %v2927_v4, %v2911_v34  ;;  %v7524_v58 = vadd.f32 8.0, %v8326_v30  ;;  %v2471_v32 = vmul.f32 %v4894_v14, %v2430_v53  ;;  %v3198_v44 = vmul.f32 %v3134_v40, %v3118_v35 }
 0x66a   :  { %v2990_v28 = vmul.f32 %v2974_v8, %v2942_v57  ;;  %v3199_v7 = vmul.f32 %v3135_v49, %v3119_v46  ;;  %v4052_v22 = vsub.f32 %v7514_v59, %v8328_v48  ;;  %v1693_v25 = vmul.f32 0.6931472, %v4890_v9 }
 0x66b   :  { %v1799_v52 = vmul.f32 0.6931472, %v4886_v21  ;;  %v2991_v3 = vmul.f32 %v2975_v62, %v2943_v41  ;;  %v4896_v20 = vpop.eup %4895  ;;  %v7531_v38 = vmul.f32 %v7417_v54, %v1691_v26  ;;  %v3086_v42 = vmul.f32 -0.1385711, %v3038_v33  ;;  %v3704_v62 = vpop.xlane.xlu0 %3703 }
 0x66c   :  { %v3022_v4 = vadd.f32 %v3006_v37, %v2990_v28  ;;  %v3087_v34 = vmul.f32 -0.1385711, %v3039_v10  ;;  %v3278_v23 = vmul.f32 %v7521_v5, %v3198_v44  ;;  %v3279_v8 = vmul.f32 %v7524_v58, %v3199_v7  ;;  %v3672_v21 = vpop.xlane.xlu1 %3671 }
 0x66d   :  { %v3023_v2 = vadd.f32 %v3007_v61, %v2991_v3  ;;  %v7535_v53 = vadd.f32 0.5, %v3134_v40  ;;  %v2431_v14 = vadd.f32 %v2415_v31, %v2399_v27  ;;  %4901 = vlog2.f32 %v2471_v32 }
 0x66e   :  { %v3070_v57 = vmul.f32 %v3054_v11, %v3022_v4  ;;  %v7537_v9 = vadd.f32 0.5, %v3135_v49  ;;  %v4898_v41 = vpop.eup %4897  ;;  %v2510_v54 = vadd.f32 0.5, %v7429_v1  ;;  %4903 = vrcp.f32 %v3278_v23  ;;  %v8329_v11 = vld [vmem:[#allocation51_spill] sm:$0xff] }
 0x66f   :  { %v3071_v26 = vmul.f32 %v3055_v6, %v3023_v2  ;;  %v4900_v33 = vpop.eup %4899  ;;  %v3166_v37 = vmul.f32 9.984369e-06, %v3118_v35  ;;  %v3167_v61 = vmul.f32 9.984369e-06, %v3119_v46  ;;  %4905 = vrcp.f32 %v3279_v8 }
 0x670   :  { %v3102_v10 = vadd.f32 %v3086_v42, %v3070_v57  ;;  %v5031_v28 = vmov 1   ;;  %4907 = vlog2.f32 %v7535_v53  ;;  %v3726_v31 = vmul.f32 0.5, %v3704_v62 }
 0x671   :  { %4395 = vset.pattern.permute.xlu1 %v5031_v28  ;;  %4394 = vset.pattern.permute.xlu0 %v5031_v28  ;;  %v3103_v27 = vadd.f32 %v3087_v34, %v3071_v26  ;;  %v3694_v32 = vsub.f32 0.0, %v3672_v21  ;;  %v2473_v3 = vmul.f32 %v4896_v20, %v2431_v14  ;;  %v2535_v4 = vmul.f32 0.6931472, %v4898_v41 }
 0x672   :  { %4098 = vperm.xlu1 %4395, %v8329_v11   ;;  %v3150_v1 = vmul.f32 %v3134_v40, %v3102_v10  ;;  %4909 = vlog2.f32 %v7537_v9  ;;  %v2511_v2 = vadd.f32 0.5, %v7432_v0  ;;  %v2537_v6 = vmul.f32 0.6931472, %v4900_v33  ;;  %v7556_v0 = vld [vmem:[%s8072_s27 + $0x70] sm:$0xff] }
 0x673   :  { %v3151_v23 = vmul.f32 %v3135_v49, %v3103_v27  ;;  %v7544_v35 = vadd.f32 %v3726_v31, %v3694_v32  ;;  %v7547_v46 = vmul.f32 %v7426_v29, %v1693_v25  ;;  %v1758_v42 = vsub.f32 %v6644_v36, %v7531_v38  ;;  %v7565_v29 = vld [vmem:[%s8072_s27 + $0x78] sm:$0xff]  ;;  %v8330_v25 = vld [vmem:[#allocation49_spill] sm:$0xff]  ;;  %v8331_v38 = vld [vmem:[#allocation70_spill] sm:$0xff] }
 0x674   :  { %v1801_v34 = vmul.f32 0.6931472, %v7510_v17  ;;  %v3182_v8 = vadd.f32 %v3166_v37, %v3150_v1  ;;  %v3246_v14 = vmul.f32 1.5056327e-07, %v3198_v44  ;;  %v7560_v40 = vadd.f32 %v7556_v0, %v6171_v18 }
 0x675   :  { %v3183_v20 = vadd.f32 %v3167_v61, %v3151_v23  ;;  %v7569_v17 = vadd.f32 %v7565_v29, %v6174_v47  ;;  %v2558_v49 = vmul.f32 %v2535_v4, %v2510_v54  ;;  %4911 = vlog2.f32 %v2473_v3 }
 0x676   :  { %4103 = vperm.xlu1 %4395, %v7480_v50   ;;  %v3230_v50 = vmul.f32 %v7521_v5, %v3182_v8  ;;  %v3247_v44 = vmul.f32 1.5056327e-07, %v3199_v7  ;;  %v8332_v57 = vsub.f32 %v8330_v25, %v8331_v38  ;;  %v1822_v21 = vmul.f32 %v7413_v16, %v1799_v52 }
 0x677   :  { %v2559_v41 = vmul.f32 %v2537_v6, %v2511_v2  ;;  %v3231_v26 = vmul.f32 %v7524_v58, %v3183_v20  ;;  %v8333_v33 = vsub.f32 %v7439_v51, %v7014_v24  ;;  %v4060_v54 = vmul.f32 0.5, %v4052_v22 }
 0x678   :  { %v4059_v62 = vmul.f32 0.5, %v8332_v57  ;;  %v7584_v5 = vmul.f32 %v7422_v19, %v1801_v34  ;;  %v7587_v7 = vadd.f32 -1.0, %v7560_v40  ;;  %v1759_v16 = vsub.f32 %v6647_v12, %v7547_v46 }
 0x679   :  { %v4058_v10 = vmul.f32 0.5, %v8333_v33  ;;  %v7591_v52 = vadd.f32 %v1822_v21, %v1758_v42  ;;  %v3262_v58 = vadd.f32 %v3246_v14, %v3230_v50  ;;  %v7595_v24 = vadd.f32 -1.0, %v7569_v17 }
 0x67a   :  { %4108 = vperm.xlu1 %4395, %v7369_v43   ;;  %v2574_v51 = vadd.f32 0.9189385, %v2558_v49  ;;  %v3263_v59 = vadd.f32 %v3247_v44, %v3231_v26  ;;  %v1876_v48 = vadd.f32 1.0, %v7587_v7  ;;  %v1908_v19 = vadd.f32 2.0, %v7587_v7  ;;  %v4902_v22 = vpop.eup %4901 }
 0x67b   :  { %v7599_v37 = vadd.f32 0.9189385, %v2559_v41  ;;  %v3342_v61 = vadd.f32 0.5, %v8324_v60  ;;  %v1877_v28 = vadd.f32 1.0, %v7595_v24  ;;  %v1909_v27 = vadd.f32 2.0, %v7595_v24  ;;  %v4904_v11 = vpop.eup %4903 }
 0x67c   :  { %v1892_v43 = vadd.f32 676.5204, %v1876_v48  ;;  %v1940_v31 = vmul.f32 -1259.1392, %v1876_v48  ;;  %v1972_v32 = vmul.f32 %v1908_v19, %v1876_v48  ;;  %v1988_v3 = vadd.f32 3.0, %v7587_v7  ;;  %v4906_v4 = vpop.eup %4905 }
 0x67d   :  { %v3303_v1 = vmul.f32 %v4904_v11, %v3262_v58  ;;  %v3343_v2 = vadd.f32 0.5, %v8326_v30  ;;  %v1893_v6 = vadd.f32 676.5204, %v1877_v28  ;;  %v1941_v23 = vmul.f32 -1259.1392, %v1877_v28  ;;  %v4908_v42 = vpop.eup %4907 }
 0x67e   :  { %4113 = vperm.xlu1 %4395, %v4058_v10   ;;  %v3305_v34 = vmul.f32 %v4906_v4, %v3263_v59  ;;  %v1924_v60 = vmul.f32 %v1908_v19, %v1892_v43  ;;  %v1973_v8 = vmul.f32 %v1909_v27, %v1877_v28  ;;  %v1989_v20 = vadd.f32 3.0, %v7595_v24  ;;  %v8335_v4 = vld [vmem:[#allocation14_spill] sm:$0xff] }
 0x67f   :  { %v4910_v14 = vpop.eup %4909  ;;  %v3367_v49 = vmul.f32 0.6931472, %v4908_v42  ;;  %4913 = vlog2.f32 %v3303_v1  ;;  %v1925_v50 = vmul.f32 %v1909_v27, %v1893_v6  ;;  %v2020_v44 = vmul.f32 771.3234, %v1972_v32 }
 0x680   :  { %v3369_v25 = vmul.f32 0.6931472, %v4910_v14  ;;  %4915 = vlog2.f32 %v3305_v34  ;;  %v1956_v38 = vadd.f32 %v1940_v31, %v1924_v60  ;;  %v2052_v57 = vmul.f32 %v1988_v3, %v1972_v32  ;;  %v8336_v14 = vld [vmem:[#allocation38_spill] sm:$0xff] }
 0x681   :  { %v2590_v30 = vsub.f32 %v2574_v51, %v7489_v13  ;;  %v1957_v21 = vadd.f32 %v1941_v23, %v1925_v50  ;;  %v2021_v41 = vmul.f32 771.3234, %v1973_v8  ;;  %v2068_v26 = vadd.f32 4.0, %v7587_v7  ;;  %v8334_v51 = vld [vmem:[#allocation42_spill] sm:$0xff] }
 0x682   :  { %4118 = vperm.xlu1 %4395, %v4059_v62   ;;  %v2591_v33 = vsub.f32 %v7599_v37, %v7499_v56  ;;  %v2615_v10 = vmul.f32 0.6931472, %v4902_v22  ;;  %v3390_v58 = vmul.f32 %v3367_v49, %v3342_v61  ;;  %v2004_v59 = vmul.f32 %v1988_v3, %v1956_v38  ;;  %v4912_v48 = vpop.eup %4911  ;;  %v8337_v49 = vld [vmem:[#allocation50_spill] sm:$0xff] }
 0x683   :  { %v3391_v19 = vmul.f32 %v3369_v25, %v3343_v2  ;;  %v2005_v28 = vmul.f32 %v1989_v20, %v1957_v21  ;;  %v2053_v27 = vmul.f32 %v1989_v20, %v1973_v8  ;;  %v2069_v11 = vadd.f32 4.0, %v7595_v24 }
 0x684   :  { %v2036_v43 = vadd.f32 %v2020_v44, %v2004_v59  ;;  %v2100_v31 = vmul.f32 -176.61504, %v2052_v57  ;;  %v2132_v13 = vmul.f32 %v2068_v26, %v2052_v57  ;;  %v2148_v62 = vadd.f32 5.0, %v7587_v7 }
 0x685   :  { %v1656_v32 = vadd.f32 %v6171_v18, %v8334_v51  ;;  %v1657_v56 = vadd.f32 %v6174_v47, %v8335_v4  ;;  %v2037_v22 = vadd.f32 %v2021_v41, %v2005_v28  ;;  %v2101_v37 = vmul.f32 -176.61504, %v2053_v27 }
 0x686   :  { %4123 = vperm.xlu1 %4395, %v4060_v54   ;;  %v2617_v61 = vmul.f32 0.6931472, %v4912_v48  ;;  %v2638_v3 = vadd.f32 %v2615_v10, %v2590_v30  ;;  %v3406_v1 = vadd.f32 0.9189385, %v3390_v58  ;;  %v2084_v2 = vmul.f32 %v2068_v26, %v2036_v43 }
 0x687   :  { %v3407_v6 = vadd.f32 0.9189385, %v3391_v19  ;;  %v2085_v23 = vmul.f32 %v2069_v11, %v2037_v22  ;;  %v2133_v42 = vmul.f32 %v2069_v11, %v2053_v27  ;;  %v2149_v34 = vadd.f32 5.0, %v7595_v24 }
 0x688   :  { %v2116_v60 = vadd.f32 %v2100_v31, %v2084_v2  ;;  %v2180_v8 = vmul.f32 12.507343, %v2132_v13  ;;  %v2212_v54 = vmul.f32 %v2148_v62, %v2132_v13  ;;  %v2228_v20 = vadd.f32 6.0, %v7587_v7 }
 0x689   :  { %v4014_v50 = vadd.f32 %v8337_v49, %v8336_v14  ;;  %v1839_v44 = vadd.f32 %v7584_v5, %v1759_v16  ;;  %v2117_v25 = vadd.f32 %v2101_v37, %v2085_v23  ;;  %v2181_v38 = vmul.f32 12.507343, %v2133_v42 }
 0x68a   :  { %v2639_v57 = vadd.f32 %v2617_v61, %v2591_v33  ;;  %v1672_v30 = vadd.f32 1e-08, %v1656_v32  ;;  %v1673_v21 = vadd.f32 1e-08, %v1657_v56  ;;  %v2164_v41 = vmul.f32 %v2148_v62, %v2116_v60 }
 0x68b   :  { %v2654_v26 = vadd.f32 %v2638_v3, %v7591_v52  ;;  %v3422_v10 = vsub.f32 %v3406_v1, %v7535_v53  ;;  %v3423_v58 = vsub.f32 %v3407_v6, %v7537_v9  ;;  %v2165_v59 = vmul.f32 %v2149_v34, %v2117_v25  ;;  %v8338_v1 = vld [vmem:[#allocation17_spill] sm:$0xff] }
 0x68c   :  { %v4914_v48 = vpop.eup %4913  ;;  %v2196_v19 = vadd.f32 %v2180_v8, %v2164_v41  ;;  %v2213_v28 = vmul.f32 %v2149_v34, %v2133_v42  ;;  %v2229_v46 = vadd.f32 6.0, %v7595_v24  ;;  %v2292_v27 = vmul.f32 %v2228_v20, %v2212_v54  ;;  %v8339_v8 = vld [vmem:[#allocation33_spill] sm:$0xff] }
 0x68d   :  { %v4916_v5 = vpop.eup %4915  ;;  %v3447_v16 = vmul.f32 0.6931472, %v4914_v48  ;;  %v2197_v11 = vadd.f32 %v2181_v38, %v2165_v59  ;;  %v2260_v33 = vmul.f32 -0.1385711, %v2212_v54  ;;  %v2308_v43 = vadd.f32 7.0, %v7587_v7 }
 0x68e   :  { %v2655_v31 = vadd.f32 %v2639_v57, %v1839_v44  ;;  %v3449_v13 = vmul.f32 0.6931472, %v4916_v5  ;;  %v2244_v52 = vmul.f32 %v2228_v20, %v2196_v19  ;;  %v2261_v62 = vmul.f32 -0.1385711, %v2213_v28 }
 0x68f   :  { %v3470_v53 = vadd.f32 %v3447_v16, %v3422_v10  ;;  %v1780_v9 = vadd.f32 1e-08, %v8334_v51  ;;  %v2245_v32 = vmul.f32 %v2229_v46, %v2197_v11  ;;  %v2372_v56 = vmul.f32 %v2308_v43, %v2292_v27 }
 0x690   :  { %v3471_v22 = vadd.f32 %v3449_v13, %v3423_v58  ;;  %v2293_v37 = vmul.f32 %v2229_v46, %v2213_v28  ;;  %v2309_v61 = vadd.f32 7.0, %v7595_v24  ;;  %v2388_v3 = vadd.f32 8.0, %v7587_v7 }
 0x691   :  { %v7634_v2 = vadd.f32 -1.0, %v8338_v1  ;;  %v3486_v6 = vsub.f32 %v2654_v26, %v3470_v53  ;;  %4917 = vlog2.f32 %v1672_v30  ;;  %v2276_v23 = vadd.f32 %v2260_v33, %v2244_v52 }
 0x692   :  { %v3487_v42 = vsub.f32 %v2655_v31, %v3471_v22  ;;  %4919 = vlog2.f32 %v1673_v21  ;;  %v2277_v34 = vadd.f32 %v2261_v62, %v2245_v32  ;;  %v2452_v60 = vmul.f32 %v2388_v3, %v2372_v56 }
 0x693   :  { %v7637_v51 = vmul.f32 0.6931472, %v8339_v8  ;;  %v7639_v54 = vadd.f32 -1.0, %v4014_v50  ;;  %v7642_v20 = vadd.f32 1e-08, %v8335_v4  ;;  %4921 = vlog2.f32 %v1780_v9  ;;  %v8340_v50 = vld [vmem:[#allocation35_spill] sm:$0xff] }
 0x694   :  { %v3682_v14 = vadd.f32 %v3487_v42, %v3486_v6  ;;  %v2340_v49 = vmul.f32 9.984369e-06, %v2292_v27  ;;  %v7644_v44 = vmul.f32 %v2309_v61, %v2293_v37  ;;  %v7647_v25 = vadd.f32 8.0, %v7595_v24 }
 0x695   :  { %v2324_v38 = vmul.f32 %v2308_v43, %v2276_v23  ;;  %v2341_v57 = vmul.f32 9.984369e-06, %v2293_v37  ;;  %v2420_v30 = vmul.f32 1.5056327e-07, %v2372_v56  ;;  %v2708_v21 = vadd.f32 1.0, %v7634_v2 }
 0x696   :  { %3683 = vadd.xlane.f32.xlu0 %v3682_v14  ;;  %v2325_v41 = vmul.f32 %v2309_v61, %v2277_v34  ;;  %4923 = vrcp.f32 %v2452_v60  ;;  %v2709_v26 = vadd.f32 1.0, %v8340_v50  ;;  %v2740_v4 = vadd.f32 2.0, %v7634_v2 }
 0x697   :  { %v7652_v10 = vadd.f32 0.5, %v2308_v43  ;;  %v7654_v58 = vadd.f32 0.5, %v2309_v61  ;;  %v2724_v59 = vadd.f32 676.5204, %v2708_v21  ;;  %v2741_v48 = vadd.f32 2.0, %v8340_v50 }
 0x698   :  { %v2453_v19 = vmul.f32 %v7647_v25, %v7644_v44  ;;  %v2725_v28 = vadd.f32 676.5204, %v2709_v26  ;;  %v2772_v46 = vmul.f32 -1259.1392, %v2708_v21  ;;  %v2773_v27 = vmul.f32 -1259.1392, %v2709_v26 }
 0x699   :  { %v2356_v5 = vadd.f32 %v2340_v49, %v2324_v38  ;;  %v2756_v16 = vmul.f32 %v2740_v4, %v2724_v59  ;;  %v2804_v11 = vmul.f32 %v2740_v4, %v2708_v21  ;;  %v2805_v33 = vmul.f32 %v2741_v48, %v2709_v26 }
 0x69a   :  { %v2757_v31 = vmul.f32 %v2741_v48, %v2725_v28  ;;  %v2820_v13 = vadd.f32 3.0, %v7634_v2  ;;  %v2821_v43 = vadd.f32 3.0, %v8340_v50  ;;  %v2900_v52 = vadd.f32 4.0, %v7634_v2 }
 0x69b   :  { %v2788_v62 = vadd.f32 %v2772_v46, %v2756_v16  ;;  %v2852_v53 = vmul.f32 771.3234, %v2804_v11  ;;  %v2853_v9 = vmul.f32 771.3234, %v2805_v33  ;;  %v2901_v32 = vadd.f32 4.0, %v8340_v50 }
 0x69c   :  { %v2789_v56 = vadd.f32 %v2773_v27, %v2757_v31  ;;  %v2884_v22 = vmul.f32 %v2820_v13, %v2804_v11  ;;  %v2885_v37 = vmul.f32 %v2821_v43, %v2805_v33  ;;  %v2980_v61 = vadd.f32 5.0, %v7634_v2 }
 0x69d   :  { %v2404_v1 = vmul.f32 %v2388_v3, %v2356_v5  ;;  %4925 = vrcp.f32 %v2453_v19  ;;  %v2836_v6 = vmul.f32 %v2820_v13, %v2788_v62  ;;  %v2981_v23 = vadd.f32 5.0, %v8340_v50 }
 0x69e   :  { %v4918_v42 = vpop.eup %4917  ;;  %4927 = vlog2.f32 %v7652_v10  ;;  %v2837_v34 = vmul.f32 %v2821_v43, %v2789_v56  ;;  %v2964_v60 = vmul.f32 %v2900_v52, %v2884_v22  ;;  %v3060_v8 = vadd.f32 6.0, %v7634_v2 }
 0x69f   :  { %v4920_v14 = vpop.eup %4919  ;;  %v2868_v49 = vadd.f32 %v2852_v53, %v2836_v6  ;;  %v2932_v38 = vmul.f32 -176.61504, %v2884_v22  ;;  %v2965_v21 = vmul.f32 %v2901_v32, %v2885_v37  ;;  %v3061_v26 = vadd.f32 6.0, %v8340_v50  ;;  %v8341_v6 = vld [vmem:[#allocation11_spill] sm:$0xff] }
 0x6a0   :  { %v4922_v4 = vpop.eup %4921  ;;  %4929 = vlog2.f32 %v7654_v58  ;;  %v2869_v3 = vadd.f32 %v2853_v9, %v2837_v34  ;;  %v2933_v59 = vmul.f32 -176.61504, %v2885_v37  ;;  %v3044_v48 = vmul.f32 %v2980_v61, %v2964_v60 }
 0x6a1   :  { %v2357_v19 = vadd.f32 %v2341_v57, %v2325_v41  ;;  %v2436_v28 = vadd.f32 %v2420_v30, %v2404_v1  ;;  %v2916_v46 = vmul.f32 %v2900_v52, %v2868_v49  ;;  %v3045_v27 = vmul.f32 %v2981_v23, %v2965_v21 }
 0x6a2   :  { %v2917_v5 = vmul.f32 %v2901_v32, %v2869_v3  ;;  %v3124_v16 = vmul.f32 %v3060_v8, %v3044_v48  ;;  %v3140_v11 = vadd.f32 7.0, %v7634_v2  ;;  %v3141_v33 = vadd.f32 7.0, %v8340_v50 }
 0x6a3   :  { %v4924_v31 = vpop.eup %4923  ;;  %4931 = vlog2.f32 %v7642_v20  ;;  %v2948_v13 = vadd.f32 %v2932_v38, %v2916_v46  ;;  %v3012_v43 = vmul.f32 12.507343, %v2964_v60  ;;  %v3125_v62 = vmul.f32 %v3061_v26, %v3045_v27 }
 0x6a4   :  { %v4046_v53 = vsub.f32 %v7639_v54, %v7637_v51  ;;  %v2421_v57 = vmul.f32 1.5056327e-07, %v7644_v44  ;;  %v2949_v30 = vadd.f32 %v2933_v59, %v2917_v5  ;;  %v3013_v41 = vmul.f32 12.507343, %v2965_v21 }
 0x6a5   :  { %v2405_v52 = vmul.f32 %v7647_v25, %v2357_v19  ;;  %v2996_v9 = vmul.f32 %v2980_v61, %v2948_v13  ;;  %v3220_v32 = vadd.f32 8.0, %v7634_v2  ;;  %v3221_v56 = vadd.f32 8.0, %v8340_v50 }
 0x6a6   :  { %v2483_v22 = vmul.f32 %v4924_v31, %v2436_v28  ;;  %v2997_v37 = vmul.f32 %v2981_v23, %v2949_v30  ;;  %v3204_v20 = vmul.f32 %v3140_v11, %v3124_v16  ;;  %v3205_v1 = vmul.f32 %v3141_v33, %v3125_v62 }
 0x6a7   :  { %v7679_v34 = vadd.f32 -1.0, %v8341_v6  ;;  %v1703_v60 = vmul.f32 0.6931472, %v4918_v42  ;;  %v3028_v51 = vadd.f32 %v3012_v43, %v2996_v9  ;;  %v3092_v54 = vmul.f32 -0.1385711, %v3044_v48 }
 0x6a8   :  { %v4054_v44 = vmul.f32 0.5, %v4046_v53  ;;  %v1705_v49 = vmul.f32 0.6931472, %v4920_v14  ;;  %v3029_v38 = vadd.f32 %v3013_v41, %v2997_v37  ;;  %v3093_v21 = vmul.f32 -0.1385711, %v3045_v27  ;;  %v7691_v27 = vld [vmem:[%s8072_s27 + $0x50] sm:$0xff] }
 0x6a9   :  { %v3076_v25 = vmul.f32 %v3060_v8, %v3028_v51  ;;  %v3284_v61 = vmul.f32 %v3220_v32, %v3204_v20  ;;  %v3285_v3 = vmul.f32 %v3221_v56, %v3205_v1  ;;  %v7681_v59 = vadd.f32 0.5, %v3140_v11 }
 0x6aa   :  { %v4926_v19 = vpop.eup %4925  ;;  %v2437_v28 = vadd.f32 %v2421_v57, %v2405_v52  ;;  %4933 = vlog2.f32 %v2483_v22  ;;  %v3077_v23 = vmul.f32 %v3061_v26, %v3029_v38  ;;  %v7683_v46 = vadd.f32 0.5, %v3141_v33 }
 0x6ab   :  { %v4928_v5 = vpop.eup %4927  ;;  %v7686_v42 = vmul.f32 %v7560_v40, %v1703_v60  ;;  %v3108_v48 = vadd.f32 %v3092_v54, %v3076_v25  ;;  %v3172_v31 = vmul.f32 9.984369e-06, %v3124_v16  ;;  %4935 = vrcp.f32 %v3284_v61  ;;  %v7703_v16 = vld [vmem:[%s8072_s27 + $0x58] sm:$0xff] }
 0x6ac   :  { %4093 = vperm.xlu0 %4394, %v4054_v44   ;;  %v3109_v14 = vadd.f32 %v3093_v21, %v3077_v23  ;;  %v3173_v8 = vmul.f32 9.984369e-06, %v3125_v62  ;;  %4937 = vrcp.f32 %v3285_v3  ;;  %v7695_v26 = vadd.f32 %v7691_v27, %v6171_v18 }
 0x6ad   :  { %v4930_v13 = vpop.eup %4929  ;;  %v7697_v43 = vmul.f32 0.6931472, %v4922_v4  ;;  %v3156_v40 = vmul.f32 %v3140_v11, %v3108_v48  ;;  %4939 = vlog2.f32 %v7681_v59  ;;  %v7707_v62 = vadd.f32 %v7703_v16, %v6174_v47 }
 0x6ae   :  { %v7710_v53 = vmul.f32 %v7569_v17, %v1705_v49  ;;  %v2485_v57 = vmul.f32 %v4926_v19, %v2437_v28  ;;  %v3157_v30 = vmul.f32 %v3141_v33, %v3109_v14  ;;  %4941 = vlog2.f32 %v7683_v46 }
 0x6af   :  { %v2516_v4 = vadd.f32 0.5, %v7587_v7  ;;  %v2547_v11 = vmul.f32 0.6931472, %v4928_v5  ;;  %v3188_v41 = vadd.f32 %v3172_v31, %v3156_v40  ;;  %v7715_v52 = vadd.f32 -1.0, %v7695_v26 }
 0x6b0   :  { %v4932_v9 = vpop.eup %4931  ;;  %v2517_v22 = vadd.f32 0.5, %v7595_v24  ;;  %v2549_v37 = vmul.f32 0.6931472, %v4930_v13  ;;  %v3189_v6 = vadd.f32 %v3173_v8, %v3157_v30  ;;  %v7719_v60 = vadd.f32 -1.0, %v7707_v62 }
 0x6b1   :  { %v3236_v17 = vmul.f32 %v3220_v32, %v3188_v41  ;;  %v3252_v51 = vmul.f32 1.5056327e-07, %v3204_v20  ;;  %v1872_v33 = vadd.f32 1.0, %v7715_v52  ;;  %v1904_v54 = vadd.f32 2.0, %v7715_v52 }
 0x6b2   :  { %4943 = vlog2.f32 %v2485_v57  ;;  %v3237_v7 = vmul.f32 %v3221_v56, %v3189_v6  ;;  %v3253_v44 = vmul.f32 1.5056327e-07, %v3205_v1  ;;  %v1873_v49 = vadd.f32 1.0, %v7719_v60 }
 0x6b3   :  { %v1813_v38 = vmul.f32 0.6931472, %v4932_v9  ;;  %v2564_v21 = vmul.f32 %v2547_v11, %v2516_v4  ;;  %v1888_v25 = vadd.f32 676.5204, %v1872_v33  ;;  %v1905_v24 = vadd.f32 2.0, %v7719_v60 }
 0x6b4   :  { %v1764_v61 = vsub.f32 %v6644_v36, %v7686_v42  ;;  %v2565_v3 = vmul.f32 %v2549_v37, %v2517_v22  ;;  %v1889_v32 = vadd.f32 676.5204, %v1873_v49  ;;  %v1936_v20 = vmul.f32 -1259.1392, %v1872_v33 }
 0x6b5   :  { %v3268_v19 = vadd.f32 %v3252_v51, %v3236_v17  ;;  %v1920_v28 = vmul.f32 %v1904_v54, %v1888_v25  ;;  %v1937_v23 = vmul.f32 -1259.1392, %v1873_v49  ;;  %v1968_v5 = vmul.f32 %v1904_v54, %v1872_v33 }
 0x6b6   :  { %v3269_v48 = vadd.f32 %v3253_v44, %v3237_v7  ;;  %v1921_v56 = vmul.f32 %v1905_v24, %v1889_v32  ;;  %v1969_v1 = vmul.f32 %v1905_v24, %v1873_v49  ;;  %v1984_v31 = vadd.f32 3.0, %v7715_v52 }
 0x6b7   :  { %v4934_v14 = vpop.eup %4933  ;;  %v2580_v8 = vadd.f32 0.9189385, %v2564_v21  ;;  %v1952_v13 = vadd.f32 %v1936_v20, %v1920_v28  ;;  %v1985_v40 = vadd.f32 3.0, %v7719_v60  ;;  %v2016_v57 = vmul.f32 771.3234, %v1968_v5 }
 0x6b8   :  { %v4936_v30 = vpop.eup %4935  ;;  %v3348_v42 = vadd.f32 0.5, %v7634_v2  ;;  %v3349_v4 = vadd.f32 0.5, %v8340_v50  ;;  %v1953_v11 = vadd.f32 %v1937_v23, %v1921_v56  ;;  %v2017_v41 = vmul.f32 771.3234, %v1969_v1 }
 0x6b9   :  { %v4938_v9 = vpop.eup %4937  ;;  %v3315_v22 = vmul.f32 %v4936_v30, %v3268_v19  ;;  %v2000_v37 = vmul.f32 %v1984_v31, %v1952_v13  ;;  %v2048_v6 = vmul.f32 %v1984_v31, %v1968_v5  ;;  %v2064_v17 = vadd.f32 4.0, %v7715_v52 }
 0x6ba   :  { %v4940_v51 = vpop.eup %4939  ;;  %v3317_v33 = vmul.f32 %v4938_v9, %v3269_v48  ;;  %v2001_v54 = vmul.f32 %v1985_v40, %v1953_v11  ;;  %v2049_v7 = vmul.f32 %v1985_v40, %v1969_v1  ;;  %v2065_v44 = vadd.f32 4.0, %v7719_v60 }
 0x6bb   :  { %v4942_v49 = vpop.eup %4941  ;;  %v3379_v21 = vmul.f32 0.6931472, %v4940_v51  ;;  %4945 = vlog2.f32 %v3315_v22  ;;  %v2032_v2 = vadd.f32 %v2016_v57, %v2000_v37  ;;  %v2096_v25 = vmul.f32 -176.61504, %v2048_v6  ;;  %v7746_v22 = vpop.xlane.xlu1 %3712 }
 0x6bc   :  { %v3381_v50 = vmul.f32 0.6931472, %v4942_v49  ;;  %4947 = vlog2.f32 %v3317_v33  ;;  %v2033_v24 = vadd.f32 %v2017_v41, %v2001_v54  ;;  %v2097_v32 = vmul.f32 -176.61504, %v2049_v7  ;;  %v8342_v54 = vld [vmem:[#allocation5_spill] sm:$0xff] }
 0x6bd   :  { %v1765_v20 = vsub.f32 %v6647_v12, %v7710_v53  ;;  %v1828_v19 = vmul.f32 %v7556_v0, %v7697_v43  ;;  %v2581_v28 = vadd.f32 0.9189385, %v2565_v3  ;;  %v2080_v23 = vmul.f32 %v2064_v17, %v2032_v2 }
 0x6be   :  { %v1829_v5 = vmul.f32 %v7565_v29, %v1813_v38  ;;  %v2596_v48 = vsub.f32 %v2580_v8, %v7652_v10  ;;  %v2627_v56 = vmul.f32 0.6931472, %v4934_v14  ;;  %v2081_v1 = vmul.f32 %v2065_v44, %v2033_v24 }
 0x6bf   :  { %v4944_v31 = vpop.eup %4943  ;;  %v3396_v13 = vmul.f32 %v3379_v21, %v3348_v42  ;;  %v2112_v40 = vadd.f32 %v2096_v25, %v2080_v23  ;;  %v2128_v57 = vmul.f32 %v2064_v17, %v2048_v6  ;;  %v2144_v30 = vadd.f32 5.0, %v7715_v52  ;;  %v7744_v42 = vpop.xlane.xlu0 %3709 }
 0x6c0   :  { %v3397_v11 = vmul.f32 %v3381_v50, %v3349_v4  ;;  %v2113_v41 = vadd.f32 %v2097_v32, %v2081_v1  ;;  %v2129_v53 = vmul.f32 %v2065_v44, %v2049_v7  ;;  %v2145_v9 = vadd.f32 5.0, %v7719_v60 }
 0x6c1   :  { %v1844_v0 = vadd.f32 %v1828_v19, %v1764_v61  ;;  %v1845_v43 = vadd.f32 %v1829_v5, %v1765_v20  ;;  %v2597_v3 = vsub.f32 %v2581_v28, %v7654_v58  ;;  %v2160_v29 = vmul.f32 %v2144_v30, %v2112_v40 }
 0x6c2   :  { %v2629_v38 = vmul.f32 0.6931472, %v4944_v31  ;;  %v2644_v10 = vadd.f32 %v2627_v56, %v2596_v48  ;;  %v1652_v14 = vadd.f32 %v6171_v18, %v7211_v39  ;;  %v2161_v8 = vmul.f32 %v2145_v9, %v2113_v41  ;;  %v7766_v31 = vpop.xlane.xlu1 %3677 }
 0x6c3   :  { %v3412_v4 = vadd.f32 0.9189385, %v3396_v13  ;;  %v2176_v37 = vmul.f32 12.507343, %v2128_v57  ;;  %v2177_v6 = vmul.f32 12.507343, %v2129_v53  ;;  %v2208_v17 = vmul.f32 %v2144_v30, %v2128_v57  ;;  %v7764_v1 = vpop.xlane.xlu0 %3674 }
 0x6c4   :  { %v3413_v51 = vadd.f32 0.9189385, %v3397_v11  ;;  %v2209_v61 = vmul.f32 %v2145_v9, %v2129_v53  ;;  %v2224_v33 = vadd.f32 6.0, %v7715_v52  ;;  %v2225_v58 = vadd.f32 6.0, %v7719_v60 }
 0x6c5   :  { %v1653_v7 = vadd.f32 %v6174_v47, %v8342_v54  ;;  %v2192_v44 = vadd.f32 %v2176_v37, %v2160_v29  ;;  %v2193_v18 = vadd.f32 %v2177_v6, %v2161_v8  ;;  %v7753_v49 = vadd.f32 7.0, %v7715_v52 }
 0x6c6   :  { %v2645_v21 = vadd.f32 %v2629_v38, %v2597_v3  ;;  %v2288_v2 = vmul.f32 %v2224_v33, %v2208_v17  ;;  %v2289_v25 = vmul.f32 %v2225_v58, %v2209_v61  ;;  %v7756_v50 = vadd.f32 7.0, %v7719_v60 }
 0x6c7   :  { %v3428_v24 = vsub.f32 %v3412_v4, %v7681_v59  ;;  %v2240_v32 = vmul.f32 %v2224_v33, %v2192_v44  ;;  %v2256_v20 = vmul.f32 -0.1385711, %v2208_v17  ;;  %v7760_v19 = vadd.f32 8.0, %v7715_v52  ;;  %v8343_v17 = vld [vmem:[#allocation9_spill] sm:$0xff] }
 0x6c8   :  { %v4946_v28 = vpop.eup %4945  ;;  %v2660_v47 = vadd.f32 %v2644_v10, %v1844_v0  ;;  %v3429_v23 = vsub.f32 %v3413_v51, %v7683_v46  ;;  %v2257_v5 = vmul.f32 -0.1385711, %v2209_v61  ;;  %v2368_v48 = vmul.f32 %v7753_v49, %v2288_v2 }
 0x6c9   :  { %v4948_v56 = vpop.eup %4947  ;;  %v3459_v13 = vmul.f32 0.6931472, %v4946_v28  ;;  %v2241_v40 = vmul.f32 %v2225_v58, %v2193_v18  ;;  %v7769_v59 = vmul.f32 %v7756_v50, %v2289_v25  ;;  %v7772_v57 = vadd.f32 8.0, %v7719_v60 }
 0x6ca   :  { %v7775_v30 = vmul.f32 0.5, %v7518_v15  ;;  %v2661_v46 = vadd.f32 %v2645_v21, %v1845_v43  ;;  %v3461_v11 = vmul.f32 0.6931472, %v4948_v56  ;;  %v1668_v41 = vadd.f32 1e-08, %v1652_v14 }
 0x6cb   :  { %v3476_v53 = vadd.f32 %v3459_v13, %v3428_v24  ;;  %v2272_v9 = vadd.f32 %v2256_v20, %v2240_v32  ;;  %v2448_v0 = vmul.f32 %v7760_v19, %v2368_v48  ;;  %v2704_v3 = vadd.f32 1.0, %v7679_v34 }
 0x6cc   :  { %v3695_v29 = vsub.f32 0.0, %v7764_v1  ;;  %v3696_v38 = vsub.f32 0.0, %v7766_v31  ;;  %v3477_v10 = vadd.f32 %v3461_v11, %v3429_v23  ;;  %v7781_v8 = vadd.f32 1e-08, %v1653_v7 }
 0x6cd   :  { %v3492_v4 = vsub.f32 %v2660_v47, %v3476_v53  ;;  %v7784_v15 = vadd.f32 1e-08, %v7211_v39  ;;  %v2273_v43 = vadd.f32 %v2257_v5, %v2241_v40  ;;  %v2449_v14 = vmul.f32 %v7772_v57, %v7769_v59 }
 0x6ce   :  { %v3493_v37 = vsub.f32 %v2661_v46, %v3477_v10  ;;  %4949 = vlog2.f32 %v1668_v41  ;;  %v2336_v6 = vmul.f32 9.984369e-06, %v2288_v2  ;;  %v2705_v51 = vadd.f32 1.0, %v8343_v17 }
 0x6cf   :  { %v2320_v61 = vmul.f32 %v7753_v49, %v2272_v9  ;;  %v2337_v33 = vmul.f32 9.984369e-06, %v2289_v25  ;;  %4951 = vrcp.f32 %v2448_v0  ;;  %v2720_v58 = vadd.f32 676.5204, %v2704_v3 }
 0x6d0   :  { %v3691_v7 = vadd.f32 %v3493_v37, %v3492_v4  ;;  %v2721_v44 = vadd.f32 676.5204, %v2705_v51  ;;  %v2736_v18 = vadd.f32 2.0, %v7679_v34  ;;  %v2737_v39 = vadd.f32 2.0, %v8343_v17 }
 0x6d1   :  { %v2321_v21 = vmul.f32 %v7756_v50, %v2273_v43  ;;  %4953 = vrcp.f32 %v2449_v14  ;;  %v2768_v24 = vmul.f32 -1259.1392, %v2704_v3  ;;  %v2769_v32 = vmul.f32 -1259.1392, %v2705_v51 }
 0x6d2   :  { %3692 = vadd.xlane.f32.xlu1 %v3691_v7  ;;  %v2752_v2 = vmul.f32 %v2736_v18, %v2720_v58  ;;  %v2753_v20 = vmul.f32 %v2737_v39, %v2721_v44  ;;  %v2800_v28 = vmul.f32 %v2736_v18, %v2704_v3  ;;  %v2801_v47 = vmul.f32 %v2737_v39, %v2705_v51 }
 0x6d3   :  { %v2816_v25 = vadd.f32 3.0, %v7679_v34  ;;  %v2817_v23 = vadd.f32 3.0, %v8343_v17  ;;  %v2896_v5 = vadd.f32 4.0, %v7679_v34  ;;  %v2897_v56 = vadd.f32 4.0, %v8343_v17 }
 0x6d4   :  { %v2784_v13 = vadd.f32 %v2768_v24, %v2752_v2  ;;  %v2785_v40 = vadd.f32 %v2769_v32, %v2753_v20  ;;  %v2848_v46 = vmul.f32 771.3234, %v2800_v28  ;;  %v2849_v11 = vmul.f32 771.3234, %v2801_v47 }
 0x6d5   :  { %v2880_v41 = vmul.f32 %v2816_v25, %v2800_v28  ;;  %v2881_v53 = vmul.f32 %v2817_v23, %v2801_v47  ;;  %v2976_v9 = vadd.f32 5.0, %v7679_v34  ;;  %v2977_v0 = vadd.f32 5.0, %v8343_v17 }
 0x6d6   :  { %v2416_v3 = vmul.f32 1.5056327e-07, %v2368_v48  ;;  %v7800_v10 = vadd.f32 0.5, %v7753_v49  ;;  %v2832_v4 = vmul.f32 %v2816_v25, %v2784_v13  ;;  %v2833_v43 = vmul.f32 %v2817_v23, %v2785_v40  ;;  %v7813_v23 = vpop.xlane.xlu0 %3721 }
 0x6d7   :  { %v2352_v14 = vadd.f32 %v2336_v6, %v2320_v61  ;;  %v2960_v37 = vmul.f32 %v2896_v5, %v2880_v41  ;;  %v2961_v51 = vmul.f32 %v2897_v56, %v2881_v53  ;;  %v3056_v58 = vadd.f32 6.0, %v7679_v34 }
 0x6d8   :  { %v2864_v7 = vadd.f32 %v2848_v46, %v2832_v4  ;;  %v2865_v44 = vadd.f32 %v2849_v11, %v2833_v43  ;;  %v2928_v18 = vmul.f32 -176.61504, %v2880_v41  ;;  %v2929_v39 = vmul.f32 -176.61504, %v2881_v53 }
 0x6d9   :  { %v2353_v24 = vadd.f32 %v2337_v33, %v2321_v21  ;;  %v3040_v32 = vmul.f32 %v2976_v9, %v2960_v37  ;;  %v3041_v2 = vmul.f32 %v2977_v0, %v2961_v51  ;;  %v3057_v20 = vadd.f32 6.0, %v8343_v17 }
 0x6da   :  { %v7805_v48 = vadd.f32 0.5, %v7756_v50  ;;  %v2912_v49 = vmul.f32 %v2896_v5, %v2864_v7  ;;  %v2913_v28 = vmul.f32 %v2897_v56, %v2865_v44  ;;  %v3136_v6 = vadd.f32 7.0, %v7679_v34 }
 0x6db   :  { %v7808_v61 = vpop.eup %4949  ;;  %v2400_v47 = vmul.f32 %v7760_v19, %v2352_v14  ;;  %4955 = vlog2.f32 %v7800_v10  ;;  %v3120_v25 = vmul.f32 %v3056_v58, %v3040_v32  ;;  %v3137_v33 = vadd.f32 7.0, %v8343_v17 }
 0x6dc   :  { %v4952_v21 = vpop.eup %4951  ;;  %v2944_v13 = vadd.f32 %v2928_v18, %v2912_v49  ;;  %v2945_v40 = vadd.f32 %v2929_v39, %v2913_v28  ;;  %v3008_v50 = vmul.f32 12.507343, %v2960_v37  ;;  %v3009_v46 = vmul.f32 12.507343, %v2961_v51 }
 0x6dd   :  { %v2401_v5 = vmul.f32 %v7772_v57, %v2353_v24  ;;  %v2417_v56 = vmul.f32 1.5056327e-07, %v7769_v59  ;;  %v3121_v11 = vmul.f32 %v3057_v20, %v3041_v2  ;;  %v3216_v41 = vadd.f32 8.0, %v7679_v34  ;;  %v7821_v59 = vpop.xlane.xlu0 %3715  ;;  %v7823_v24 = vpop.xlane.xlu1 %3724 }
 0x6de   :  { %v4954_v19 = vpop.eup %4953  ;;  %4957 = vlog2.f32 %v7805_v48  ;;  %v2992_v53 = vmul.f32 %v2976_v9, %v2944_v13  ;;  %v2993_v4 = vmul.f32 %v2977_v0, %v2945_v40  ;;  %v3200_v43 = vmul.f32 %v3136_v6, %v3120_v25 }
 0x6df   :  { %v1777_v14 = vadd.f32 1e-08, %v8342_v54  ;;  %v2432_v7 = vadd.f32 %v2416_v3, %v2400_v47  ;;  %v3201_v44 = vmul.f32 %v3137_v33, %v3121_v11  ;;  %v3217_v37 = vadd.f32 8.0, %v8343_v17 }
 0x6e0   :  { %v3024_v51 = vadd.f32 %v3008_v50, %v2992_v53  ;;  %v3025_v18 = vadd.f32 %v3009_v46, %v2993_v4  ;;  %v3088_v57 = vmul.f32 -0.1385711, %v3040_v32  ;;  %v3089_v39 = vmul.f32 -0.1385711, %v3041_v2 }
 0x6e1   :  { %4959 = vlog2.f32 %v7781_v8  ;;  %v2433_v49 = vadd.f32 %v2417_v56, %v2401_v5  ;;  %v3280_v9 = vmul.f32 %v3216_v41, %v3200_v43  ;;  %v3281_v0 = vmul.f32 %v3217_v37, %v3201_v44 }
 0x6e2   :  { %4961 = vlog2.f32 %v7784_v15  ;;  %v3072_v54 = vmul.f32 %v3056_v58, %v3024_v51  ;;  %v3073_v3 = vmul.f32 %v3057_v20, %v3025_v18  ;;  %v7827_v28 = vadd.f32 0.5, %v3136_v6 }
 0x6e3   :  { %v2475_v47 = vmul.f32 %v4952_v21, %v2432_v7  ;;  %v3168_v13 = vmul.f32 9.984369e-06, %v3120_v25  ;;  %4963 = vrcp.f32 %v3280_v9  ;;  %v7829_v32 = vadd.f32 0.5, %v3137_v33  ;;  %v3681_v25 = vpop.xlane.xlu0 %3680  ;;  %v7837_v21 = vpop.xlane.xlu1 %3718 }
 0x6e4   :  { %v3104_v2 = vadd.f32 %v3088_v57, %v3072_v54  ;;  %v3105_v40 = vadd.f32 %v3089_v39, %v3073_v3  ;;  %v3169_v50 = vmul.f32 9.984369e-06, %v3121_v11  ;;  %4965 = vrcp.f32 %v3281_v0  ;;  %v8344_v11 = vld [vmem:[#allocation52_spill] sm:$0xff] }
 0x6e5   :  { %v3728_v8 = vmul.f32 0.5, %v7744_v42  ;;  %v3735_v46 = vadd.f32 %v7775_v30, %v3695_v29  ;;  %v2477_v15 = vmul.f32 %v4954_v19, %v2433_v49  ;;  %4967 = vlog2.f32 %v7827_v28 }
 0x6e6   :  { %v3152_v58 = vmul.f32 %v3136_v6, %v3104_v2  ;;  %v3153_v20 = vmul.f32 %v3137_v33, %v3105_v40  ;;  %4969 = vlog2.f32 %v7829_v32  ;;  %vm4064_vm2 = vcmp.eq.s32.totalorder %v8344_v11, 0 }
 0x6e7   :  { %v3736_v5 = vadd.f32 %v3728_v8, %v3696_v38  ;;  %4971 = vlog2.f32 %v1777_v14  ;;  %v3248_v30 = vmul.f32 1.5056327e-07, %v3200_v43  ;;  %v3697_v29 = vsub.f32 0.0, %v3681_v25  ;;  %v8345_v38 = vld [vmem:[#allocation43_spill] sm:$0xff] }
 0x6e8   :  { %v4956_v56 = vpop.eup %4955  ;;  %4973 = vlog2.f32 %v2475_v47  ;;  %v3184_v42 = vadd.f32 %v3168_v13, %v3152_v58  ;;  %v3185_v1 = vadd.f32 %v3169_v50, %v3153_v20  ;;  %v4066_v6 = vsel %vm4064_vm2, %v3735_v46, 0.0 }
 0x6e9   :  { %4975 = vlog2.f32 %v2477_v15  ;;  %v3249_v53 = vmul.f32 1.5056327e-07, %v3201_v44  ;;  %vm4090_vm3 = vcmp.eq.s32.totalorder %v8344_v11, 2  ;;  %v4075_v4 = vsel %vm4073_vm9, %v8345_v38, 0.0 }
 0x6ea   :  { %v3232_v33 = vmul.f32 %v3216_v41, %v3184_v42  ;;  %v3233_v19 = vmul.f32 %v3217_v37, %v3185_v1  ;;  %v4074_v14 = vsel %vm4073_vm9, %v7482_v55, 0.0  ;;  %v3729_v43 = vmul.f32 0.5, %v7746_v22  ;;  %v8346_v42 = vld [vmem:[#allocation34_spill] sm:$0xff] }
 0x6eb   :  { %v4958_v31 = vpop.eup %4957  ;;  %v4065_v7 = vsel %vm4064_vm2, %v7544_v35, 0.0  ;;  %v2512_v41 = vadd.f32 0.5, %v7715_v52  ;;  %v2539_v44 = vmul.f32 0.6931472, %v4956_v56  ;;  %v4083_v51 = vadd.f32 %v4075_v4, %v4066_v6 }
 0x6ec   :  { %v7856_v18 = vadd.f32 %v4074_v14, %v4065_v7  ;;  %v3264_v57 = vadd.f32 %v3248_v30, %v3232_v33  ;;  %v3737_v39 = vadd.f32 %v3729_v43, %v3697_v29  ;;  %v4067_v55 = vsel %vm4064_vm2, %v3736_v5, 0.0 }
 0x6ed   :  { %v4099_v37 = vpop.permute.xlu1 %4098  ;;  %v2513_v9 = vadd.f32 0.5, %v7719_v60  ;;  %v2541_v0 = vmul.f32 0.6931472, %v4958_v31  ;;  %v3265_v35 = vadd.f32 %v3249_v53, %v3233_v19  ;;  %v4076_v3 = vsel %vm4073_vm9, %v7496_v63, 0.0 }
 0x6ee   :  { %v4132_v49 = vsel %vm4090_vm3, %v4099_v37, 0.0  ;;  %v4960_v22 = vpop.eup %4959  ;;  %v1695_v13 = vmul.f32 0.6931472, %v7808_v61  ;;  %v4084_v40 = vadd.f32 %v4076_v3, %v4067_v55  ;;  %v2560_v8 = vmul.f32 %v2539_v44, %v2512_v41  ;;  %v3690_v61 = vpop.xlane.xlu0 %3689 }
 0x6ef   :  { %v4140_v54 = vadd.f32 %v4132_v49, %v4083_v51  ;;  %v4962_v52 = vpop.eup %4961  ;;  %v4068_v15 = vsel %vm4064_vm2, %v3737_v39, 0.0  ;;  %v1697_v63 = vmul.f32 0.6931472, %v4960_v22  ;;  %v2561_v20 = vmul.f32 %v2541_v0, %v2513_v9 }
 0x6f0   :  { %v4964_v47 = vpop.eup %4963  ;;  %v4077_v1 = vsel %vm4073_vm9, %v8346_v42, 0.0  ;;  %v3344_v30 = vadd.f32 0.5, %v7679_v34  ;;  %v3345_v33 = vadd.f32 0.5, %v8343_v17  ;;  %v1733_v4 = vmul.f32 %v7695_v26, %v1695_v13  ;;  %v8347_v42 = vld [vmem:[#allocation31_spill] sm:$0xff] }
 0x6f1   :  { %4148 = vst [vmem:[%s7963_s17 + $0x8] sm:$0xff] %v4140_v54  ;;  %v4104_v2 = vpop.permute.xlu1 %4103  ;;  %v4966_v50 = vpop.eup %4965  ;;  %v3307_v60 = vmul.f32 %v4964_v47, %v3264_v57  ;;  %v4085_v31 = vadd.f32 %v4077_v1, %v4068_v15  ;;  %v2576_v14 = vadd.f32 0.9189385, %v2560_v8  ;;  %v3700_v43 = vsub.f32 0.0, %v3690_v61  ;;  %v8348_v1 = vld [vmem:[#allocation71_spill] sm:$0xff] }
 0x6f2   :  { %v4133_v46 = vsel %vm4090_vm3, %v4104_v2, 0.0  ;;  %v4968_v58 = vpop.eup %4967  ;;  %v3309_v25 = vmul.f32 %v4966_v50, %v3265_v35  ;;  %v1734_v41 = vmul.f32 %v7707_v62, %v1697_v63  ;;  %v2577_v17 = vadd.f32 0.9189385, %v2561_v20 }
 0x6f3   :  { %v4141_v5 = vadd.f32 %v4133_v46, %v4084_v40  ;;  %v4970_v56 = vpop.eup %4969  ;;  %v3371_v29 = vmul.f32 0.6931472, %v4968_v58  ;;  %4977 = vlog2.f32 %v3307_v60  ;;  %v3732_v37 = vmul.f32 0.5, %v7813_v23 }
 0x6f4   :  { %v4972_v6 = vpop.eup %4971  ;;  %v3373_v19 = vmul.f32 0.6931472, %v4970_v56  ;;  %4979 = vlog2.f32 %v3309_v25  ;;  %v1803_v51 = vmul.f32 0.6931472, %v4962_v52  ;;  %v1760_v55 = vsub.f32 %v6644_v36, %v1733_v4 }
 0x6f5   :  { %4149 = vst [vmem:[%s7963_s17 + $0x10] sm:$0xff] %v4141_v5  ;;  %v4109_v53 = vpop.permute.xlu1 %4108  ;;  %v4974_v38 = vpop.eup %4973  ;;  %v3392_v57 = vmul.f32 %v3371_v29, %v3344_v30  ;;  %v1805_v39 = vmul.f32 0.6931472, %v4972_v6  ;;  %v2592_v22 = vsub.f32 %v2576_v14, %v7800_v10  ;;  %v3740_v0 = vadd.f32 %v3732_v37, %v3700_v43 }
 0x6f6   :  { %v4134_v34 = vsel %vm4090_vm3, %v4109_v53, 0.0  ;;  %v4976_v7 = vpop.eup %4975  ;;  %v3393_v49 = vmul.f32 %v3373_v19, %v3345_v33  ;;  %v2619_v9 = vmul.f32 0.6931472, %v4974_v38  ;;  %v1761_v62 = vsub.f32 %v6647_v12, %v1734_v41 }
 0x6f7   :  { %v4142_v44 = vadd.f32 %v4134_v34, %v4085_v31  ;;  %v2593_v35 = vsub.f32 %v2577_v17, %v7805_v48  ;;  %v2621_v23 = vmul.f32 0.6931472, %v4976_v7  ;;  %v1824_v54 = vmul.f32 %v7691_v27, %v1803_v51  ;;  %v8350_v31 = vld [vmem:[#allocation16_spill] sm:$0xff] }
 0x6f8   :  { %v3408_v52 = vadd.f32 0.9189385, %v3392_v57  ;;  %v1825_v3 = vmul.f32 %v7703_v16, %v1805_v39  ;;  %v3409_v47 = vadd.f32 0.9189385, %v3393_v49  ;;  %v2640_v40 = vadd.f32 %v2619_v9, %v2592_v22 }
 0x6f9   :  { %4150 = vst [vmem:[%s7963_s17 + $0x18] sm:$0xff] %v4142_v44  ;;  %v4114_v26 = vpop.permute.xlu1 %4113  ;;  %v1840_v2 = vadd.f32 %v1824_v54, %v1760_v55  ;;  %v4071_v36 = vsel %vm4064_vm2, %v3740_v0, 0.0  ;;  %v2641_v50 = vadd.f32 %v2621_v23, %v2593_v35  ;;  %v4080_v12 = vsel %vm4073_vm9, %v7526_v45, 0.0  ;;  %v8351_v55 = vld [vmem:[#allocation44_spill] sm:$0xff]  ;;  %v8352_v35 = vld [vmem:[#allocation55_spill] sm:$0xff] }
 0x6fa   :  { %v1841_v10 = vadd.f32 %v1825_v3, %v1761_v62  ;;  %v3424_v48 = vsub.f32 %v3408_v52, %v7827_v28  ;;  %v3425_v27 = vsub.f32 %v3409_v47, %v7829_v32  ;;  %v4088_v16 = vadd.f32 %v4080_v12, %v4071_v36 }
 0x6fb   :  { %v2656_v15 = vadd.f32 %v2640_v40, %v1840_v2  ;;  %v8349_v30 = vsub.f32 %v8347_v42, %v8348_v1  ;;  %v3730_v33 = vmul.f32 0.5, %v7821_v59  ;;  %v4078_v38 = vsel %vm4073_vm9, %v8350_v31, 0.0 }
 0x6fc   :  { %v2657_v20 = vadd.f32 %v2641_v50, %v1841_v10  ;;  %v4135_v14 = vsel %vm4090_vm3, %v4114_v26, 0.0  ;;  %v3733_v37 = vmul.f32 0.5, %v7823_v24  ;;  %v3731_v39 = vmul.f32 0.5, %v7837_v21 }
 0x6fd   :  { %v4119_v13 = vpop.permute.xlu1 %4118  ;;  %v4061_v29 = vmul.f32 0.5, %v8349_v30 }
 0x6fe   :  { %v4136_v21 = vsel %vm4090_vm3, %v4119_v13, 0.0 }
 0x700   :  { %v4978_v8 = vpop.eup %4977 }
 0x701   :  { %v4124_v60 = vpop.permute.xlu1 %4123  ;;  %v4980_v46 = vpop.eup %4979  ;;  %v3451_v58 = vmul.f32 0.6931472, %v4978_v8 }
 0x702   :  { %v4137_v63 = vsel %vm4090_vm3, %v4124_v60, 0.0  ;;  %v3453_v25 = vmul.f32 0.6931472, %v4980_v46 }
 0x703   :  { %v4145_v61 = vadd.f32 %v4137_v63, %v4088_v16  ;;  %v3472_v5 = vadd.f32 %v3451_v58, %v3424_v48 }
 0x704   :  { %v3473_v56 = vadd.f32 %v3453_v25, %v3425_v27 }
 0x705   :  { %4153 = vst [vmem:[%s7963_s17 + $0x30] sm:$0xff] %v4145_v61  ;;  %v3488_v45 = vsub.f32 %v2656_v15, %v3472_v5 }
 0x706   :  { %v3489_v28 = vsub.f32 %v2657_v20, %v3473_v56 }
 0x708   :  { %v3685_v32 = vadd.f32 %v3489_v28, %v3488_v45 }
 0x70a   :  { %3686 = vadd.xlane.f32.xlu1 %v3685_v32 }
 0x71b   :  { %4128 = vperm.xlu1 %4395, %v4061_v29  }
 0x71f   :  { %v3684_v6 = vpop.xlane.xlu0 %3683 }
 0x720   :  { %v3698_v19 = vsub.f32 0.0, %v3684_v6 }
 0x722   :  { %v3738_v53 = vadd.f32 %v3730_v33, %v3698_v19 }
 0x724   :  { %v4069_v4 = vsel %vm4064_vm2, %v3738_v53, 0.0 }
 0x725   :  { %v4086_v43 = vadd.f32 %v4078_v38, %v4069_v4 }
 0x727   :  { %v4094_v34 = vpop.permute.xlu0 %4093  ;;  %v4143_v7 = vadd.f32 %v4135_v14, %v4086_v43 }
 0x728   :  { %v4131_v41 = vsel %vm4090_vm3, %v4094_v34, 0.0 }
 0x729   :  { %v4139_v59 = vadd.f32 %v4131_v41, %v7856_v18  ;;  %4151 = vst [vmem:[%s7963_s17 + $0x20] sm:$0xff] %v4143_v7 }
 0x72b   :  { %4147 = vst [vmem:[%s7963_s17] sm:$0xff] %v4139_v59 }
 0x75b   :  { %v3693_v17 = vpop.xlane.xlu1 %3692 }
 0x75c   :  { %v3701_v44 = vsub.f32 0.0, %v3693_v17 }
 0x75e   :  { %v3741_v51 = vadd.f32 %v3733_v37, %v3701_v44 }
 0x760   :  { %v4072_v18 = vsel %vm4064_vm2, %v3741_v51, 0.0 }
 0x761   :  { %v4089_v22 = vadd.f32 %v8351_v55, %v4072_v18 }
 0x793   :  { %v3687_v57 = vpop.xlane.xlu1 %3686 }
 0x794   :  { %v3699_v49 = vsub.f32 0.0, %v3687_v57 }
 0x796   :  { %v3739_v26 = vadd.f32 %v3731_v39, %v3699_v49 }
 0x797   :  { %v4129_v9 = vpop.permute.xlu1 %4128 }
 0x798   :  { %v4070_v0 = vsel %vm4064_vm2, %v3739_v26, 0.0  ;;  %v4138_v62 = vsel %vm4090_vm3, %v4129_v9, 0.0 }
 0x799   :  { %v4087_v24 = vadd.f32 %v8352_v35, %v4070_v0  ;;  %v4146_v23 = vadd.f32 %v4138_v62, %v4089_v22 }
 0x79b   :  { %v4144_v54 = vadd.f32 %v4136_v21, %v4087_v24  ;;  %4154 = vst [vmem:[%s7963_s17 + $0x38] sm:$0xff] %v4146_v23 }
 0x79d   :  { %4152 = vst [vmem:[%s7963_s17 + $0x28] sm:$0xff] %v4144_v54 }
 0x79e   :  { %4159 = vsyncpa [#allocation3], 1 }

</bundles_post_ra>
